<compile_context>
chip_gen: v7x
topology: tpu7x:2x2x1
jax: 0.10.0
libtpu: 0.0.40
codegen_flags: <defaults>
</compile_context>

<pallas_src>
import numpy as np
import jax
import jax.numpy as jnp
from jax import lax
from jax.experimental import pallas as pl
from jax.experimental.pallas import tpu as pltpu

# ---- constants implied by simple_net.__init__ ----
ICA_CHANNELS = 32
FILTERING_SIZE = 50
ENV_STRIDE = 10                                   # detected_envelopes[:, :, ::10]
LAG_BACKWARD, LAG_FORWARD = 250, 0
T_IN = LAG_BACKWARD + LAG_FORWARD + 1             # 251
T_CONV = T_IN - FILTERING_SIZE + 1                # 202
N_WIN = (T_CONV + ENV_STRIDE - 1) // ENV_STRIDE   # 21
FINAL_FEATURES = ICA_CHANNELS * N_WIN             # 672 == self.final_out_features
BN_EPS = 1e-5


def _simple_net_kernel(x2_ref, wbig_ref, bbig_ref, wf2_ref, wlbig_ref,
                       eblk_ref, blin_ref, out_ref, z_ref):
    # x2_ref:    (T, B*Cin)       time on sublanes, batch*in-channel on lanes
    # wbig_ref:  (B*Cin, B*ICA)   block-diagonal 1x1-conv weight
    # bbig_ref:  (1, B*ICA)       ica bias tiled over batch blocks
    # wf2_ref:   (FILT, B*ICA)    grouped-conv taps, tiled over batch blocks
    # wlbig_ref: (OUT, N_WIN, B*ICA)  linear weight (f = c*N_WIN + j), tiled
    # eblk_ref:  (B*ICA, B)       0/1 lane-block -> batch reduction matrix
    # blin_ref:  (OUT, 1)
    # out_ref:   (OUT, B)         (transposed to (B, OUT) by the wrapper)
    # z_ref:     (T, B*ICA)       VMEM scratch: BN1-normalized signal
    T = x2_ref.shape[0]
    lanes = bbig_ref.shape[1]
    B = eblk_ref.shape[1]
    ica = lanes // B
    filt = wf2_ref.shape[0]
    n_win = wlbig_ref.shape[1]
    out_ch = out_ref.shape[0]

    def block_sum(v):
        # Sum the B batch blocks (ica lanes each); result replicated per block.
        # Lane rolls by multiples of `ica` are XLU ops (free-ish next to VALU).
        acc = v
        for i in range(1, B):
            acc = acc + pltpu.roll(v, shift=i * ica, axis=1)
        return acc

    # ---- self.ica: Conv1d(Cin, 32, k=1) as ONE MXU matmul (block-diag W) ----
    z = jnp.dot(x2_ref[...], wbig_ref[...],
                precision=lax.Precision.HIGHEST,
                preferred_element_type=jnp.float32) + bbig_ref[...]   # (T, B*ICA)

    # ---- self.unmixed_batchnorm: per-channel stats over (batch, time) ----
    inv_n = 1.0 / (B * T)
    mu = block_sum(jnp.sum(z, axis=0, keepdims=True)) * inv_n          # (1, B*ICA)
    d = z - mu
    var = block_sum(jnp.sum(d * d, axis=0, keepdims=True)) * inv_n     # biased var
    z_ref[...] = d * lax.rsqrt(var + BN_EPS)                           # normalized

    # ---- detector.conv_filtering (k=50, groups=32, no bias) + ReLU + ::10 ----
    # k-outer MAC: for each tap k, all N_WIN strided windows are advanced at
    # once with a stride-10 sublane load -> pure VALU FMAs, no sublane reduces.
    acc = jnp.zeros((n_win, lanes), jnp.float32)
    for k in range(filt):
        zk = z_ref[pl.ds(k, n_win, stride=ENV_STRIDE), :]              # (N_WIN, B*ICA)
        acc = acc + zk * wf2_ref[pl.ds(k, 1), :]
    y = jnp.maximum(acc, 0.0)                                          # ReLU

    # ---- self.features_batchnorm: per flattened feature (c*N_WIN+j) over batch ----
    inv_b = 1.0 / B
    fmu = block_sum(y) * inv_b
    dy = y - fmu
    fvar = block_sum(dy * dy) * inv_b
    yn = dy * lax.rsqrt(fvar + BN_EPS)                                 # (N_WIN, B*ICA)

    # ---- self.wights_second: Linear(672, OUT) ----
    # out[b, o] = sum_{j,c} yn[j, b*ICA+c] * w_lin[o, c*N_WIN+j] + b[o]
    # Per-o elementwise product + sublane sum, then one small MXU matmul with
    # the 0/1 block matrix performs the per-batch lane-block reduction.
    rows = []
    for o in range(out_ch):
        p = yn * wlbig_ref[o]                                          # (N_WIN, B*ICA)
        rows.append(jnp.sum(p, axis=0, keepdims=True))                 # (1, B*ICA)
    s = jnp.concatenate(rows, axis=0)                                  # (OUT, B*ICA)
    out_t = jnp.dot(s, eblk_ref[...],
                    precision=lax.Precision.HIGHEST,
                    preferred_element_type=jnp.float32)                # (OUT, B)
    out_ref[...] = out_t + blin_ref[...]                               # single store


@jax.jit
def simple_net_forward(x, w_ica, b_ica, w_filt, w_lin, b_lin):
    """x: (B, in_channels, T) float32 (PyTorch NCW). Returns (B, output_channels)."""
    B, cin, T = x.shape
    out_ch, ff = w_lin.shape
    ica = w_ica.shape[0]
    filt = w_filt.shape[2]
    n_win = ff // ica
    assert T == T_IN and ff == ica * n_win and ica == ICA_CHANNELS
    lanes = B * ica

    # ---- wrapper glue: layout plumbing only (transposes / tiles of weights) ----
    x2 = jnp.transpose(x, (2, 0, 1)).reshape(T, B * cin)               # (T, B*Cin)
    w0 = jnp.transpose(w_ica[:, :, 0], (1, 0))                         # (Cin, ICA)
    wbig = jnp.kron(jnp.eye(B, dtype=x.dtype), w0)                     # block-diagonal
    bbig = jnp.tile(b_ica, (B,)).reshape(1, lanes)                     # (1, B*ICA)
    wf2 = jnp.tile(jnp.transpose(w_filt[:, 0, :], (1, 0)), (1, B))     # (FILT, B*ICA)
    # Linear weight: flattened feature f = c*N_WIN + j -> (OUT, N_WIN, ICA), tiled.
    wl = jnp.transpose(w_lin.reshape(out_ch, ica, n_win), (0, 2, 1))   # (OUT, N_WIN, ICA)
    wlbig = jnp.tile(wl, (1, 1, B))                                    # (OUT, N_WIN, B*ICA)
    eblk = jnp.kron(jnp.eye(B, dtype=x.dtype),
                    jnp.ones((ica, 1), x.dtype))                       # (B*ICA, B)
    blin = b_lin.reshape(out_ch, 1)

    out_t = pl.pallas_call(
        _simple_net_kernel,
        out_shape=jax.ShapeDtypeStruct((out_ch, B), jnp.float32),
        in_specs=[pl.BlockSpec(memory_space=pltpu.MemorySpace.VMEM)] * 7,
        out_specs=pl.BlockSpec(memory_space=pltpu.MemorySpace.VMEM),
        scratch_shapes=[pltpu.VMEM((T, lanes), jnp.float32)],
    )(x2, wbig, bbig, wf2, wlbig, eblk, blin)
    return out_t.T                                                     # (B, OUT)


def _reference_forward(x, w_ica, b_ica, w_filt, w_lin, b_lin):
    """Pure-JAX reference mirroring the PyTorch forward (NCW layout)."""
    hp = lax.Precision.HIGHEST
    z = lax.conv_general_dilated(x, w_ica, window_strides=(1,), padding="VALID",
                                 dimension_numbers=("NCH", "OIH", "NCH"),
                                 precision=hp)
    z = z + b_ica[None, :, None]
    mu = z.mean(axis=(0, 2), keepdims=True)
    var = ((z - mu) ** 2).mean(axis=(0, 2), keepdims=True)
    z = (z - mu) / jnp.sqrt(var + BN_EPS)
    y = lax.conv_general_dilated(z, w_filt, window_strides=(1,), padding="VALID",
                                 dimension_numbers=("NCH", "OIH", "NCH"),
                                 feature_group_count=z.shape[1], precision=hp)
    y = jnp.maximum(y, 0.0)
    f = y[:, :, ::ENV_STRIDE].reshape(y.shape[0], -1)
    mu = f.mean(axis=0, keepdims=True)
    var = ((f - mu) ** 2).mean(axis=0, keepdims=True)
    f = (f - mu) / jnp.sqrt(var + BN_EPS)
    return jnp.dot(f, w_lin.T, precision=hp) + b_lin[None, :]


if __name__ == "__main__":
    B, IN_CH, OUT_CH = 4, 8, 2

    key = jax.random.PRNGKey(0)
    k = jax.random.split(key, 6)
    x = jax.random.normal(k[0], (B, IN_CH, T_IN), jnp.float32)
    # deterministic synthetic parameters (shapes from simple_net.__init__)
    w_ica = 0.2 * jax.random.normal(k[1], (ICA_CHANNELS, IN_CH, 1), jnp.float32)
    b_ica = 0.1 * jax.random.normal(k[2], (ICA_CHANNELS,), jnp.float32)
    w_filt = 0.15 * jax.random.normal(k[3], (ICA_CHANNELS, 1, FILTERING_SIZE),
                                      jnp.float32)
    w_lin = 0.05 * jax.random.normal(k[4], (OUT_CH, FINAL_FEATURES), jnp.float32)
    b_lin = 0.05 * jax.random.normal(k[5], (OUT_CH,), jnp.float32)

    out = jax.block_until_ready(
        simple_net_forward(x, w_ica, b_ica, w_filt, w_lin, b_lin))
    ref = jax.block_until_ready(
        _reference_forward(x, w_ica, b_ica, w_filt, w_lin, b_lin))

    assert out.shape == (B, OUT_CH) and out.dtype == jnp.float32
    np.testing.assert_allclose(np.asarray(out), np.asarray(ref),
                               rtol=2e-3, atol=2e-3)
    print("KERNEL_OK")
</pallas_src>

<mosaic_0001>
module attributes {stable_mosaic.version = 11 : i64} {
  func.func @_simple_net_kernel(%arg0: memref<251x32xf32, #tpu.memory_space<vmem>>, %arg1: memref<32x128xf32, #tpu.memory_space<vmem>>, %arg2: memref<1x128xf32, #tpu.memory_space<vmem>>, %arg3: memref<50x128xf32, #tpu.memory_space<vmem>>, %arg4: memref<2x21x128xf32, #tpu.memory_space<vmem>>, %arg5: memref<128x4xf32, #tpu.memory_space<vmem>>, %arg6: memref<2x1xf32, #tpu.memory_space<vmem>>, %arg7: memref<2x4xf32, #tpu.memory_space<vmem>>, %arg8: memref<251x128xf32, #tpu.memory_space<vmem>>) attributes {dimension_semantics = [], scalar_prefetch = 0 : i64, scratch_operands = 1 : i64, tpu.core_type = #tpu.core_type<tc>} {
    %c0 = arith.constant 0 : index
    %c0_0 = arith.constant 0 : index
    %0 = vector.load %arg0[%c0, %c0_0] : memref<251x32xf32, #tpu.memory_space<vmem>>, vector<251x32xf32>
    %c0_1 = arith.constant 0 : index
    %c0_2 = arith.constant 0 : index
    %1 = vector.load %arg1[%c0_1, %c0_2] : memref<32x128xf32, #tpu.memory_space<vmem>>, vector<32x128xf32>
    %cst = arith.constant dense<0.000000e+00> : vector<251x128xf32>
    %2 = tpu.matmul %0, %1, %cst {dimension_numbers = #tpu.dot_dimension_numbers<[1], [0], [0], [1], [0, 0, 1, 1], [], []>, precision = #tpu.contract_precision<fp32>} : vector<251x32xf32>, vector<32x128xf32>, vector<251x128xf32> -> vector<251x128xf32>
    %c0_3 = arith.constant 0 : index
    %c0_4 = arith.constant 0 : index
    %3 = vector.load %arg2[%c0_3, %c0_4] : memref<1x128xf32, #tpu.memory_space<vmem>>, vector<1x128xf32>
    %4 = vector.broadcast %3 : vector<1x128xf32> to vector<251x128xf32>
    %5 = arith.addf %2, %4 : vector<251x128xf32>
    %cst_5 = arith.constant dense<0.000000e+00> : vector<128xf32>
    %6 = vector.multi_reduction <add>, %5, %cst_5 [0] : vector<251x128xf32> to vector<128xf32>
    %7 = vector.shape_cast %6 : vector<128xf32> to vector<1x128xf32>
    %c32_i32 = arith.constant 32 : i32
    %8 = tpu.dynamic_rotate %7 by %c32_i32 dim 1 : vector<1x128xf32>, i32 -> vector<1x128xf32>
    %9 = arith.addf %7, %8 : vector<1x128xf32>
    %c64_i32 = arith.constant 64 : i32
    %10 = tpu.dynamic_rotate %7 by %c64_i32 dim 1 : vector<1x128xf32>, i32 -> vector<1x128xf32>
    %11 = arith.addf %9, %10 : vector<1x128xf32>
    %c96_i32 = arith.constant 96 : i32
    %12 = tpu.dynamic_rotate %7 by %c96_i32 dim 1 : vector<1x128xf32>, i32 -> vector<1x128xf32>
    %13 = arith.addf %11, %12 : vector<1x128xf32>
    %cst_6 = arith.constant 9.96015965E-4 : f32
    %14 = vector.broadcast %cst_6 : f32 to vector<1x128xf32>
    %15 = arith.mulf %13, %14 : vector<1x128xf32>
    %16 = vector.broadcast %15 : vector<1x128xf32> to vector<251x128xf32>
    %17 = arith.subf %5, %16 : vector<251x128xf32>
    %18 = arith.mulf %17, %17 : vector<251x128xf32>
    %cst_7 = arith.constant dense<0.000000e+00> : vector<128xf32>
    %19 = vector.multi_reduction <add>, %18, %cst_7 [0] : vector<251x128xf32> to vector<128xf32>
    %20 = vector.shape_cast %19 : vector<128xf32> to vector<1x128xf32>
    %c32_i32_8 = arith.constant 32 : i32
    %21 = tpu.dynamic_rotate %20 by %c32_i32_8 dim 1 : vector<1x128xf32>, i32 -> vector<1x128xf32>
    %22 = arith.addf %20, %21 : vector<1x128xf32>
    %c64_i32_9 = arith.constant 64 : i32
    %23 = tpu.dynamic_rotate %20 by %c64_i32_9 dim 1 : vector<1x128xf32>, i32 -> vector<1x128xf32>
    %24 = arith.addf %22, %23 : vector<1x128xf32>
    %c96_i32_10 = arith.constant 96 : i32
    %25 = tpu.dynamic_rotate %20 by %c96_i32_10 dim 1 : vector<1x128xf32>, i32 -> vector<1x128xf32>
    %26 = arith.addf %24, %25 : vector<1x128xf32>
    %cst_11 = arith.constant 9.96015965E-4 : f32
    %27 = vector.broadcast %cst_11 : f32 to vector<1x128xf32>
    %28 = arith.mulf %26, %27 : vector<1x128xf32>
    %cst_12 = arith.constant 9.99999974E-6 : f32
    %29 = vector.broadcast %cst_12 : f32 to vector<1x128xf32>
    %30 = arith.addf %28, %29 : vector<1x128xf32>
    %31 = math.rsqrt %30 : vector<1x128xf32>
    %32 = vector.broadcast %31 : vector<1x128xf32> to vector<251x128xf32>
    %33 = arith.mulf %17, %32 : vector<251x128xf32>
    %c0_13 = arith.constant 0 : index
    %c0_14 = arith.constant 0 : index
    %34 = vector.load %arg8[%c0_13, %c0_14] : memref<251x128xf32, #tpu.memory_space<vmem>>, vector<251x128xf32>
    tpu.vector_store %arg8[%c0_13, %c0_14], %33 {strides = array<i32>} : memref<251x128xf32, #tpu.memory_space<vmem>>, vector<251x128xf32>,
    %cst_15 = arith.constant 0.000000e+00 : f32
    %35 = vector.broadcast %cst_15 : f32 to vector<21x128xf32>
    %c0_16 = arith.constant 0 : index
    %c0_17 = arith.constant 0 : index
    %36 = tpu.strided_load %arg8[%c0_16, %c0_17] {strides = array<i32: 10, 1>} : memref<251x128xf32, #tpu.memory_space<vmem>>, vector<21x128xf32>
    %c0_18 = arith.constant 0 : index
    %c0_19 = arith.constant 0 : index
    %37 = vector.load %arg3[%c0_18, %c0_19] : memref<50x128xf32, #tpu.memory_space<vmem>>, vector<1x128xf32>
    %38 = vector.broadcast %37 : vector<1x128xf32> to vector<21x128xf32>
    %39 = arith.mulf %36, %38 : vector<21x128xf32>
    %40 = arith.addf %35, %39 : vector<21x128xf32>
    %c1 = arith.constant 1 : index
    %c0_20 = arith.constant 0 : index
    %41 = tpu.strided_load %arg8[%c1, %c0_20] {strides = array<i32: 10, 1>} : memref<251x128xf32, #tpu.memory_space<vmem>>, vector<21x128xf32>
    %c1_21 = arith.constant 1 : index
    %c0_22 = arith.constant 0 : index
    %42 = vector.load %arg3[%c1_21, %c0_22] : memref<50x128xf32, #tpu.memory_space<vmem>>, vector<1x128xf32>
    %43 = vector.broadcast %42 : vector<1x128xf32> to vector<21x128xf32>
    %44 = arith.mulf %41, %43 : vector<21x128xf32>
    %45 = arith.addf %40, %44 : vector<21x128xf32>
    %c2 = arith.constant 2 : index
    %c0_23 = arith.constant 0 : index
    %46 = tpu.strided_load %arg8[%c2, %c0_23] {strides = array<i32: 10, 1>} : memref<251x128xf32, #tpu.memory_space<vmem>>, vector<21x128xf32>
    %c2_24 = arith.constant 2 : index
    %c0_25 = arith.constant 0 : index
    %47 = vector.load %arg3[%c2_24, %c0_25] : memref<50x128xf32, #tpu.memory_space<vmem>>, vector<1x128xf32>
    %48 = vector.broadcast %47 : vector<1x128xf32> to vector<21x128xf32>
    %49 = arith.mulf %46, %48 : vector<21x128xf32>
    %50 = arith.addf %45, %49 : vector<21x128xf32>
    %c3 = arith.constant 3 : index
    %c0_26 = arith.constant 0 : index
    %51 = tpu.strided_load %arg8[%c3, %c0_26] {strides = array<i32: 10, 1>} : memref<251x128xf32, #tpu.memory_space<vmem>>, vector<21x128xf32>
    %c3_27 = arith.constant 3 : index
    %c0_28 = arith.constant 0 : index
    %52 = vector.load %arg3[%c3_27, %c0_28] : memref<50x128xf32, #tpu.memory_space<vmem>>, vector<1x128xf32>
    %53 = vector.broadcast %52 : vector<1x128xf32> to vector<21x128xf32>
    %54 = arith.mulf %51, %53 : vector<21x128xf32>
    %55 = arith.addf %50, %54 : vector<21x128xf32>
    %c4 = arith.constant 4 : index
    %c0_29 = arith.constant 0 : index
    %56 = tpu.strided_load %arg8[%c4, %c0_29] {strides = array<i32: 10, 1>} : memref<251x128xf32, #tpu.memory_space<vmem>>, vector<21x128xf32>
    %c4_30 = arith.constant 4 : index
    %c0_31 = arith.constant 0 : index
    %57 = vector.load %arg3[%c4_30, %c0_31] : memref<50x128xf32, #tpu.memory_space<vmem>>, vector<1x128xf32>
    %58 = vector.broadcast %57 : vector<1x128xf32> to vector<21x128xf32>
    %59 = arith.mulf %56, %58 : vector<21x128xf32>
    %60 = arith.addf %55, %59 : vector<21x128xf32>
    %c5 = arith.constant 5 : index
    %c0_32 = arith.constant 0 : index
    %61 = tpu.strided_load %arg8[%c5, %c0_32] {strides = array<i32: 10, 1>} : memref<251x128xf32, #tpu.memory_space<vmem>>, vector<21x128xf32>
    %c5_33 = arith.constant 5 : index
    %c0_34 = arith.constant 0 : index
    %62 = vector.load %arg3[%c5_33, %c0_34] : memref<50x128xf32, #tpu.memory_space<vmem>>, vector<1x128xf32>
    %63 = vector.broadcast %62 : vector<1x128xf32> to vector<21x128xf32>
    %64 = arith.mulf %61, %63 : vector<21x128xf32>
    %65 = arith.addf %60, %64 : vector<21x128xf32>
    %c6 = arith.constant 6 : index
    %c0_35 = arith.constant 0 : index
    %66 = tpu.strided_load %arg8[%c6, %c0_35] {strides = array<i32: 10, 1>} : memref<251x128xf32, #tpu.memory_space<vmem>>, vector<21x128xf32>
    %c6_36 = arith.constant 6 : index
    %c0_37 = arith.constant 0 : index
    %67 = vector.load %arg3[%c6_36, %c0_37] : memref<50x128xf32, #tpu.memory_space<vmem>>, vector<1x128xf32>
    %68 = vector.broadcast %67 : vector<1x128xf32> to vector<21x128xf32>
    %69 = arith.mulf %66, %68 : vector<21x128xf32>
    %70 = arith.addf %65, %69 : vector<21x128xf32>
    %c7 = arith.constant 7 : index
    %c0_38 = arith.constant 0 : index
    %71 = tpu.strided_load %arg8[%c7, %c0_38] {strides = array<i32: 10, 1>} : memref<251x128xf32, #tpu.memory_space<vmem>>, vector<21x128xf32>
    %c7_39 = arith.constant 7 : index
    %c0_40 = arith.constant 0 : index
    %72 = vector.load %arg3[%c7_39, %c0_40] : memref<50x128xf32, #tpu.memory_space<vmem>>, vector<1x128xf32>
    %73 = vector.broadcast %72 : vector<1x128xf32> to vector<21x128xf32>
    %74 = arith.mulf %71, %73 : vector<21x128xf32>
    %75 = arith.addf %70, %74 : vector<21x128xf32>
    %c8 = arith.constant 8 : index
    %c0_41 = arith.constant 0 : index
    %76 = tpu.strided_load %arg8[%c8, %c0_41] {strides = array<i32: 10, 1>} : memref<251x128xf32, #tpu.memory_space<vmem>>, vector<21x128xf32>
    %c8_42 = arith.constant 8 : index
    %c0_43 = arith.constant 0 : index
    %77 = vector.load %arg3[%c8_42, %c0_43] : memref<50x128xf32, #tpu.memory_space<vmem>>, vector<1x128xf32>
    %78 = vector.broadcast %77 : vector<1x128xf32> to vector<21x128xf32>
    %79 = arith.mulf %76, %78 : vector<21x128xf32>
    %80 = arith.addf %75, %79 : vector<21x128xf32>
    %c9 = arith.constant 9 : index
    %c0_44 = arith.constant 0 : index
    %81 = tpu.strided_load %arg8[%c9, %c0_44] {strides = array<i32: 10, 1>} : memref<251x128xf32, #tpu.memory_space<vmem>>, vector<21x128xf32>
    %c9_45 = arith.constant 9 : index
    %c0_46 = arith.constant 0 : index
    %82 = vector.load %arg3[%c9_45, %c0_46] : memref<50x128xf32, #tpu.memory_space<vmem>>, vector<1x128xf32>
    %83 = vector.broadcast %82 : vector<1x128xf32> to vector<21x128xf32>
    %84 = arith.mulf %81, %83 : vector<21x128xf32>
    %85 = arith.addf %80, %84 : vector<21x128xf32>
    %c10 = arith.constant 10 : index
    %c0_47 = arith.constant 0 : index
    %86 = tpu.strided_load %arg8[%c10, %c0_47] {strides = array<i32: 10, 1>} : memref<251x128xf32, #tpu.memory_space<vmem>>, vector<21x128xf32>
    %c10_48 = arith.constant 10 : index
    %c0_49 = arith.constant 0 : index
    %87 = vector.load %arg3[%c10_48, %c0_49] : memref<50x128xf32, #tpu.memory_space<vmem>>, vector<1x128xf32>
    %88 = vector.broadcast %87 : vector<1x128xf32> to vector<21x128xf32>
    %89 = arith.mulf %86, %88 : vector<21x128xf32>
    %90 = arith.addf %85, %89 : vector<21x128xf32>
    %c11 = arith.constant 11 : index
    %c0_50 = arith.constant 0 : index
    %91 = tpu.strided_load %arg8[%c11, %c0_50] {strides = array<i32: 10, 1>} : memref<251x128xf32, #tpu.memory_space<vmem>>, vector<21x128xf32>
    %c11_51 = arith.constant 11 : index
    %c0_52 = arith.constant 0 : index
    %92 = vector.load %arg3[%c11_51, %c0_52] : memref<50x128xf32, #tpu.memory_space<vmem>>, vector<1x128xf32>
    %93 = vector.broadcast %92 : vector<1x128xf32> to vector<21x128xf32>
    %94 = arith.mulf %91, %93 : vector<21x128xf32>
    %95 = arith.addf %90, %94 : vector<21x128xf32>
    %c12 = arith.constant 12 : index
    %c0_53 = arith.constant 0 : index
    %96 = tpu.strided_load %arg8[%c12, %c0_53] {strides = array<i32: 10, 1>} : memref<251x128xf32, #tpu.memory_space<vmem>>, vector<21x128xf32>
    %c12_54 = arith.constant 12 : index
    %c0_55 = arith.constant 0 : index
    %97 = vector.load %arg3[%c12_54, %c0_55] : memref<50x128xf32, #tpu.memory_space<vmem>>, vector<1x128xf32>
    %98 = vector.broadcast %97 : vector<1x128xf32> to vector<21x128xf32>
    %99 = arith.mulf %96, %98 : vector<21x128xf32>
    %100 = arith.addf %95, %99 : vector<21x128xf32>
    %c13 = arith.constant 13 : index
    %c0_56 = arith.constant 0 : index
    %101 = tpu.strided_load %arg8[%c13, %c0_56] {strides = array<i32: 10, 1>} : memref<251x128xf32, #tpu.memory_space<vmem>>, vector<21x128xf32>
    %c13_57 = arith.constant 13 : index
    %c0_58 = arith.constant 0 : index
    %102 = vector.load %arg3[%c13_57, %c0_58] : memref<50x128xf32, #tpu.memory_space<vmem>>, vector<1x128xf32>
    %103 = vector.broadcast %102 : vector<1x128xf32> to vector<21x128xf32>
    %104 = arith.mulf %101, %103 : vector<21x128xf32>
    %105 = arith.addf %100, %104 : vector<21x128xf32>
    %c14 = arith.constant 14 : index
    %c0_59 = arith.constant 0 : index
    %106 = tpu.strided_load %arg8[%c14, %c0_59] {strides = array<i32: 10, 1>} : memref<251x128xf32, #tpu.memory_space<vmem>>, vector<21x128xf32>
    %c14_60 = arith.constant 14 : index
    %c0_61 = arith.constant 0 : index
    %107 = vector.load %arg3[%c14_60, %c0_61] : memref<50x128xf32, #tpu.memory_space<vmem>>, vector<1x128xf32>
    %108 = vector.broadcast %107 : vector<1x128xf32> to vector<21x128xf32>
    %109 = arith.mulf %106, %108 : vector<21x128xf32>
    %110 = arith.addf %105, %109 : vector<21x128xf32>
    %c15 = arith.constant 15 : index
    %c0_62 = arith.constant 0 : index
    %111 = tpu.strided_load %arg8[%c15, %c0_62] {strides = array<i32: 10, 1>} : memref<251x128xf32, #tpu.memory_space<vmem>>, vector<21x128xf32>
    %c15_63 = arith.constant 15 : index
    %c0_64 = arith.constant 0 : index
    %112 = vector.load %arg3[%c15_63, %c0_64] : memref<50x128xf32, #tpu.memory_space<vmem>>, vector<1x128xf32>
    %113 = vector.broadcast %112 : vector<1x128xf32> to vector<21x128xf32>
    %114 = arith.mulf %111, %113 : vector<21x128xf32>
    %115 = arith.addf %110, %114 : vector<21x128xf32>
    %c16 = arith.constant 16 : index
    %c0_65 = arith.constant 0 : index
    %116 = tpu.strided_load %arg8[%c16, %c0_65] {strides = array<i32: 10, 1>} : memref<251x128xf32, #tpu.memory_space<vmem>>, vector<21x128xf32>
    %c16_66 = arith.constant 16 : index
    %c0_67 = arith.constant 0 : index
    %117 = vector.load %arg3[%c16_66, %c0_67] : memref<50x128xf32, #tpu.memory_space<vmem>>, vector<1x128xf32>
    %118 = vector.broadcast %117 : vector<1x128xf32> to vector<21x128xf32>
    %119 = arith.mulf %116, %118 : vector<21x128xf32>
    %120 = arith.addf %115, %119 : vector<21x128xf32>
    %c17 = arith.constant 17 : index
    %c0_68 = arith.constant 0 : index
    %121 = tpu.strided_load %arg8[%c17, %c0_68] {strides = array<i32: 10, 1>} : memref<251x128xf32, #tpu.memory_space<vmem>>, vector<21x128xf32>
    %c17_69 = arith.constant 17 : index
    %c0_70 = arith.constant 0 : index
    %122 = vector.load %arg3[%c17_69, %c0_70] : memref<50x128xf32, #tpu.memory_space<vmem>>, vector<1x128xf32>
    %123 = vector.broadcast %122 : vector<1x128xf32> to vector<21x128xf32>
    %124 = arith.mulf %121, %123 : vector<21x128xf32>
    %125 = arith.addf %120, %124 : vector<21x128xf32>
    %c18 = arith.constant 18 : index
    %c0_71 = arith.constant 0 : index
    %126 = tpu.strided_load %arg8[%c18, %c0_71] {strides = array<i32: 10, 1>} : memref<251x128xf32, #tpu.memory_space<vmem>>, vector<21x128xf32>
    %c18_72 = arith.constant 18 : index
    %c0_73 = arith.constant 0 : index
    %127 = vector.load %arg3[%c18_72, %c0_73] : memref<50x128xf32, #tpu.memory_space<vmem>>, vector<1x128xf32>
    %128 = vector.broadcast %127 : vector<1x128xf32> to vector<21x128xf32>
    %129 = arith.mulf %126, %128 : vector<21x128xf32>
    %130 = arith.addf %125, %129 : vector<21x128xf32>
    %c19 = arith.constant 19 : index
    %c0_74 = arith.constant 0 : index
    %131 = tpu.strided_load %arg8[%c19, %c0_74] {strides = array<i32: 10, 1>} : memref<251x128xf32, #tpu.memory_space<vmem>>, vector<21x128xf32>
    %c19_75 = arith.constant 19 : index
    %c0_76 = arith.constant 0 : index
    %132 = vector.load %arg3[%c19_75, %c0_76] : memref<50x128xf32, #tpu.memory_space<vmem>>, vector<1x128xf32>
    %133 = vector.broadcast %132 : vector<1x128xf32> to vector<21x128xf32>
    %134 = arith.mulf %131, %133 : vector<21x128xf32>
    %135 = arith.addf %130, %134 : vector<21x128xf32>
    %c20 = arith.constant 20 : index
    %c0_77 = arith.constant 0 : index
    %136 = tpu.strided_load %arg8[%c20, %c0_77] {strides = array<i32: 10, 1>} : memref<251x128xf32, #tpu.memory_space<vmem>>, vector<21x128xf32>
    %c20_78 = arith.constant 20 : index
    %c0_79 = arith.constant 0 : index
    %137 = vector.load %arg3[%c20_78, %c0_79] : memref<50x128xf32, #tpu.memory_space<vmem>>, vector<1x128xf32>
    %138 = vector.broadcast %137 : vector<1x128xf32> to vector<21x128xf32>
    %139 = arith.mulf %136, %138 : vector<21x128xf32>
    %140 = arith.addf %135, %139 : vector<21x128xf32>
    %c21 = arith.constant 21 : index
    %c0_80 = arith.constant 0 : index
    %141 = tpu.strided_load %arg8[%c21, %c0_80] {strides = array<i32: 10, 1>} : memref<251x128xf32, #tpu.memory_space<vmem>>, vector<21x128xf32>
    %c21_81 = arith.constant 21 : index
    %c0_82 = arith.constant 0 : index
    %142 = vector.load %arg3[%c21_81, %c0_82] : memref<50x128xf32, #tpu.memory_space<vmem>>, vector<1x128xf32>
    %143 = vector.broadcast %142 : vector<1x128xf32> to vector<21x128xf32>
    %144 = arith.mulf %141, %143 : vector<21x128xf32>
    %145 = arith.addf %140, %144 : vector<21x128xf32>
    %c22 = arith.constant 22 : index
    %c0_83 = arith.constant 0 : index
    %146 = tpu.strided_load %arg8[%c22, %c0_83] {strides = array<i32: 10, 1>} : memref<251x128xf32, #tpu.memory_space<vmem>>, vector<21x128xf32>
    %c22_84 = arith.constant 22 : index
    %c0_85 = arith.constant 0 : index
    %147 = vector.load %arg3[%c22_84, %c0_85] : memref<50x128xf32, #tpu.memory_space<vmem>>, vector<1x128xf32>
    %148 = vector.broadcast %147 : vector<1x128xf32> to vector<21x128xf32>
    %149 = arith.mulf %146, %148 : vector<21x128xf32>
    %150 = arith.addf %145, %149 : vector<21x128xf32>
    %c23 = arith.constant 23 : index
    %c0_86 = arith.constant 0 : index
    %151 = tpu.strided_load %arg8[%c23, %c0_86] {strides = array<i32: 10, 1>} : memref<251x128xf32, #tpu.memory_space<vmem>>, vector<21x128xf32>
    %c23_87 = arith.constant 23 : index
    %c0_88 = arith.constant 0 : index
    %152 = vector.load %arg3[%c23_87, %c0_88] : memref<50x128xf32, #tpu.memory_space<vmem>>, vector<1x128xf32>
    %153 = vector.broadcast %152 : vector<1x128xf32> to vector<21x128xf32>
    %154 = arith.mulf %151, %153 : vector<21x128xf32>
    %155 = arith.addf %150, %154 : vector<21x128xf32>
    %c24 = arith.constant 24 : index
    %c0_89 = arith.constant 0 : index
    %156 = tpu.strided_load %arg8[%c24, %c0_89] {strides = array<i32: 10, 1>} : memref<251x128xf32, #tpu.memory_space<vmem>>, vector<21x128xf32>
    %c24_90 = arith.constant 24 : index
    %c0_91 = arith.constant 0 : index
    %157 = vector.load %arg3[%c24_90, %c0_91] : memref<50x128xf32, #tpu.memory_space<vmem>>, vector<1x128xf32>
    %158 = vector.broadcast %157 : vector<1x128xf32> to vector<21x128xf32>
    %159 = arith.mulf %156, %158 : vector<21x128xf32>
    %160 = arith.addf %155, %159 : vector<21x128xf32>
    %c25 = arith.constant 25 : index
    %c0_92 = arith.constant 0 : index
    %161 = tpu.strided_load %arg8[%c25, %c0_92] {strides = array<i32: 10, 1>} : memref<251x128xf32, #tpu.memory_space<vmem>>, vector<21x128xf32>
    %c25_93 = arith.constant 25 : index
    %c0_94 = arith.constant 0 : index
    %162 = vector.load %arg3[%c25_93, %c0_94] : memref<50x128xf32, #tpu.memory_space<vmem>>, vector<1x128xf32>
    %163 = vector.broadcast %162 : vector<1x128xf32> to vector<21x128xf32>
    %164 = arith.mulf %161, %163 : vector<21x128xf32>
    %165 = arith.addf %160, %164 : vector<21x128xf32>
    %c26 = arith.constant 26 : index
    %c0_95 = arith.constant 0 : index
    %166 = tpu.strided_load %arg8[%c26, %c0_95] {strides = array<i32: 10, 1>} : memref<251x128xf32, #tpu.memory_space<vmem>>, vector<21x128xf32>
    %c26_96 = arith.constant 26 : index
    %c0_97 = arith.constant 0 : index
    %167 = vector.load %arg3[%c26_96, %c0_97] : memref<50x128xf32, #tpu.memory_space<vmem>>, vector<1x128xf32>
    %168 = vector.broadcast %167 : vector<1x128xf32> to vector<21x128xf32>
    %169 = arith.mulf %166, %168 : vector<21x128xf32>
    %170 = arith.addf %165, %169 : vector<21x128xf32>
    %c27 = arith.constant 27 : index
    %c0_98 = arith.constant 0 : index
    %171 = tpu.strided_load %arg8[%c27, %c0_98] {strides = array<i32: 10, 1>} : memref<251x128xf32, #tpu.memory_space<vmem>>, vector<21x128xf32>
    %c27_99 = arith.constant 27 : index
    %c0_100 = arith.constant 0 : index
    %172 = vector.load %arg3[%c27_99, %c0_100] : memref<50x128xf32, #tpu.memory_space<vmem>>, vector<1x128xf32>
    %173 = vector.broadcast %172 : vector<1x128xf32> to vector<21x128xf32>
    %174 = arith.mulf %171, %173 : vector<21x128xf32>
    %175 = arith.addf %170, %174 : vector<21x128xf32>
    %c28 = arith.constant 28 : index
    %c0_101 = arith.constant 0 : index
    %176 = tpu.strided_load %arg8[%c28, %c0_101] {strides = array<i32: 10, 1>} : memref<251x128xf32, #tpu.memory_space<vmem>>, vector<21x128xf32>
    %c28_102 = arith.constant 28 : index
    %c0_103 = arith.constant 0 : index
    %177 = vector.load %arg3[%c28_102, %c0_103] : memref<50x128xf32, #tpu.memory_space<vmem>>, vector<1x128xf32>
    %178 = vector.broadcast %177 : vector<1x128xf32> to vector<21x128xf32>
    %179 = arith.mulf %176, %178 : vector<21x128xf32>
    %180 = arith.addf %175, %179 : vector<21x128xf32>
    %c29 = arith.constant 29 : index
    %c0_104 = arith.constant 0 : index
    %181 = tpu.strided_load %arg8[%c29, %c0_104] {strides = array<i32: 10, 1>} : memref<251x128xf32, #tpu.memory_space<vmem>>, vector<21x128xf32>
    %c29_105 = arith.constant 29 : index
    %c0_106 = arith.constant 0 : index
    %182 = vector.load %arg3[%c29_105, %c0_106] : memref<50x128xf32, #tpu.memory_space<vmem>>, vector<1x128xf32>
    %183 = vector.broadcast %182 : vector<1x128xf32> to vector<21x128xf32>
    %184 = arith.mulf %181, %183 : vector<21x128xf32>
    %185 = arith.addf %180, %184 : vector<21x128xf32>
    %c30 = arith.constant 30 : index
    %c0_107 = arith.constant 0 : index
    %186 = tpu.strided_load %arg8[%c30, %c0_107] {strides = array<i32: 10, 1>} : memref<251x128xf32, #tpu.memory_space<vmem>>, vector<21x128xf32>
    %c30_108 = arith.constant 30 : index
    %c0_109 = arith.constant 0 : index
    %187 = vector.load %arg3[%c30_108, %c0_109] : memref<50x128xf32, #tpu.memory_space<vmem>>, vector<1x128xf32>
    %188 = vector.broadcast %187 : vector<1x128xf32> to vector<21x128xf32>
    %189 = arith.mulf %186, %188 : vector<21x128xf32>
    %190 = arith.addf %185, %189 : vector<21x128xf32>
    %c31 = arith.constant 31 : index
    %c0_110 = arith.constant 0 : index
    %191 = tpu.strided_load %arg8[%c31, %c0_110] {strides = array<i32: 10, 1>} : memref<251x128xf32, #tpu.memory_space<vmem>>, vector<21x128xf32>
    %c31_111 = arith.constant 31 : index
    %c0_112 = arith.constant 0 : index
    %192 = vector.load %arg3[%c31_111, %c0_112] : memref<50x128xf32, #tpu.memory_space<vmem>>, vector<1x128xf32>
    %193 = vector.broadcast %192 : vector<1x128xf32> to vector<21x128xf32>
    %194 = arith.mulf %191, %193 : vector<21x128xf32>
    %195 = arith.addf %190, %194 : vector<21x128xf32>
    %c32 = arith.constant 32 : index
    %c0_113 = arith.constant 0 : index
    %196 = tpu.strided_load %arg8[%c32, %c0_113] {strides = array<i32: 10, 1>} : memref<251x128xf32, #tpu.memory_space<vmem>>, vector<21x128xf32>
    %c32_114 = arith.constant 32 : index
    %c0_115 = arith.constant 0 : index
    %197 = vector.load %arg3[%c32_114, %c0_115] : memref<50x128xf32, #tpu.memory_space<vmem>>, vector<1x128xf32>
    %198 = vector.broadcast %197 : vector<1x128xf32> to vector<21x128xf32>
    %199 = arith.mulf %196, %198 : vector<21x128xf32>
    %200 = arith.addf %195, %199 : vector<21x128xf32>
    %c33 = arith.constant 33 : index
    %c0_116 = arith.constant 0 : index
    %201 = tpu.strided_load %arg8[%c33, %c0_116] {strides = array<i32: 10, 1>} : memref<251x128xf32, #tpu.memory_space<vmem>>, vector<21x128xf32>
    %c33_117 = arith.constant 33 : index
    %c0_118 = arith.constant 0 : index
    %202 = vector.load %arg3[%c33_117, %c0_118] : memref<50x128xf32, #tpu.memory_space<vmem>>, vector<1x128xf32>
    %203 = vector.broadcast %202 : vector<1x128xf32> to vector<21x128xf32>
    %204 = arith.mulf %201, %203 : vector<21x128xf32>
    %205 = arith.addf %200, %204 : vector<21x128xf32>
    %c34 = arith.constant 34 : index
    %c0_119 = arith.constant 0 : index
    %206 = tpu.strided_load %arg8[%c34, %c0_119] {strides = array<i32: 10, 1>} : memref<251x128xf32, #tpu.memory_space<vmem>>, vector<21x128xf32>
    %c34_120 = arith.constant 34 : index
    %c0_121 = arith.constant 0 : index
    %207 = vector.load %arg3[%c34_120, %c0_121] : memref<50x128xf32, #tpu.memory_space<vmem>>, vector<1x128xf32>
    %208 = vector.broadcast %207 : vector<1x128xf32> to vector<21x128xf32>
    %209 = arith.mulf %206, %208 : vector<21x128xf32>
    %210 = arith.addf %205, %209 : vector<21x128xf32>
    %c35 = arith.constant 35 : index
    %c0_122 = arith.constant 0 : index
    %211 = tpu.strided_load %arg8[%c35, %c0_122] {strides = array<i32: 10, 1>} : memref<251x128xf32, #tpu.memory_space<vmem>>, vector<21x128xf32>
    %c35_123 = arith.constant 35 : index
    %c0_124 = arith.constant 0 : index
    %212 = vector.load %arg3[%c35_123, %c0_124] : memref<50x128xf32, #tpu.memory_space<vmem>>, vector<1x128xf32>
    %213 = vector.broadcast %212 : vector<1x128xf32> to vector<21x128xf32>
    %214 = arith.mulf %211, %213 : vector<21x128xf32>
    %215 = arith.addf %210, %214 : vector<21x128xf32>
    %c36 = arith.constant 36 : index
    %c0_125 = arith.constant 0 : index
    %216 = tpu.strided_load %arg8[%c36, %c0_125] {strides = array<i32: 10, 1>} : memref<251x128xf32, #tpu.memory_space<vmem>>, vector<21x128xf32>
    %c36_126 = arith.constant 36 : index
    %c0_127 = arith.constant 0 : index
    %217 = vector.load %arg3[%c36_126, %c0_127] : memref<50x128xf32, #tpu.memory_space<vmem>>, vector<1x128xf32>
    %218 = vector.broadcast %217 : vector<1x128xf32> to vector<21x128xf32>
    %219 = arith.mulf %216, %218 : vector<21x128xf32>
    %220 = arith.addf %215, %219 : vector<21x128xf32>
    %c37 = arith.constant 37 : index
    %c0_128 = arith.constant 0 : index
    %221 = tpu.strided_load %arg8[%c37, %c0_128] {strides = array<i32: 10, 1>} : memref<251x128xf32, #tpu.memory_space<vmem>>, vector<21x128xf32>
    %c37_129 = arith.constant 37 : index
    %c0_130 = arith.constant 0 : index
    %222 = vector.load %arg3[%c37_129, %c0_130] : memref<50x128xf32, #tpu.memory_space<vmem>>, vector<1x128xf32>
    %223 = vector.broadcast %222 : vector<1x128xf32> to vector<21x128xf32>
    %224 = arith.mulf %221, %223 : vector<21x128xf32>
    %225 = arith.addf %220, %224 : vector<21x128xf32>
    %c38 = arith.constant 38 : index
    %c0_131 = arith.constant 0 : index
    %226 = tpu.strided_load %arg8[%c38, %c0_131] {strides = array<i32: 10, 1>} : memref<251x128xf32, #tpu.memory_space<vmem>>, vector<21x128xf32>
    %c38_132 = arith.constant 38 : index
    %c0_133 = arith.constant 0 : index
    %227 = vector.load %arg3[%c38_132, %c0_133] : memref<50x128xf32, #tpu.memory_space<vmem>>, vector<1x128xf32>
    %228 = vector.broadcast %227 : vector<1x128xf32> to vector<21x128xf32>
    %229 = arith.mulf %226, %228 : vector<21x128xf32>
    %230 = arith.addf %225, %229 : vector<21x128xf32>
    %c39 = arith.constant 39 : index
    %c0_134 = arith.constant 0 : index
    %231 = tpu.strided_load %arg8[%c39, %c0_134] {strides = array<i32: 10, 1>} : memref<251x128xf32, #tpu.memory_space<vmem>>, vector<21x128xf32>
    %c39_135 = arith.constant 39 : index
    %c0_136 = arith.constant 0 : index
    %232 = vector.load %arg3[%c39_135, %c0_136] : memref<50x128xf32, #tpu.memory_space<vmem>>, vector<1x128xf32>
    %233 = vector.broadcast %232 : vector<1x128xf32> to vector<21x128xf32>
    %234 = arith.mulf %231, %233 : vector<21x128xf32>
    %235 = arith.addf %230, %234 : vector<21x128xf32>
    %c40 = arith.constant 40 : index
    %c0_137 = arith.constant 0 : index
    %236 = tpu.strided_load %arg8[%c40, %c0_137] {strides = array<i32: 10, 1>} : memref<251x128xf32, #tpu.memory_space<vmem>>, vector<21x128xf32>
    %c40_138 = arith.constant 40 : index
    %c0_139 = arith.constant 0 : index
    %237 = vector.load %arg3[%c40_138, %c0_139] : memref<50x128xf32, #tpu.memory_space<vmem>>, vector<1x128xf32>
    %238 = vector.broadcast %237 : vector<1x128xf32> to vector<21x128xf32>
    %239 = arith.mulf %236, %238 : vector<21x128xf32>
    %240 = arith.addf %235, %239 : vector<21x128xf32>
    %c41 = arith.constant 41 : index
    %c0_140 = arith.constant 0 : index
    %241 = tpu.strided_load %arg8[%c41, %c0_140] {strides = array<i32: 10, 1>} : memref<251x128xf32, #tpu.memory_space<vmem>>, vector<21x128xf32>
    %c41_141 = arith.constant 41 : index
    %c0_142 = arith.constant 0 : index
    %242 = vector.load %arg3[%c41_141, %c0_142] : memref<50x128xf32, #tpu.memory_space<vmem>>, vector<1x128xf32>
    %243 = vector.broadcast %242 : vector<1x128xf32> to vector<21x128xf32>
    %244 = arith.mulf %241, %243 : vector<21x128xf32>
    %245 = arith.addf %240, %244 : vector<21x128xf32>
    %c42 = arith.constant 42 : index
    %c0_143 = arith.constant 0 : index
    %246 = tpu.strided_load %arg8[%c42, %c0_143] {strides = array<i32: 10, 1>} : memref<251x128xf32, #tpu.memory_space<vmem>>, vector<21x128xf32>
    %c42_144 = arith.constant 42 : index
    %c0_145 = arith.constant 0 : index
    %247 = vector.load %arg3[%c42_144, %c0_145] : memref<50x128xf32, #tpu.memory_space<vmem>>, vector<1x128xf32>
    %248 = vector.broadcast %247 : vector<1x128xf32> to vector<21x128xf32>
    %249 = arith.mulf %246, %248 : vector<21x128xf32>
    %250 = arith.addf %245, %249 : vector<21x128xf32>
    %c43 = arith.constant 43 : index
    %c0_146 = arith.constant 0 : index
    %251 = tpu.strided_load %arg8[%c43, %c0_146] {strides = array<i32: 10, 1>} : memref<251x128xf32, #tpu.memory_space<vmem>>, vector<21x128xf32>
    %c43_147 = arith.constant 43 : index
    %c0_148 = arith.constant 0 : index
    %252 = vector.load %arg3[%c43_147, %c0_148] : memref<50x128xf32, #tpu.memory_space<vmem>>, vector<1x128xf32>
    %253 = vector.broadcast %252 : vector<1x128xf32> to vector<21x128xf32>
    %254 = arith.mulf %251, %253 : vector<21x128xf32>
    %255 = arith.addf %250, %254 : vector<21x128xf32>
    %c44 = arith.constant 44 : index
    %c0_149 = arith.constant 0 : index
    %256 = tpu.strided_load %arg8[%c44, %c0_149] {strides = array<i32: 10, 1>} : memref<251x128xf32, #tpu.memory_space<vmem>>, vector<21x128xf32>
    %c44_150 = arith.constant 44 : index
    %c0_151 = arith.constant 0 : index
    %257 = vector.load %arg3[%c44_150, %c0_151] : memref<50x128xf32, #tpu.memory_space<vmem>>, vector<1x128xf32>
    %258 = vector.broadcast %257 : vector<1x128xf32> to vector<21x128xf32>
    %259 = arith.mulf %256, %258 : vector<21x128xf32>
    %260 = arith.addf %255, %259 : vector<21x128xf32>
    %c45 = arith.constant 45 : index
    %c0_152 = arith.constant 0 : index
    %261 = tpu.strided_load %arg8[%c45, %c0_152] {strides = array<i32: 10, 1>} : memref<251x128xf32, #tpu.memory_space<vmem>>, vector<21x128xf32>
    %c45_153 = arith.constant 45 : index
    %c0_154 = arith.constant 0 : index
    %262 = vector.load %arg3[%c45_153, %c0_154] : memref<50x128xf32, #tpu.memory_space<vmem>>, vector<1x128xf32>
    %263 = vector.broadcast %262 : vector<1x128xf32> to vector<21x128xf32>
    %264 = arith.mulf %261, %263 : vector<21x128xf32>
    %265 = arith.addf %260, %264 : vector<21x128xf32>
    %c46 = arith.constant 46 : index
    %c0_155 = arith.constant 0 : index
    %266 = tpu.strided_load %arg8[%c46, %c0_155] {strides = array<i32: 10, 1>} : memref<251x128xf32, #tpu.memory_space<vmem>>, vector<21x128xf32>
    %c46_156 = arith.constant 46 : index
    %c0_157 = arith.constant 0 : index
    %267 = vector.load %arg3[%c46_156, %c0_157] : memref<50x128xf32, #tpu.memory_space<vmem>>, vector<1x128xf32>
    %268 = vector.broadcast %267 : vector<1x128xf32> to vector<21x128xf32>
    %269 = arith.mulf %266, %268 : vector<21x128xf32>
    %270 = arith.addf %265, %269 : vector<21x128xf32>
    %c47 = arith.constant 47 : index
    %c0_158 = arith.constant 0 : index
    %271 = tpu.strided_load %arg8[%c47, %c0_158] {strides = array<i32: 10, 1>} : memref<251x128xf32, #tpu.memory_space<vmem>>, vector<21x128xf32>
    %c47_159 = arith.constant 47 : index
    %c0_160 = arith.constant 0 : index
    %272 = vector.load %arg3[%c47_159, %c0_160] : memref<50x128xf32, #tpu.memory_space<vmem>>, vector<1x128xf32>
    %273 = vector.broadcast %272 : vector<1x128xf32> to vector<21x128xf32>
    %274 = arith.mulf %271, %273 : vector<21x128xf32>
    %275 = arith.addf %270, %274 : vector<21x128xf32>
    %c48 = arith.constant 48 : index
    %c0_161 = arith.constant 0 : index
    %276 = tpu.strided_load %arg8[%c48, %c0_161] {strides = array<i32: 10, 1>} : memref<251x128xf32, #tpu.memory_space<vmem>>, vector<21x128xf32>
    %c48_162 = arith.constant 48 : index
    %c0_163 = arith.constant 0 : index
    %277 = vector.load %arg3[%c48_162, %c0_163] : memref<50x128xf32, #tpu.memory_space<vmem>>, vector<1x128xf32>
    %278 = vector.broadcast %277 : vector<1x128xf32> to vector<21x128xf32>
    %279 = arith.mulf %276, %278 : vector<21x128xf32>
    %280 = arith.addf %275, %279 : vector<21x128xf32>
    %c49 = arith.constant 49 : index
    %c0_164 = arith.constant 0 : index
    %281 = tpu.strided_load %arg8[%c49, %c0_164] {strides = array<i32: 10, 1>} : memref<251x128xf32, #tpu.memory_space<vmem>>, vector<21x128xf32>
    %c49_165 = arith.constant 49 : index
    %c0_166 = arith.constant 0 : index
    %282 = vector.load %arg3[%c49_165, %c0_166] : memref<50x128xf32, #tpu.memory_space<vmem>>, vector<1x128xf32>
    %283 = vector.broadcast %282 : vector<1x128xf32> to vector<21x128xf32>
    %284 = arith.mulf %281, %283 : vector<21x128xf32>
    %285 = arith.addf %280, %284 : vector<21x128xf32>
    %cst_167 = arith.constant 0.000000e+00 : f32
    %286 = vector.broadcast %cst_167 : f32 to vector<21x128xf32>
    %287 = arith.maximumf %285, %286 : vector<21x128xf32>
    %c32_i32_168 = arith.constant 32 : i32
    %288 = tpu.dynamic_rotate %287 by %c32_i32_168 dim 1 : vector<21x128xf32>, i32 -> vector<21x128xf32>
    %289 = arith.addf %287, %288 : vector<21x128xf32>
    %c64_i32_169 = arith.constant 64 : i32
    %290 = tpu.dynamic_rotate %287 by %c64_i32_169 dim 1 : vector<21x128xf32>, i32 -> vector<21x128xf32>
    %291 = arith.addf %289, %290 : vector<21x128xf32>
    %c96_i32_170 = arith.constant 96 : i32
    %292 = tpu.dynamic_rotate %287 by %c96_i32_170 dim 1 : vector<21x128xf32>, i32 -> vector<21x128xf32>
    %293 = arith.addf %291, %292 : vector<21x128xf32>
    %cst_171 = arith.constant 2.500000e-01 : f32
    %294 = vector.broadcast %cst_171 : f32 to vector<21x128xf32>
    %295 = arith.mulf %293, %294 : vector<21x128xf32>
    %296 = arith.subf %287, %295 : vector<21x128xf32>
    %297 = arith.mulf %296, %296 : vector<21x128xf32>
    %c32_i32_172 = arith.constant 32 : i32
    %298 = tpu.dynamic_rotate %297 by %c32_i32_172 dim 1 : vector<21x128xf32>, i32 -> vector<21x128xf32>
    %299 = arith.addf %297, %298 : vector<21x128xf32>
    %c64_i32_173 = arith.constant 64 : i32
    %300 = tpu.dynamic_rotate %297 by %c64_i32_173 dim 1 : vector<21x128xf32>, i32 -> vector<21x128xf32>
    %301 = arith.addf %299, %300 : vector<21x128xf32>
    %c96_i32_174 = arith.constant 96 : i32
    %302 = tpu.dynamic_rotate %297 by %c96_i32_174 dim 1 : vector<21x128xf32>, i32 -> vector<21x128xf32>
    %303 = arith.addf %301, %302 : vector<21x128xf32>
    %cst_175 = arith.constant 2.500000e-01 : f32
    %304 = vector.broadcast %cst_175 : f32 to vector<21x128xf32>
    %305 = arith.mulf %303, %304 : vector<21x128xf32>
    %cst_176 = arith.constant 9.99999974E-6 : f32
    %306 = vector.broadcast %cst_176 : f32 to vector<21x128xf32>
    %307 = arith.addf %305, %306 : vector<21x128xf32>
    %308 = math.rsqrt %307 : vector<21x128xf32>
    %309 = arith.mulf %296, %308 : vector<21x128xf32>
    %c0_177 = arith.constant 0 : index
    %c0_178 = arith.constant 0 : index
    %c0_179 = arith.constant 0 : index
    %310 = vector.load %arg4[%c0_177, %c0_178, %c0_179] : memref<2x21x128xf32, #tpu.memory_space<vmem>>, vector<1x21x128xf32>
    %311 = vector.shape_cast %310 : vector<1x21x128xf32> to vector<21x128xf32>
    %312 = arith.mulf %309, %311 : vector<21x128xf32>
    %cst_180 = arith.constant dense<0.000000e+00> : vector<128xf32>
    %313 = vector.multi_reduction <add>, %312, %cst_180 [0] : vector<21x128xf32> to vector<128xf32>
    %314 = vector.shape_cast %313 : vector<128xf32> to vector<1x128xf32>
    %c1_181 = arith.constant 1 : index
    %c0_182 = arith.constant 0 : index
    %c0_183 = arith.constant 0 : index
    %315 = vector.load %arg4[%c1_181, %c0_182, %c0_183] : memref<2x21x128xf32, #tpu.memory_space<vmem>>, vector<1x21x128xf32>
    %316 = vector.shape_cast %315 : vector<1x21x128xf32> to vector<21x128xf32>
    %317 = arith.mulf %309, %316 : vector<21x128xf32>
    %cst_184 = arith.constant dense<0.000000e+00> : vector<128xf32>
    %318 = vector.multi_reduction <add>, %317, %cst_184 [0] : vector<21x128xf32> to vector<128xf32>
    %319 = vector.shape_cast %318 : vector<128xf32> to vector<1x128xf32>
    %320 = tpu.concatenate %314, %319 in 0 : vector<1x128xf32>, vector<1x128xf32> -> vector<2x128xf32>
    %c0_185 = arith.constant 0 : index
    %c0_186 = arith.constant 0 : index
    %321 = vector.load %arg5[%c0_185, %c0_186] : memref<128x4xf32, #tpu.memory_space<vmem>>, vector<128x4xf32>
    %cst_187 = arith.constant dense<0.000000e+00> : vector<2x4xf32>
    %322 = tpu.matmul %320, %321, %cst_187 {dimension_numbers = #tpu.dot_dimension_numbers<[1], [0], [0], [1], [0, 0, 1, 1], [], []>, precision = #tpu.contract_precision<fp32>} : vector<2x128xf32>, vector<128x4xf32>, vector<2x4xf32> -> vector<2x4xf32>
    %c0_188 = arith.constant 0 : index
    %c0_189 = arith.constant 0 : index
    %323 = vector.load %arg6[%c0_188, %c0_189] : memref<2x1xf32, #tpu.memory_space<vmem>>, vector<2x1xf32>
    %324 = vector.broadcast %323 : vector<2x1xf32> to vector<2x4xf32>
    %325 = arith.addf %322, %324 : vector<2x4xf32>
    %c0_190 = arith.constant 0 : index
    %c0_191 = arith.constant 0 : index
    %326 = vector.load %arg7[%c0_190, %c0_191] : memref<2x4xf32, #tpu.memory_space<vmem>>, vector<2x4xf32>
    tpu.vector_store %arg7[%c0_190, %c0_191], %325 {strides = array<i32>} : memref<2x4xf32, #tpu.memory_space<vmem>>, vector<2x4xf32>,
    return
  }
}

</mosaic_0001>

<bundles_post_ra>
// kernel: tile.18
= control target key start
LH: loop header
LB: loop body
LE: loop exit
PB: predicated region body
PF: predicated region fallthrough
CT: control target
= control target key end

     0   :  { %s22_s0 = inlined_call_operand.vmem [shape: f32[32], index: 0, kind: input, shape index: {}]   ;;  %s23_s1 = inlined_call_operand.vmem [shape: f32[4,32], index: 1, kind: output, shape index: {}]  }
   0x1   :  { %v4_v0 = vld [vmem:[%s22_s0] ss:$0 sm:$0xff] }
   0x2   :  { %5 = vst [vmem:[%s23_s1] sm:$0xf] %v4_v0 }

// kernel: tile.19
= control target key start
LH: loop header
LB: loop body
LE: loop exit
PB: predicated region body
PF: predicated region fallthrough
CT: control target
= control target key end

     0   :  { %vm7_vm0 = vcmask 261120   ;;  %s37_s8 = smov 32   ;;  %s38_s9 = smov 64   ;;  %vm13_vm1 = vcmask 1048320   ;;  %vm19_vm2 = vcmask 785920   ;;  %vm25_vm3 = vcmask 523520   ;;  %s55_s0 = inlined_call_operand.vmem [shape: f32[4,32], index: 0, kind: input, shape index: {}]   ;;  %s56_s1 = inlined_call_operand.vmem [shape: f32[1,128], index: 1, kind: output, shape index: {}]  }
   0x1   :  { %v4_v0 = vld [vmem:[%s55_s0] sm:$0xf]  ;;  %s36_s0 = smov 96  }
   0x2   :  { %5 = vst [vmem:[#allocation1] sm:$0xf] %v4_v0 }
   0x9   :  { %v10_v1 = vld [vmem:[#allocation1 + $0x3] sm:$0x1]   ;;  %v22_v2 = vld [vmem:[#allocation1 + $0x1] sm:$0x1]   ;;  %v6_v3 = vld [vmem:[#allocation1] sm:$0x1]  }
   0xa   :  { %11 = vrot.lane.b32.xlu0 %v10_v1, %s36_s0  ;;  %23 = vrot.lane.b32.xlu1 %v22_v2, %s37_s8  ;;  %v16_v4 = vld [vmem:[#allocation1 + $0x2] sm:$0x1]   ;;  %8 = vst.msk [vmem:[#allocation0] sm:$0x1] %vm7_vm0, %v6_v3  }
   0xe   :  { %17 = vrot.lane.b32.xlu0 %v16_v4, %s38_s9 }
  0x7c   :  { %v12_v5 = vpop.permute.xlu0 %11   ;;  %v24_v6 = vpop.permute.xlu1 %23  }
  0x7d   :  { %14 = vst.msk [vmem:[#allocation0] sm:$0x1] %vm13_vm1, %v12_v5  }
  0x80   :  { %v18_v7 = vpop.permute.xlu0 %17  }
  0x81   :  { %20 = vst.msk [vmem:[#allocation0] sm:$0x1] %vm19_vm2, %v18_v7  }
  0x82   :  { %26 = vst.msk [vmem:[#allocation0] sm:$0x1] %vm25_vm3, %v24_v6  }
  0x89   :  { %v30_v8 = vld [vmem:[#allocation0] sm:$0x1] }
  0x8a   :  { %32 = vst [vmem:[%s56_s1] sm:$0x1] %v30_v8 }

// kernel: tile.29
= control target key start
LH: loop header
LB: loop body
LE: loop exit
PB: predicated region body
PF: predicated region fallthrough
CT: control target
= control target key end

     0   :  { %vm212_vm0 = vcmask 1047556   ;;  %s855_s26 = smov 3  ;;  %s812_s7 = smov 96   ;;  %vm214_vm1 = vcmask 261120   ;;  %vm296_vm2 = vcmask 1048320   ;;  %vm388_vm3 = vcmask 785920   ;;  %s1133_s0 = inlined_call_operand.vmem [shape: f32[2,21,4,32], index: 0, kind: input, shape index: {}]   ;;  %s1134_s1 = inlined_call_operand.vmem [shape: f32[2,21,128], index: 1, kind: output, shape index: {}]  }
   0x1   :  { %v782_v0 = vld [vmem:[%s1133_s0 + $0x1c] sm:$0xf]  ;;  %v783_v1 = vld [vmem:[%s1133_s0 + $0x18] sm:$0xf]  ;;  %v784_v2 = vld [vmem:[%s1133_s0 + $0x14] sm:$0xf] }
   0x2   :  { %178 = vst [vmem:[#allocation1 + $0x38] sm:$0xf] %v782_v0  ;;  %183 = vst [vmem:[#allocation1 + $0x30] sm:$0xf] %v783_v1  ;;  %v785_v3 = vld [vmem:[%s1133_s0 + $0x10] sm:$0xf] }
   0x3   :  { %188 = vst [vmem:[#allocation1 + $0x28] sm:$0xf] %v784_v2  ;;  %v786_v4 = vld [vmem:[%s1133_s0 + $0xc] sm:$0xf]  ;;  %v787_v5 = vld [vmem:[%s1133_s0 + $0x8] sm:$0xf] }
   0x4   :  { %193 = vst [vmem:[#allocation1 + $0x20] sm:$0xf] %v785_v3  ;;  %198 = vst [vmem:[#allocation1 + $0x18] sm:$0xf] %v786_v4  ;;  %v788_v6 = vld [vmem:[%s1133_s0 + $0x4] sm:$0xf] }
   0x5   :  { %203 = vst [vmem:[#allocation1 + $0x10] sm:$0xf] %v787_v5  ;;  %v208_v7 = vld [vmem:[%s1133_s0] sm:$0xf]  ;;  %207 = vst [vmem:[#allocation1 + $0x8] sm:$0xf] %v788_v6 }
   0x6   :  { %209 = vst [vmem:[#allocation1] sm:$0xf] %v208_v7  ;;  %v748_v8 = vld [vmem:[%s1133_s0 + $0xa4] sm:$0xf]  ;;  %v749_v9 = vld [vmem:[%s1133_s0 + $0xa0] sm:$0xf] }
   0x7   :  { %8 = vst [vmem:[#allocation1 + $0x148] sm:$0xf] %v748_v8  ;;  %13 = vst [vmem:[#allocation1 + $0x140] sm:$0xf] %v749_v9  ;;  %v774_v10 = vld [vmem:[%s1133_s0 + $0x3c] sm:$0xf] }
   0x8   :  { %v775_v11 = vld [vmem:[%s1133_s0 + $0x38] sm:$0xf]  ;;  %v776_v12 = vld [vmem:[%s1133_s0 + $0x34] sm:$0xf]  ;;  %138 = vst [vmem:[#allocation1 + $0x78] sm:$0xf] %v774_v10 }
   0x9   :  { %143 = vst [vmem:[#allocation1 + $0x70] sm:$0xf] %v775_v11  ;;  %148 = vst [vmem:[#allocation1 + $0x68] sm:$0xf] %v776_v12  ;;  %v777_v13 = vld [vmem:[%s1133_s0 + $0x30] sm:$0xf] }
   0xa   :  { %v778_v14 = vld [vmem:[%s1133_s0 + $0x2c] sm:$0xf]  ;;  %v779_v15 = vld [vmem:[%s1133_s0 + $0x28] sm:$0xf]  ;;  %153 = vst [vmem:[#allocation1 + $0x60] sm:$0xf] %v777_v13 }
   0xb   :  { %158 = vst [vmem:[#allocation1 + $0x58] sm:$0xf] %v778_v14  ;;  %163 = vst [vmem:[#allocation1 + $0x50] sm:$0xf] %v779_v15  ;;  %v780_v16 = vld [vmem:[%s1133_s0 + $0x24] sm:$0xf] }
   0xc   :  { %v781_v17 = vld [vmem:[%s1133_s0 + $0x20] sm:$0xf]  ;;  %v766_v18 = vld [vmem:[%s1133_s0 + $0x5c] sm:$0xf]  ;;  %168 = vst [vmem:[#allocation1 + $0x48] sm:$0xf] %v780_v16 }
   0xd   :  { %173 = vst [vmem:[#allocation1 + $0x40] sm:$0xf] %v781_v17  ;;  %98 = vst [vmem:[#allocation1 + $0xb8] sm:$0xf] %v766_v18  ;;  %v767_v19 = vld [vmem:[%s1133_s0 + $0x58] sm:$0xf] }
   0xe   :  { %v768_v20 = vld [vmem:[%s1133_s0 + $0x54] sm:$0xf]  ;;  %v769_v21 = vld [vmem:[%s1133_s0 + $0x50] sm:$0xf]  ;;  %103 = vst [vmem:[#allocation1 + $0xb0] sm:$0xf] %v767_v19 }
   0xf   :  { %108 = vst [vmem:[#allocation1 + $0xa8] sm:$0xf] %v768_v20  ;;  %113 = vst [vmem:[#allocation1 + $0xa0] sm:$0xf] %v769_v21  ;;  %v770_v22 = vld [vmem:[%s1133_s0 + $0x4c] sm:$0xf] }
  0x10   :  { %v771_v23 = vld [vmem:[%s1133_s0 + $0x48] sm:$0xf]  ;;  %v772_v24 = vld [vmem:[%s1133_s0 + $0x44] sm:$0xf]  ;;  %118 = vst [vmem:[#allocation1 + $0x98] sm:$0xf] %v770_v22 }
  0x11   :  { %v291_v25 = vld [vmem:[#allocation1 + $0x3] ss:$8 sm:$0xf0]   ;;  %123 = vst [vmem:[#allocation1 + $0x90] sm:$0xf] %v771_v23  ;;  %s283_s5 = smov 3 }
  0x12   :  { %128 = vst [vmem:[#allocation1 + $0x88] sm:$0xf] %v772_v24  ;;  %v773_v26 = vld [vmem:[%s1133_s0 + $0x40] sm:$0xf]  ;;  %v750_v28 = vld [vmem:[%s1133_s0 + $0x9c] sm:$0xf] }
  0x13   :  { %v289_v27 = vld [vmem:[#allocation1 + $0x3] ss:$8 sm:$0xf]   ;;  %133 = vst [vmem:[#allocation1 + $0x80] sm:$0xf] %v773_v26  ;;  %s465_s6 = smov 3 }
  0x14   :  { %v293_v29 = vsel %vm212_vm0, %v291_v25, %v289_v27  ;;  %v374_v30 = vld [vmem:[#allocation1 + $0x143] ss:$8 sm:%s855_s26]   ;;  %18 = vst [vmem:[#allocation1 + $0x138] sm:$0xf] %v750_v28  ;;  %v752_v32 = vld [vmem:[%s1133_s0 + $0x94] sm:$0xf] }
  0x15   :  { %v751_v31 = vld [vmem:[%s1133_s0 + $0x98] sm:$0xf]  ;;  %294 = vrot.lane.b32.xlu0 %v293_v29, %s812_s7  ;;  %375 = vrot.lane.b32.xlu1 %v374_v30, %s812_s7  ;;  %28 = vst [vmem:[#allocation1 + $0x128] sm:$0xf] %v752_v32  ;;  %v753_v33 = vld [vmem:[%s1133_s0 + $0x90] sm:$0xf] }
  0x16   :  { %23 = vst [vmem:[#allocation1 + $0x130] sm:$0xf] %v751_v31  ;;  %v754_v34 = vld [vmem:[%s1133_s0 + $0x8c] sm:$0xf]  ;;  %33 = vst [vmem:[#allocation1 + $0x120] sm:$0xf] %v753_v33 }
  0x17   :  { %v307_v35 = vld [vmem:[#allocation1 + $0x43] ss:$8 sm:$0xf0]   ;;  %38 = vst [vmem:[#allocation1 + $0x118] sm:$0xf] %v754_v34  ;;  %s557_s8 = smov 3 }
  0x18   :  { %v755_v36 = vld [vmem:[%s1133_s0 + $0x88] sm:$0xf]  ;;  %v756_v38 = vld [vmem:[%s1133_s0 + $0x84] sm:$0xf]  ;;  %v757_v41 = vld [vmem:[%s1133_s0 + $0x80] sm:$0xf] }
  0x19   :  { %v305_v37 = vld [vmem:[#allocation1 + $0x43] ss:$8 sm:$0xf]   ;;  %43 = vst [vmem:[#allocation1 + $0x110] sm:$0xf] %v755_v36  ;;  %vm480_vm4 = vcmask 523520  }
  0x1a   :  { %v309_v39 = vsel %vm212_vm0, %v307_v35, %v305_v37  ;;  %v324_v40 = vld [vmem:[#allocation1 + $0x83] ss:$8 sm:$0xf0]   ;;  %48 = vst [vmem:[#allocation1 + $0x108] sm:$0xf] %v756_v38 }
  0x1b   :  { %310 = vrot.lane.b32.xlu0 %v309_v39, %s812_s7  ;;  %53 = vst [vmem:[#allocation1 + $0x100] sm:$0xf] %v757_v41  ;;  %v758_v42 = vld [vmem:[%s1133_s0 + $0x7c] sm:$0xf]  ;;  %v759_v43 = vld [vmem:[%s1133_s0 + $0x78] sm:$0xf] }
  0x1c   :  { %v760_v44 = vld [vmem:[%s1133_s0 + $0x74] sm:$0xf]  ;;  %v322_v45 = vld [vmem:[#allocation1 + $0x83] ss:$8 sm:$0xf]  }
  0x1d   :  { %58 = vst [vmem:[#allocation1 + $0xf8] sm:$0xf] %v758_v42  ;;  %63 = vst [vmem:[#allocation1 + $0xf0] sm:$0xf] %v759_v43  ;;  %v761_v46 = vld [vmem:[%s1133_s0 + $0x70] sm:$0xf]  ;;  %v326_v47 = vsel %vm212_vm0, %v324_v40, %v322_v45 }
  0x1e   :  { %68 = vst [vmem:[#allocation1 + $0xe8] sm:$0xf] %v760_v44  ;;  %73 = vst [vmem:[#allocation1 + $0xe0] sm:$0xf] %v761_v46  ;;  %v762_v48 = vld [vmem:[%s1133_s0 + $0x6c] sm:$0xf]  ;;  %327 = vrot.lane.b32.xlu1 %v326_v47, %s812_s7 }
  0x1f   :  { %v763_v49 = vld [vmem:[%s1133_s0 + $0x68] sm:$0xf]  ;;  %v764_v50 = vld [vmem:[%s1133_s0 + $0x64] sm:$0xf]  ;;  %78 = vst [vmem:[#allocation1 + $0xd8] sm:$0xf] %v762_v48 }
  0x20   :  { %83 = vst [vmem:[#allocation1 + $0xd0] sm:$0xf] %v763_v49  ;;  %88 = vst [vmem:[#allocation1 + $0xc8] sm:$0xf] %v764_v50  ;;  %v765_v51 = vld [vmem:[%s1133_s0 + $0x60] sm:$0xf] }
  0x21   :  { %93 = vst [vmem:[#allocation1 + $0xc0] sm:$0xf] %v765_v51  ;;  %v358_v52 = vld [vmem:[#allocation1 + $0x103] ss:$8 sm:$0xf0]   ;;  %s813_s0 = smov 64  }
  0x22   :  { %v381_v53 = vld [vmem:[#allocation1 + $0x2] ss:$8 sm:$0xf]   ;;  %v356_v54 = vld [vmem:[#allocation1 + $0x103] ss:$8 sm:$0xf]  }
  0x23   :  { %v383_v55 = vld [vmem:[#allocation1 + $0x2] ss:$8 sm:$0xf0]   ;;  %v360_v56 = vsel %vm212_vm0, %v358_v52, %v356_v54  ;;  %v210_v7 = vld [vmem:[#allocation1] ss:$8 sm:$0xf]  }
  0x24   :  { %361 = vrot.lane.b32.xlu0 %v360_v56, %s812_s7  ;;  %v397_v58 = vld [vmem:[#allocation1 + $0x42] ss:$8 sm:$0xf]   ;;  %v385_v59 = vsel %vm212_vm0, %v383_v55, %v381_v53  ;;  %v473_v8 = vld [vmem:[#allocation1 + $0x1] ss:$8 sm:$0xf]  }
  0x25   :  { %v341_v57 = vld [vmem:[#allocation1 + $0xc3] ss:$8 sm:$0xf0]   ;;  %v399_v60 = vld [vmem:[#allocation1 + $0x42] ss:$8 sm:$0xf0]  }
  0x26   :  { %v414_v61 = vld [vmem:[#allocation1 + $0x82] ss:$8 sm:$0xf]   ;;  %v401_v1 = vsel %vm212_vm0, %v399_v60, %v397_v58  ;;  %v475_v9 = vld [vmem:[#allocation1 + $0x1] ss:$8 sm:$0xf0]  }
  0x27   :  { %v416_v63 = vld [vmem:[#allocation1 + $0x82] ss:$8 sm:$0xf0]   ;;  %v211_v10 = vld [vmem:[#allocation1] ss:$8 sm:$0xf0]   ;;  %v477_v27 = vsel %vm212_vm0, %v475_v9, %v473_v8 }
  0x28   :  { %v339_v62 = vld [vmem:[#allocation1 + $0xc3] ss:$8 sm:$0xf]   ;;  %386 = vrot.lane.b32.xlu0 %v385_v59, %s813_s0  ;;  %v418_v2 = vsel %vm212_vm0, %v416_v63, %v414_v61  ;;  %v448_v3 = vld [vmem:[#allocation1 + $0x102] ss:$8 sm:$0xf]   ;;  %v213_v14 = vsel %vm212_vm0, %v211_v10, %v210_v7 }
  0x29   :  { %v343_v0 = vsel %vm212_vm0, %v341_v57, %v339_v62  ;;  %v450_v4 = vld [vmem:[#allocation1 + $0x102] ss:$8 sm:$0xf0]   ;;  %v284_v11 = vld [vmem:[#allocation1 + $0x140] ss:$8 sm:%s283_s5]  }
  0x2a   :  { %344 = vrot.lane.b32.xlu1 %v343_v0, %s812_s7  ;;  %v431_v5 = vld [vmem:[#allocation1 + $0xc2] ss:$8 sm:$0xf]   ;;  %v452_v13 = vsel %vm212_vm0, %v450_v4, %v448_v3  ;;  %287 = vst.msk [vmem:[#allocation0 + $0xa0] sm:$0x3] %vm214_vm1, %v284_v11   ;;  %s814_s7 = smov 32  }
  0x2b   :  { %v433_v6 = vld [vmem:[#allocation1 + $0xc2] ss:$8 sm:$0xf0]   ;;  %v223_v15 = vld [vmem:[#allocation1 + $0x40] ss:$8 sm:$0xf]  }
  0x2c   :  { %419 = vrot.lane.b32.xlu0 %v418_v2, %s813_s0  ;;  %v435_v12 = vsel %vm212_vm0, %v433_v6, %v431_v5  ;;  %v225_v16 = vld [vmem:[#allocation1 + $0x40] ss:$8 sm:$0xf0]   ;;  %215 = vst.msk [vmem:[#allocation0] sm:$0x3] %vm214_vm1, %v213_v14  }
  0x2d   :  { %217 = vst.msk [vmem:[#allocation0 + $0x6] sm:$0xc] %vm214_vm1, %v213_v14   ;;  %219 = vst.msk [vmem:[#allocation0 + $0xc] sm:$0x30] %vm214_vm1, %v213_v14   ;;  %v227_v17 = vsel %vm212_vm0, %v225_v16, %v223_v15  ;;  %v466_v20 = vld [vmem:[#allocation1 + $0x142] ss:$8 sm:%s465_s6]  }
  0x2e   :  { %402 = vrot.lane.b32.xlu1 %v401_v1, %s813_s0  ;;  %221 = vst.msk [vmem:[#allocation0 + $0x12] sm:$0xc0] %vm214_vm1, %v213_v14   ;;  %v238_v18 = vld [vmem:[#allocation1 + $0x80] ss:$8 sm:$0xf]  }
  0x2f   :  { %v240_v19 = vld [vmem:[#allocation1 + $0x80] ss:$8 sm:$0xf0]   ;;  %230 = vst.msk [vmem:[#allocation0 + $0x20] sm:$0x3] %vm214_vm1, %v227_v17  }
  0x30   :  { %232 = vst.msk [vmem:[#allocation0 + $0x26] sm:$0xc] %vm214_vm1, %v227_v17   ;;  %234 = vst.msk [vmem:[#allocation0 + $0x2c] sm:$0x30] %vm214_vm1, %v227_v17   ;;  %v242_v21 = vsel %vm212_vm0, %v240_v19, %v238_v18  ;;  %453 = vrot.lane.b32.xlu0 %v452_v13, %s813_s0  ;;  %v558_v41 = vld [vmem:[#allocation1 + $0x141] ss:$8 sm:%s557_s8]  }
  0x31   :  { %236 = vst.msk [vmem:[#allocation0 + $0x32] sm:$0xc0] %vm214_vm1, %v227_v17   ;;  %v268_v22 = vld [vmem:[#allocation1 + $0x100] ss:$8 sm:$0xf]  }
  0x32   :  { %v270_v23 = vld [vmem:[#allocation1 + $0x100] ss:$8 sm:$0xf0]   ;;  %436 = vrot.lane.b32.xlu1 %v435_v12, %s813_s0  ;;  %245 = vst.msk [vmem:[#allocation0 + $0x40] sm:$0x3] %vm214_vm1, %v242_v21  }
  0x33   :  { %247 = vst.msk [vmem:[#allocation0 + $0x46] sm:$0xc] %vm214_vm1, %v242_v21   ;;  %249 = vst.msk [vmem:[#allocation0 + $0x4c] sm:$0x30] %vm214_vm1, %v242_v21   ;;  %v272_v24 = vsel %vm212_vm0, %v270_v23, %v268_v22 }
  0x34   :  { %251 = vst.msk [vmem:[#allocation0 + $0x52] sm:$0xc0] %vm214_vm1, %v242_v21   ;;  %v253_v25 = vld [vmem:[#allocation1 + $0xc0] ss:$8 sm:$0xf]   ;;  %478 = vrot.lane.b32.xlu0 %v477_v27, %s814_s7 }
  0x35   :  { %v255_v26 = vld [vmem:[#allocation1 + $0xc0] ss:$8 sm:$0xf0]   ;;  %v489_v28 = vld [vmem:[#allocation1 + $0x41] ss:$8 sm:$0xf]  }
  0x36   :  { %v491_v29 = vld [vmem:[#allocation1 + $0x41] ss:$8 sm:$0xf0]   ;;  %275 = vst.msk [vmem:[#allocation0 + $0x80] sm:$0x3] %vm214_vm1, %v272_v24   ;;  %v257_v30 = vsel %vm212_vm0, %v255_v26, %v253_v25  ;;  %467 = vrot.lane.b32.xlu1 %v466_v20, %s813_s0 }
  0x37   :  { %277 = vst.msk [vmem:[#allocation0 + $0x86] sm:$0xc] %vm214_vm1, %v272_v24   ;;  %279 = vst.msk [vmem:[#allocation0 + $0x8c] sm:$0x30] %vm214_vm1, %v272_v24   ;;  %v493_v33 = vsel %vm212_vm0, %v491_v29, %v489_v28 }
  0x38   :  { %281 = vst.msk [vmem:[#allocation0 + $0x92] sm:$0xc0] %vm214_vm1, %v272_v24   ;;  %v506_v31 = vld [vmem:[#allocation1 + $0x81] ss:$8 sm:$0xf]  }
  0x39   :  { %v508_v32 = vld [vmem:[#allocation1 + $0x81] ss:$8 sm:$0xf0]   ;;  %260 = vst.msk [vmem:[#allocation0 + $0x60] sm:$0x3] %vm214_vm1, %v257_v30  }
  0x3a   :  { %262 = vst.msk [vmem:[#allocation0 + $0x66] sm:$0xc] %vm214_vm1, %v257_v30   ;;  %264 = vst.msk [vmem:[#allocation0 + $0x6c] sm:$0x30] %vm214_vm1, %v257_v30   ;;  %v510_v34 = vsel %vm212_vm0, %v508_v32, %v506_v31  ;;  %494 = vrot.lane.b32.xlu1 %v493_v33, %s814_s7 }
  0x3b   :  { %266 = vst.msk [vmem:[#allocation0 + $0x72] sm:$0xc0] %vm214_vm1, %v257_v30   ;;  %v523_v35 = vld [vmem:[#allocation1 + $0xc1] ss:$8 sm:$0xf]   ;;  %511 = vrot.lane.b32.xlu0 %v510_v34, %s814_s7 }
  0x3c   :  { %v525_v36 = vld [vmem:[#allocation1 + $0xc1] ss:$8 sm:$0xf0]  }
  0x3d   :  { %v540_v37 = vld [vmem:[#allocation1 + $0x101] ss:$8 sm:$0xf]   ;;  %v527_v39 = vsel %vm212_vm0, %v525_v36, %v523_v35 }
  0x3e   :  { %v542_v38 = vld [vmem:[#allocation1 + $0x101] ss:$8 sm:$0xf0]   ;;  %528 = vrot.lane.b32.xlu1 %v527_v39, %s814_s7 }
  0x3f   :  { %v544_v40 = vsel %vm212_vm0, %v542_v38, %v540_v37 }
  0x40   :  { %545 = vrot.lane.b32.xlu0 %v544_v40, %s814_s7 }
  0x42   :  { %559 = vrot.lane.b32.xlu1 %v558_v41, %s814_s7 }
  0x87   :  { %v295_v42 = vpop.permute.xlu0 %294   ;;  %v376_v43 = vpop.permute.xlu1 %375  }
  0x88   :  { %297 = vst.msk [vmem:[#allocation0] sm:$0x3] %vm296_vm2, %v295_v42   ;;  %299 = vst.msk [vmem:[#allocation0 + $0x6] sm:$0xc] %vm296_vm2, %v295_v42  }
  0x89   :  { %301 = vst.msk [vmem:[#allocation0 + $0xc] sm:$0x30] %vm296_vm2, %v295_v42   ;;  %303 = vst.msk [vmem:[#allocation0 + $0x12] sm:$0xc0] %vm296_vm2, %v295_v42  }
  0x8a   :  { %379 = vst.msk [vmem:[#allocation0 + $0xa0] sm:$0x3] %vm296_vm2, %v376_v43  }
  0x8d   :  { %v311_v44 = vpop.permute.xlu0 %310  }
  0x8e   :  { %314 = vst.msk [vmem:[#allocation0 + $0x20] sm:$0x3] %vm296_vm2, %v311_v44   ;;  %316 = vst.msk [vmem:[#allocation0 + $0x26] sm:$0xc] %vm296_vm2, %v311_v44  }
  0x8f   :  { %318 = vst.msk [vmem:[#allocation0 + $0x2c] sm:$0x30] %vm296_vm2, %v311_v44   ;;  %320 = vst.msk [vmem:[#allocation0 + $0x32] sm:$0xc0] %vm296_vm2, %v311_v44  }
  0x90   :  { %v328_v45 = vpop.permute.xlu1 %327  }
  0x91   :  { %331 = vst.msk [vmem:[#allocation0 + $0x40] sm:$0x3] %vm296_vm2, %v328_v45   ;;  %333 = vst.msk [vmem:[#allocation0 + $0x46] sm:$0xc] %vm296_vm2, %v328_v45  }
  0x92   :  { %335 = vst.msk [vmem:[#allocation0 + $0x4c] sm:$0x30] %vm296_vm2, %v328_v45   ;;  %337 = vst.msk [vmem:[#allocation0 + $0x52] sm:$0xc0] %vm296_vm2, %v328_v45  }
  0x96   :  { %v362_v46 = vpop.permute.xlu0 %361  }
  0x97   :  { %365 = vst.msk [vmem:[#allocation0 + $0x80] sm:$0x3] %vm296_vm2, %v362_v46   ;;  %367 = vst.msk [vmem:[#allocation0 + $0x86] sm:$0xc] %vm296_vm2, %v362_v46  }
  0x98   :  { %369 = vst.msk [vmem:[#allocation0 + $0x8c] sm:$0x30] %vm296_vm2, %v362_v46   ;;  %371 = vst.msk [vmem:[#allocation0 + $0x92] sm:$0xc0] %vm296_vm2, %v362_v46  }
  0x9a   :  { %v387_v48 = vpop.permute.xlu0 %386  }
  0x9b   :  { %389 = vst.msk [vmem:[#allocation0] sm:$0x3] %vm388_vm3, %v387_v48   ;;  %391 = vst.msk [vmem:[#allocation0 + $0x6] sm:$0xc] %vm388_vm3, %v387_v48  }
  0x9c   :  { %v345_v47 = vpop.permute.xlu1 %344   ;;  %393 = vst.msk [vmem:[#allocation0 + $0xc] sm:$0x30] %vm388_vm3, %v387_v48   ;;  %395 = vst.msk [vmem:[#allocation0 + $0x12] sm:$0xc0] %vm388_vm3, %v387_v48  }
  0x9d   :  { %348 = vst.msk [vmem:[#allocation0 + $0x60] sm:$0x3] %vm296_vm2, %v345_v47   ;;  %350 = vst.msk [vmem:[#allocation0 + $0x66] sm:$0xc] %vm296_vm2, %v345_v47  }
  0x9e   :  { %352 = vst.msk [vmem:[#allocation0 + $0x6c] sm:$0x30] %vm296_vm2, %v345_v47   ;;  %354 = vst.msk [vmem:[#allocation0 + $0x72] sm:$0xc0] %vm296_vm2, %v345_v47   ;;  %v420_v50 = vpop.permute.xlu0 %419  }
  0x9f   :  { %423 = vst.msk [vmem:[#allocation0 + $0x40] sm:$0x3] %vm388_vm3, %v420_v50   ;;  %425 = vst.msk [vmem:[#allocation0 + $0x46] sm:$0xc] %vm388_vm3, %v420_v50  }
  0xa0   :  { %v403_v49 = vpop.permute.xlu1 %402   ;;  %427 = vst.msk [vmem:[#allocation0 + $0x4c] sm:$0x30] %vm388_vm3, %v420_v50   ;;  %429 = vst.msk [vmem:[#allocation0 + $0x52] sm:$0xc0] %vm388_vm3, %v420_v50  }
  0xa1   :  { %406 = vst.msk [vmem:[#allocation0 + $0x20] sm:$0x3] %vm388_vm3, %v403_v49   ;;  %408 = vst.msk [vmem:[#allocation0 + $0x26] sm:$0xc] %vm388_vm3, %v403_v49  }
  0xa2   :  { %410 = vst.msk [vmem:[#allocation0 + $0x2c] sm:$0x30] %vm388_vm3, %v403_v49   ;;  %412 = vst.msk [vmem:[#allocation0 + $0x32] sm:$0xc0] %vm388_vm3, %v403_v49   ;;  %v454_v52 = vpop.permute.xlu0 %453  }
  0xa3   :  { %457 = vst.msk [vmem:[#allocation0 + $0x80] sm:$0x3] %vm388_vm3, %v454_v52   ;;  %459 = vst.msk [vmem:[#allocation0 + $0x86] sm:$0xc] %vm388_vm3, %v454_v52  }
  0xa4   :  { %v437_v51 = vpop.permute.xlu1 %436   ;;  %461 = vst.msk [vmem:[#allocation0 + $0x8c] sm:$0x30] %vm388_vm3, %v454_v52   ;;  %463 = vst.msk [vmem:[#allocation0 + $0x92] sm:$0xc0] %vm388_vm3, %v454_v52  }
  0xa5   :  { %440 = vst.msk [vmem:[#allocation0 + $0x60] sm:$0x3] %vm388_vm3, %v437_v51   ;;  %442 = vst.msk [vmem:[#allocation0 + $0x66] sm:$0xc] %vm388_vm3, %v437_v51  }
  0xa6   :  { %444 = vst.msk [vmem:[#allocation0 + $0x6c] sm:$0x30] %vm388_vm3, %v437_v51   ;;  %446 = vst.msk [vmem:[#allocation0 + $0x72] sm:$0xc0] %vm388_vm3, %v437_v51   ;;  %v479_v54 = vpop.permute.xlu0 %478  }
  0xa7   :  { %481 = vst.msk [vmem:[#allocation0] sm:$0x3] %vm480_vm4, %v479_v54   ;;  %483 = vst.msk [vmem:[#allocation0 + $0x6] sm:$0xc] %vm480_vm4, %v479_v54  }
  0xa8   :  { %v468_v53 = vpop.permute.xlu1 %467   ;;  %485 = vst.msk [vmem:[#allocation0 + $0xc] sm:$0x30] %vm480_vm4, %v479_v54   ;;  %487 = vst.msk [vmem:[#allocation0 + $0x12] sm:$0xc0] %vm480_vm4, %v479_v54  }
  0xa9   :  { %471 = vst.msk [vmem:[#allocation0 + $0xa0] sm:$0x3] %vm388_vm3, %v468_v53  }
  0xac   :  { %v495_v55 = vpop.permute.xlu1 %494  }
  0xad   :  { %v512_v56 = vpop.permute.xlu0 %511   ;;  %498 = vst.msk [vmem:[#allocation0 + $0x20] sm:$0x3] %vm480_vm4, %v495_v55   ;;  %500 = vst.msk [vmem:[#allocation0 + $0x26] sm:$0xc] %vm480_vm4, %v495_v55  }
  0xae   :  { %502 = vst.msk [vmem:[#allocation0 + $0x2c] sm:$0x30] %vm480_vm4, %v495_v55   ;;  %504 = vst.msk [vmem:[#allocation0 + $0x32] sm:$0xc0] %vm480_vm4, %v495_v55   ;;  %v567_v57 = vld [vmem:[#allocation0] sm:$0x3] }
  0xaf   :  { %515 = vst.msk [vmem:[#allocation0 + $0x40] sm:$0x3] %vm480_vm4, %v512_v56   ;;  %517 = vst.msk [vmem:[#allocation0 + $0x46] sm:$0xc] %vm480_vm4, %v512_v56   ;;  %v571_v58 = vld [vmem:[#allocation0 + $0x8] sm:$0x3] }
  0xb0   :  { %519 = vst.msk [vmem:[#allocation0 + $0x4c] sm:$0x30] %vm480_vm4, %v512_v56   ;;  %521 = vst.msk [vmem:[#allocation0 + $0x52] sm:$0xc0] %vm480_vm4, %v512_v56   ;;  %v576_v59 = vld [vmem:[#allocation0 + $0x10] sm:$0x3]  ;;  %v529_v60 = vpop.permute.xlu1 %528  }
  0xb1   :  { %569 = vst [vmem:[%s1134_s1] sm:$0x3] %v567_v57  ;;  %789 = vst [vmem:[%s1134_s1 + $0x2] sm:$0x3] %v571_v58  ;;  %v582_v62 = vld [vmem:[#allocation0 + $0x18] sm:$0x3] }
  0xb2   :  { %v546_v61 = vpop.permute.xlu0 %545   ;;  %790 = vst [vmem:[%s1134_s1 + $0x4] sm:$0x3] %v576_v59  ;;  %532 = vst.msk [vmem:[#allocation0 + $0x60] sm:$0x3] %vm480_vm4, %v529_v60  }
  0xb3   :  { %534 = vst.msk [vmem:[#allocation0 + $0x66] sm:$0xc] %vm480_vm4, %v529_v60   ;;  %536 = vst.msk [vmem:[#allocation0 + $0x6c] sm:$0x30] %vm480_vm4, %v529_v60  }
  0xb4   :  { %538 = vst.msk [vmem:[#allocation0 + $0x72] sm:$0xc0] %vm480_vm4, %v529_v60   ;;  %549 = vst.msk [vmem:[#allocation0 + $0x80] sm:$0x3] %vm480_vm4, %v546_v61   ;;  %v588_v63 = vld [vmem:[#allocation0 + $0x20] sm:$0x3]  ;;  %v560_v2 = vpop.permute.xlu1 %559  }
  0xb5   :  { %551 = vst.msk [vmem:[#allocation0 + $0x86] sm:$0xc] %vm480_vm4, %v546_v61   ;;  %553 = vst.msk [vmem:[#allocation0 + $0x8c] sm:$0x30] %vm480_vm4, %v546_v61   ;;  %v594_v0 = vld [vmem:[#allocation0 + $0x28] sm:$0x3] }
  0xb6   :  { %555 = vst.msk [vmem:[#allocation0 + $0x92] sm:$0xc0] %vm480_vm4, %v546_v61   ;;  %791 = vst [vmem:[%s1134_s1 + $0x6] sm:$0x3] %v582_v62  ;;  %v600_v1 = vld [vmem:[#allocation0 + $0x30] sm:$0x3] }
  0xb7   :  { %792 = vst [vmem:[%s1134_s1 + $0x8] sm:$0x3] %v588_v63  ;;  %793 = vst [vmem:[%s1134_s1 + $0xa] sm:$0x3] %v594_v0  ;;  %v606_v3 = vld [vmem:[#allocation0 + $0x38] sm:$0x3] }
  0xb8   :  { %794 = vst [vmem:[%s1134_s1 + $0xc] sm:$0x3] %v600_v1  ;;  %v612_v4 = vld [vmem:[#allocation0 + $0x40] sm:$0x3]  ;;  %v618_v5 = vld [vmem:[#allocation0 + $0x48] sm:$0x3] }
  0xb9   :  { %563 = vst.msk [vmem:[#allocation0 + $0xa0] sm:$0x3] %vm480_vm4, %v560_v2   ;;  %795 = vst [vmem:[%s1134_s1 + $0xe] sm:$0x3] %v606_v3  ;;  %v624_v6 = vld [vmem:[#allocation0 + $0x50] sm:$0x3] }
  0xba   :  { %796 = vst [vmem:[%s1134_s1 + $0x10] sm:$0x3] %v612_v4  ;;  %797 = vst [vmem:[%s1134_s1 + $0x12] sm:$0x3] %v618_v5  ;;  %v630_v7 = vld [vmem:[#allocation0 + $0x58] sm:$0x3] }
  0xbb   :  { %798 = vst [vmem:[%s1134_s1 + $0x14] sm:$0x3] %v624_v6  ;;  %799 = vst [vmem:[%s1134_s1 + $0x16] sm:$0x3] %v630_v7  ;;  %v636_v8 = vld [vmem:[#allocation0 + $0x60] sm:$0x3] }
  0xbc   :  { %v642_v9 = vld [vmem:[#allocation0 + $0x68] sm:$0x3]  ;;  %v648_v10 = vld [vmem:[#allocation0 + $0x70] sm:$0x3]  ;;  %800 = vst [vmem:[%s1134_s1 + $0x18] sm:$0x3] %v636_v8 }
  0xbd   :  { %801 = vst [vmem:[%s1134_s1 + $0x1a] sm:$0x3] %v642_v9  ;;  %802 = vst [vmem:[%s1134_s1 + $0x1c] sm:$0x3] %v648_v10  ;;  %v654_v11 = vld [vmem:[#allocation0 + $0x78] sm:$0x3] }
  0xbe   :  { %v660_v12 = vld [vmem:[#allocation0 + $0x80] sm:$0x3]  ;;  %v666_v13 = vld [vmem:[#allocation0 + $0x88] sm:$0x3]  ;;  %803 = vst [vmem:[%s1134_s1 + $0x1e] sm:$0x3] %v654_v11 }
  0xbf   :  { %804 = vst [vmem:[%s1134_s1 + $0x20] sm:$0x3] %v660_v12  ;;  %805 = vst [vmem:[%s1134_s1 + $0x22] sm:$0x3] %v666_v13  ;;  %v672_v14 = vld [vmem:[#allocation0 + $0x90] sm:$0x3] }
  0xc0   :  { %v678_v15 = vld [vmem:[#allocation0 + $0x98] sm:$0x3]  ;;  %806 = vst [vmem:[%s1134_s1 + $0x24] sm:$0x3] %v672_v14  ;;  %v684_v16 = vld [vmem:[#allocation0 + $0xa0] sm:$0x3] }
  0xc1   :  { %807 = vst [vmem:[%s1134_s1 + $0x26] sm:$0x3] %v678_v15  ;;  %808 = vst [vmem:[%s1134_s1 + $0x28] sm:$0x3] %v684_v16 }

// kernel: simple_net_forward.1
= control target key start
LH: loop header
LB: loop body
LE: loop exit
PB: predicated region body
PF: predicated region fallthrough
CT: control target
= control target key end

     0   :  { %vm70_vm0 = vcmask 261120   ;;  %s7251_s0 = inlined_call_operand.vmem [shape: f32[251,32], index: 0, kind: input, shape index: {}]   ;;  %s7252_s1 = inlined_call_operand.vmem [shape: f32[32,128], index: 1, kind: input, shape index: {}]   ;;  %s7253_s2 = inlined_call_operand.vmem [shape: f32[1,128], index: 2, kind: input, shape index: {}]   ;;  %s7254_s3 = inlined_call_operand.vmem [shape: f32[50,128], index: 3, kind: input, shape index: {}]   ;;  %s7255_s4 = inlined_call_operand.vmem [shape: f32[2,21,128], index: 4, kind: input, shape index: {}]   ;;  %s7256_s5 = inlined_call_operand.vmem [shape: f32[128,4], index: 5, kind: input, shape index: {}]   ;;  %s7257_s6 = inlined_call_operand.vmem [shape: f32[2,1], index: 6, kind: input, shape index: {}]   ;;  %s7258_s7 = inlined_call_operand.hbm [shape: f32[2,4], index: 7, kind: output, shape index: {}]  }
   0x1   :  { %v59_v0 = vld [vmem:[%s7252_s1] sm:$0xff]  ;;  %v60_v1 = vld [vmem:[%s7252_s1 + $0x8] sm:$0xff]  ;;  %v61_v2 = vld [vmem:[%s7252_s1 + $0x10] sm:$0xff] }
   0x2   :  { %v168_v3 = vand.u32 4294901760, %v59_v0  ;;  %v171_v4 = vand.u32 4294901760, %v60_v1  ;;  %v62_v5 = vld [vmem:[%s7252_s1 + $0x18] sm:$0xff]  ;;  %v174_v6 = vand.u32 4294901760, %v61_v2  ;;  %v27_v7 = vld [vmem:[%s7251_s0] sm:$0xff]  ;;  %v28_v28 = vld [vmem:[%s7251_s0 + $0x8] sm:$0xff] }
   0x3   :  { %v177_v8 = vand.u32 4294901760, %v62_v5  ;;  %v5282_v9 = vsel %vm70_vm0, %v27_v7, 0  ;;  %v29_v30 = vld [vmem:[%s7251_s0 + $0x10] sm:$0xff] }
   0x4   :  { %v5284_v10 = vsub.f32 %v59_v0, %v168_v3  ;;  %v5286_v11 = vsub.f32 %v60_v1, %v171_v4  ;;  %v5288_v12 = vsub.f32 %v61_v2, %v174_v6  ;;  %v5291_v13 = vand.u32 4294901760, %v5282_v9 }
   0x5   :  { %v5293_v14 = vsub.f32 %v62_v5, %v177_v8 }
   0x6   :  { %7329 = vst [vmem:[#allocation6_spill] sm:$0xff] %v5291_v13  ;;  %v559_v15 = vand.u32 4294901760, %v5284_v10  ;;  %v566_v16 = vand.u32 4294901760, %v5286_v11  ;;  %v573_v17 = vand.u32 4294901760, %v5288_v12  ;;  %4296 = vmatprep.mubr.f32.mxu0 %v5291_v13 }
   0x7   :  { %v580_v18 = vand.u32 4294901760, %v5293_v14 }
   0x8   :  { %v560_v19 = vsub.f32 %v5284_v10, %v559_v15  ;;  %v567_v20 = vsub.f32 %v5286_v11, %v566_v16  ;;  %v574_v21 = vsub.f32 %v5288_v12, %v573_v17 }
   0x9   :  { %v581_v22 = vsub.f32 %v5293_v14, %v580_v18 }
   0xa   :  { %v561_v23 = vand.u32 4294901760, %v560_v19  ;;  %v568_v24 = vand.u32 4294901760, %v567_v20  ;;  %v575_v25 = vand.u32 4294901760, %v574_v21 }
   0xb   :  { %v582_v26 = vand.u32 4294901760, %v581_v22 }
   0xc   :  { %v5312_v27 = vpack.c.bf16 %v568_v24, %v561_v23 }
   0xd   :  { %v5317_v29 = vpack.c.bf16 %v582_v26, %v575_v25 }
   0xe   :  { %12 = vsyncpa [#allocation4], 0  ;;  %4787 = vmatprep.subr.bf16.mxu0 %v5312_v27  ;;  %v5323_v31 = vpack.c.bf16 %v171_v4, %v168_v3  ;;  %v75_v32 = vsel %vm70_vm0, %v28_v28, 0  ;;  %v4794_v33 = vpack.c.bf16 %v5286_v11, %v5284_v10  ;;  %v78_v34 = vsel %vm70_vm0, %v29_v30, 0  ;;  %v30_v35 = vld [vmem:[%s7251_s0 + $0x18] sm:$0xff]  ;;  %v31_v36 = vld [vmem:[%s7251_s0 + $0x20] sm:$0xff] }
   0xf   :  { %4789 = vmatpush3.bf16.msra.mxu0 %v5312_v27  ;;  %v5339_v37 = vand.u32 4294901760, %v75_v32  ;;  %v5342_v38 = vand.u32 4294901760, %v78_v34  ;;  %v81_v39 = vsel %vm70_vm0, %v30_v35, 0  ;;  %v84_v40 = vsel %vm70_vm0, %v31_v36, 0  ;;  %v32_v41 = vld [vmem:[%s7251_s0 + $0x28] sm:$0xff]  ;;  %v33_v43 = vld [vmem:[%s7251_s0 + $0x30] sm:$0xff] }
  0x10   :  { %4791 = vmatprep.subr.bf16.mxu0 %v5317_v29  ;;  %4779 = vmatprep.subr.bf16.mxu1 %v5323_v31  ;;  %v4798_v42 = vpack.c.bf16 %v5293_v14, %v5288_v12  ;;  %v5355_v44 = vand.u32 4294901760, %v81_v39  ;;  %v5357_v45 = vpack.c.bf16 %v177_v8, %v174_v6  ;;  %v5360_v46 = vand.u32 4294901760, %v84_v40  ;;  %v34_v49 = vld [vmem:[%s7251_s0 + $0x38] sm:$0xff]  ;;  %v35_v50 = vld [vmem:[%s7251_s0 + $0x40] sm:$0xff]  ;;  %v36_v55 = vld [vmem:[%s7251_s0 + $0x48] sm:$0xff]  ;;  %s5219_s25 = smov 32  }
  0x11   :  { %4781 = vmatpush3.bf16.msra.mxu1 %v5323_v31  ;;  %7330 = vst [vmem:[#allocation7_spill] sm:$0xff] %v5339_v37  ;;  %7331 = vst [vmem:[#allocation8_spill] sm:$0xff] %v5342_v38  ;;  %v87_v47 = vsel %vm70_vm0, %v32_v41, 0  ;;  %v90_v48 = vsel %vm70_vm0, %v33_v43, 0  ;;  %v93_v53 = vsel %vm70_vm0, %v34_v49, 0  ;;  %v96_v54 = vsel %vm70_vm0, %v35_v50, 0 }
  0x12   :  { %7332 = vst [vmem:[#allocation9_spill] sm:$0xff] %v5355_v44  ;;  %7333 = vst [vmem:[#allocation10_spill] sm:$0xff] %v5357_v45  ;;  %4783 = vmatprep.subr.bf16.mxu1 %v5357_v45  ;;  %v5373_v51 = vand.u32 4294901760, %v87_v47  ;;  %v5377_v52 = vand.u32 4294901760, %v90_v48  ;;  %v5386_v56 = vand.u32 4294901760, %v93_v53  ;;  %v5389_v57 = vand.u32 4294901760, %v96_v54 }
  0x13   :  { %4793 = vmatpush3.bf16.msra.mxu0 %v5317_v29  ;;  %7334 = vst [vmem:[#allocation11_spill] sm:$0xff] %v5360_v46  ;;  %v99_v58 = vsel %vm70_vm0, %v36_v55, 0  ;;  %v5393_v59 = vsub.f32 %v75_v32, %v5339_v37  ;;  %v5400_v61 = vsub.f32 %v5282_v9, %v5291_v13  ;;  %v5404_v62 = vsub.f32 %v78_v34, %v5342_v38  ;;  %v37_v8 = vld [vmem:[%s7251_s0 + $0x50] sm:$0xff]  ;;  %v38_v24 = vld [vmem:[%s7251_s0 + $0x58] sm:$0xff]  ;;  %v39_v28 = vld [vmem:[%s7251_s0 + $0x60] sm:$0xff]  ;;  %s5220_s26 = smov 64  }
  0x14   :  { %4795 = vmatprep.subr.bf16.mxu0 %v4794_v33  ;;  %7335 = vst [vmem:[#allocation12_spill] sm:$0xff] %v5373_v51  ;;  %7336 = vst [vmem:[#allocation13_spill] sm:$0xff] %v5377_v52  ;;  %v5396_v60 = vand.u32 4294901760, %v99_v58  ;;  %v5407_v63 = vsub.f32 %v81_v39, %v5355_v44  ;;  %v5412_v2 = vsub.f32 %v84_v40, %v5360_v46  ;;  %v102_v23 = vsel %vm70_vm0, %v37_v8, 0  ;;  %v40_v40 = vld [vmem:[%s7251_s0 + $0x68] sm:$0xff]  ;;  %v43_v55 = vld [vmem:[%s7251_s0 + $0x80] sm:$0xff] }
  0x15   :  { %4785 = vmatpush3.bf16.msra.mxu1 %v5357_v45  ;;  %7337 = vst [vmem:[#allocation14_spill] sm:$0xff] %v5386_v56  ;;  %7338 = vst [vmem:[#allocation15_spill] sm:$0xff] %v5389_v57  ;;  %v7275_v0 = vand.u32 4294901760, %v5400_v61  ;;  %v7274_v1 = vand.u32 4294901760, %v5393_v59  ;;  %v7273_v3 = vand.u32 4294901760, %v5404_v62  ;;  %v5419_v4 = vpack.c.bf16 %v580_v18, %v573_v17 }
  0x16   :  { %4297 = vmatmul.mubr.f32.vlgmr.msra.gmra.mrb[0].mxu0 %v5339_v37  ;;  %4970 = vmatprep.subr.bf16.mxu1 %v5312_v27  ;;  %7339 = vst [vmem:[#allocation16_spill] sm:$0xff] %v5396_v60  ;;  %v7270_v5 = vand.u32 4294901760, %v5407_v63  ;;  %v7269_v9 = vand.u32 4294901760, %v5412_v2  ;;  %v5438_v14 = vsub.f32 %v87_v47, %v5373_v51  ;;  %v5444_v20 = vsub.f32 %v90_v48, %v5377_v52  ;;  %v42_v48 = vld [vmem:[%s7251_s0 + $0x78] sm:$0xff] }
  0x17   :  { %4797 = vmatpush3.bf16.msra.mxu0 %v4794_v33  ;;  %4299 = vmatprep.mubr.f32.mxu0 %v5342_v38  ;;  %v239_v6 = vsub.f32 %v5400_v61, %v7275_v0  ;;  %v249_v7 = vsub.f32 %v5393_v59, %v7274_v1  ;;  %v259_v12 = vsub.f32 %v5404_v62, %v7273_v3  ;;  %v5477_v36 = vand.u32 4294901760, %v102_v23 }
  0x18   :  { %4799 = vmatprep.subr.bf16.mxu0 %v4798_v42  ;;  %v269_v19 = vsub.f32 %v5407_v63, %v7270_v5  ;;  %v279_v22 = vsub.f32 %v5412_v2, %v7269_v9  ;;  %v7268_v25 = vand.u32 4294901760, %v5438_v14  ;;  %v5458_v26 = vsub.f32 %v93_v53, %v5386_v56  ;;  %v50_v9 = vld [vmem:[%s7251_s0 + $0xb8] sm:$0xff] }
  0x19   :  { %v240_v17 = vand.u32 4294901760, %v239_v6  ;;  %v250_v18 = vand.u32 4294901760, %v249_v7  ;;  %v260_v21 = vand.u32 4294901760, %v259_v12  ;;  %v7267_v30 = vand.u32 4294901760, %v5444_v20 }
  0x1a   :  { %4300 = vmatmul.mubr.f32.gmra.mrb[2].mxu0 %v5355_v44  ;;  %v5465_v32 = vsub.f32 %v96_v54, %v5389_v57  ;;  %v5472_v33 = vpack.c.bf16 %v566_v16, %v559_v15  ;;  %v270_v34 = vand.u32 4294901760, %v269_v19  ;;  %v289_v35 = vsub.f32 %v5438_v14, %v7268_v25 }
  0x1b   :  { %4302 = vmatprep.mubr.f32.mxu0 %v5360_v46  ;;  %4801 = vmatpush3.bf16.msra.mxu0 %v4798_v42  ;;  %v105_v39 = vsel %vm70_vm0, %v38_v24, 0  ;;  %v280_v10 = vand.u32 4294901760, %v279_v22  ;;  %v299_v11 = vsub.f32 %v5444_v20, %v7267_v30  ;;  %v108_v15 = vsel %vm70_vm0, %v39_v28, 0  ;;  %v41_v42 = vld [vmem:[%s7251_s0 + $0x70] sm:$0xff]  ;;  %v44_v28 = vld [vmem:[%s7251_s0 + $0x88] sm:$0xff] }
  0x1c   :  { %4803 = vmatprep.subr.bf16.mxu0 %v5323_v31  ;;  %4240 = vmatprep.mubr.f32.mxu1 %v240_v17  ;;  %v7264_v16 = vand.u32 4294901760, %v5458_v26  ;;  %v5493_v41 = vsub.f32 %v99_v58, %v5396_v60  ;;  %v5500_v43 = vand.u32 4294901760, %v105_v39  ;;  %v111_v47 = vsel %vm70_vm0, %v40_v40, 0 }
  0x1d   :  { %4241 = vmatmul.mubr.f32.vlgmr.msra.gmra.mrb[0].mxu1 %v250_v18  ;;  %v290_v49 = vand.u32 4294901760, %v289_v35  ;;  %v5511_v53 = vsub.f32 %v102_v23, %v5477_v36  ;;  %v5513_v54 = vand.u32 4294901760, %v108_v15  ;;  %v300_v58 = vand.u32 4294901760, %v299_v11 }
  0x1e   :  { %4303 = vmatmul.mubr.f32.gmra.mrb[4].mxu0 %v5373_v51  ;;  %4243 = vmatprep.mubr.f32.mxu1 %v260_v21  ;;  %v309_v50 = vsub.f32 %v5458_v26, %v7264_v16  ;;  %v114_v7 = vsel %vm70_vm0, %v41_v42, 0  ;;  %v7262_v8 = vand.u32 4294901760, %v5493_v41  ;;  %v5526_v12 = vand.u32 4294901760, %v111_v47 }
  0x1f   :  { %4305 = vmatprep.mubr.f32.mxu0 %v5377_v52  ;;  %4972 = vmatpush3.bf16.msra.mxu1 %v5312_v27  ;;  %v7263_v27 = vand.u32 4294901760, %v5465_v32  ;;  %v117_v17 = vsel %vm70_vm0, %v42_v48, 0  ;;  %v7261_v18 = vand.u32 4294901760, %v5511_v53  ;;  %v5531_v19 = vsub.f32 %v105_v39, %v5500_v43  ;;  %v45_v39 = vld [vmem:[%s7251_s0 + $0x90] sm:$0xff] }
  0x20   :  { %4971 = vmatprep.subr.bf16.mxu1 %v5317_v29  ;;  %v120_v21 = vsel %vm70_vm0, %v43_v55, 0  ;;  %v329_v22 = vsub.f32 %v5493_v41, %v7262_v8  ;;  %v5538_v23 = vsub.f32 %v108_v15, %v5513_v54  ;;  %v5540_v24 = vand.u32 4294901760, %v114_v7  ;;  %v48_v8 = vld [vmem:[%s7251_s0 + $0xa8] sm:$0xff] }
  0x21   :  { %4244 = vmatmul.mubr.f32.gmra.mrb[2].mxu1 %v270_v34  ;;  %v319_v6 = vsub.f32 %v5465_v32, %v7263_v27  ;;  %v339_v35 = vsub.f32 %v5511_v53, %v7261_v18  ;;  %v7260_v40 = vand.u32 4294901760, %v5531_v19  ;;  %v5557_v11 = vand.u32 4294901760, %v117_v17 }
  0x22   :  { %4306 = vmatmul.mubr.f32.gmra.mrb[6].mxu0 %v5386_v56  ;;  %4246 = vmatprep.mubr.f32.mxu1 %v280_v10  ;;  %v5555_v10 = vsub.f32 %v111_v47, %v5526_v12  ;;  %v7259_v15 = vand.u32 4294901760, %v5538_v23  ;;  %v5560_v42 = vand.u32 4294901760, %v120_v21  ;;  %v123_v48 = vsel %vm70_vm0, %v44_v28, 0 }
  0x23   :  { %4308 = vmatprep.mubr.f32.mxu0 %v5389_v57  ;;  %4973 = vmatpush3.bf16.msra.mxu1 %v5317_v29  ;;  %v310_v29 = vand.u32 4294901760, %v309_v50  ;;  %v320_v34 = vand.u32 4294901760, %v319_v6  ;;  %v349_v50 = vsub.f32 %v5531_v19, %v7260_v40  ;;  %v5567_v55 = vsub.f32 %v114_v7, %v5540_v24 }
  0x24   :  { %v126_v47 = vsel %vm70_vm0, %v45_v39, 0  ;;  %v340_v6 = vand.u32 4294901760, %v339_v35  ;;  %v5580_v7 = vsub.f32 %v117_v17, %v5557_v11  ;;  %v5582_v28 = vand.u32 4294901760, %v123_v48 }
  0x25   :  { %4247 = vmatmul.mubr.f32.gmra.mrb[4].mxu1 %v290_v49  ;;  %v330_v49 = vand.u32 4294901760, %v329_v22  ;;  %v7266_v22 = vand.u32 4294901760, %v5555_v10  ;;  %v7265_v35 = vand.u32 4294901760, %v5567_v55  ;;  %v5588_v39 = vand.u32 4294901760, %v126_v47 }
  0x26   :  { %4309 = vmatmul.mubr.f32.gmra.mrb[8].mxu0 %v5396_v60  ;;  %4249 = vmatprep.mubr.f32.mxu1 %v300_v58  ;;  %v46_v58 = vld [vmem:[%s7251_s0 + $0x98] sm:$0xff]  ;;  %v350_v40 = vand.u32 4294901760, %v349_v50  ;;  %v5595_v17 = vsub.f32 %v120_v21, %v5560_v42  ;;  %v49_v50 = vld [vmem:[%s7251_s0 + $0xb0] sm:$0xff]  ;;  %v7272_v21 = vand.u32 4294901760, %v5580_v7  ;;  %vm2015_vm1 = vcmask 1042432  }
  0x27   :  { %4352 = vmatprep.mubr.f32.mxu0 %v5400_v61  ;;  %v369_v18 = vsub.f32 %v5555_v10, %v7266_v22  ;;  %v379_v16 = vsub.f32 %v5567_v55, %v7265_v35  ;;  %v5617_v35 = vsub.f32 %v126_v47, %v5588_v39  ;;  %vm5222_vm2 = vmmov 0  }
  0x28   :  { %v389_v30 = vsub.f32 %v5580_v7, %v7272_v21  ;;  %vm3154_vm3 = vcmask 1044480   ;;  %vm3179_vm4 = vcmask 1040384   ;;  %vm3844_vm5 = vcmask 25600  }
  0x29   :  { %4250 = vmatmul.mubr.f32.gmra.mrb[6].mxu1 %v310_v29  ;;  %v359_v29 = vsub.f32 %v5538_v23, %v7259_v15  ;;  %v129_v15 = vsel %vm70_vm0, %v46_v58, 0  ;;  %v5611_v58 = vsub.f32 %v123_v48, %v5582_v28  ;;  %v370_v22 = vand.u32 4294901760, %v369_v18  ;;  %v51_v18 = vld [vmem:[%s7251_s0 + $0xc0] sm:$0xff] }
  0x2a   :  { %4353 = vmatmul.mubr.f32.vlgmr.msra.gmra.mrb[0].mxu0 %v5393_v59  ;;  %4252 = vmatprep.mubr.f32.mxu1 %v320_v34  ;;  %v47_v34 = vld [vmem:[%s7251_s0 + $0xa0] sm:$0xff]  ;;  %v138_v48 = vsel %vm70_vm0, %v49_v50, 0  ;;  %v380_v5 = vand.u32 4294901760, %v379_v16  ;;  %v7278_v16 = vand.u32 4294901760, %v5617_v35  ;;  %v390_v21 = vand.u32 4294901760, %v389_v30 }
  0x2b   :  { %4805 = vmatpush3.bf16.msra.mxu0 %v5323_v31  ;;  %4355 = vmatprep.mubr.f32.mxu0 %v5404_v62  ;;  %v360_v27 = vand.u32 4294901760, %v359_v29  ;;  %v7271_v29 = vand.u32 4294901760, %v5595_v17 }
  0x2c   :  { %4807 = vmatprep.subr.bf16.mxu0 %v5357_v45  ;;  %v419_v60 = vsub.f32 %v5617_v35, %v7278_v16  ;;  %v54_v16 = vld [vmem:[%s7251_s0 + $0xd8] sm:$0xff] }
  0x2d   :  { %4253 = vmatmul.mubr.f32.gmra.mrb[8].mxu1 %v330_v49  ;;  %v132_v49 = vsel %vm70_vm0, %v47_v34, 0  ;;  %v135_v34 = vsel %vm70_vm0, %v48_v8, 0  ;;  %v399_v8 = vsub.f32 %v5595_v17, %v7271_v29  ;;  %v141_v29 = vsel %vm70_vm0, %v50_v9, 0  ;;  %v52_v9 = vld [vmem:[%s7251_s0 + $0xc8] sm:$0xff] }
  0x2e   :  { %4356 = vmatmul.mubr.f32.gmra.mrb[2].mxu0 %v5407_v63  ;;  %4255 = vmatprep.mubr.f32.mxu1 %v340_v6  ;;  %v5613_v6 = vand.u32 4294901760, %v129_v15  ;;  %v5623_v25 = vand.u32 4294901760, %v132_v49  ;;  %v5641_v50 = vand.u32 4294901760, %v135_v34  ;;  %v147_v56 = vsel %vm70_vm0, %v52_v9, 0  ;;  %v56_v9 = vld [vmem:[%s7251_s0 + $0xe8] sm:$0xff] }
  0x2f   :  { %4358 = vmatprep.mubr.f32.mxu0 %v5412_v2  ;;  %4809 = vmatpush3.bf16.msra.mxu0 %v5357_v45  ;;  %v400_v0 = vand.u32 4294901760, %v399_v8  ;;  %v5670_v8 = vand.u32 4294901760, %v141_v29  ;;  %v159_v38 = vsel %vm70_vm0, %v56_v9, 0 }
  0x30   :  { %4811 = vmatprep.subr.bf16.mxu0 %v5472_v33  ;;  %v5639_v47 = vsub.f32 %v129_v15, %v5613_v6  ;;  %v5651_v1 = vsub.f32 %v132_v49, %v5623_v25  ;;  %v144_v15 = vsel %vm70_vm0, %v51_v18, 0  ;;  %v420_v49 = vand.u32 4294901760, %v419_v60 }
  0x31   :  { %4256 = vmatmul.mubr.f32.gmra.mrb[10].mxu1 %v350_v40  ;;  %v7279_v40 = vand.u32 4294901760, %v5611_v58  ;;  %v5672_v18 = vand.u32 4294901760, %v144_v15 }
  0x32   :  { %4359 = vmatmul.mubr.f32.gmra.mrb[4].mxu0 %v5438_v14  ;;  %4258 = vmatprep.mubr.f32.mxu1 %v360_v27  ;;  %7340 = vst [vmem:[#allocation17_spill] sm:$0xff] %v5639_v47  ;;  %v5644_v27 = vand.u32 4294901760, %v138_v48  ;;  %7341 = vst [vmem:[#allocation18_spill] sm:$0xff] %v5651_v1  ;;  %v7288_v30 = vand.u32 4294901760, %v5639_v47  ;;  %v7344_v52 = vand.u32 4294901760, %v5651_v1 }
  0x33   :  { %4361 = vmatprep.mubr.f32.mxu0 %v5444_v20  ;;  %v409_v3 = vsub.f32 %v5611_v58, %v7279_v40  ;;  %v5708_v46 = vsub.f32 %v144_v15, %v5672_v18 }
  0x34   :  { %v5681_v57 = vsub.f32 %v138_v48, %v5644_v27  ;;  %v439_v51 = vsub.f32 %v5651_v1, %v7344_v52  ;;  %v55_v48 = vld [vmem:[%s7251_s0 + $0xe0] sm:$0xff]  ;;  %v5699_v52 = vand.u32 4294901760, %v147_v56 }
  0x35   :  { %4259 = vmatmul.mubr.f32.gmra.mrb[12].mxu1 %v370_v22  ;;  %v5664_v22 = vsub.f32 %v135_v34, %v5641_v50  ;;  %v410_v40 = vand.u32 4294901760, %v409_v3  ;;  %v429_v34 = vsub.f32 %v5639_v47, %v7288_v30  ;;  %v153_v30 = vsel %vm70_vm0, %v54_v16, 0  ;;  %7345 = vst [vmem:[#allocation21_spill] sm:$0xff] %v5708_v46 }
  0x36   :  { %4362 = vmatmul.mubr.f32.gmra.mrb[6].mxu0 %v5458_v26  ;;  %4261 = vmatprep.mubr.f32.mxu1 %v380_v5  ;;  %v53_v5 = vld [vmem:[%s7251_s0 + $0xd0] sm:$0xff]  ;;  %7343 = vst [vmem:[#allocation20_spill] sm:$0xff] %v5681_v57  ;;  %v440_v60 = vand.u32 4294901760, %v439_v51  ;;  %v7346_v45 = vand.u32 4294901760, %v5681_v57  ;;  %v5722_v15 = vand.u32 4294901760, %v153_v30  ;;  %v7303_v37 = vand.u32 4294901760, %v5708_v46 }
  0x37   :  { %4364 = vmatprep.mubr.f32.mxu0 %v5465_v32  ;;  %7342 = vst [vmem:[#allocation19_spill] sm:$0xff] %v5664_v22  ;;  %v7295_v3 = vand.u32 4294901760, %v5664_v22  ;;  %v5727_v51 = vsub.f32 %v147_v56, %v5699_v52 }
  0x38   :  { %v479_v56 = vsub.f32 %v5708_v46, %v7303_v37 }
  0x39   :  { %4262 = vmatmul.mubr.f32.gmra.mrb[14].mxu1 %v390_v21  ;;  %v150_v21 = vsel %vm70_vm0, %v53_v5, 0  ;;  %v430_v5 = vand.u32 4294901760, %v429_v34  ;;  %v449_v16 = vsub.f32 %v5664_v22, %v7295_v3  ;;  %v156_v34 = vsel %vm70_vm0, %v55_v48, 0 }
  0x3a   :  { %4365 = vmatmul.mubr.f32.gmra.mrb[8].mxu0 %v5493_v41  ;;  %4264 = vmatprep.mubr.f32.mxu1 %v400_v0  ;;  %v5697_v0 = vsub.f32 %v141_v29, %v5670_v8  ;;  %v5710_v44 = vand.u32 4294901760, %v150_v21  ;;  %v57_v29 = vld [vmem:[%s7251_s0 + $0xf0] sm:$0xff] }
  0x3b   :  { %4367 = vmatprep.mubr.f32.mxu0 %v5511_v53 }
  0x3c   :  { %v7304_v3 = vand.u32 4294901760, %v5697_v0  ;;  %v5734_v13 = vsub.f32 %v150_v21, %v5710_v44  ;;  %v5747_v21 = vand.u32 4294901760, %v159_v38 }
  0x3d   :  { %4265 = vmatmul.mubr.f32.gmra.mrb[16].mxu1 %v410_v40  ;;  %v459_v40 = vsub.f32 %v5681_v57, %v7346_v45  ;;  %v450_v45 = vand.u32 4294901760, %v449_v16  ;;  %v7308_v16 = vand.u32 4294901760, %v5727_v51 }
  0x3e   :  { %4368 = vmatmul.mubr.f32.gmra.mrb[10].mxu0 %v5531_v19  ;;  %4267 = vmatprep.mubr.f32.mxu1 %v420_v49  ;;  %v162_v49 = vsel %vm70_vm0, %v57_v29, 0  ;;  %v469_v48 = vsub.f32 %v5697_v0, %v7304_v3  ;;  %v7309_v29 = vand.u32 4294901760, %v5734_v13 }
  0x3f   :  { %4370 = vmatprep.mubr.f32.mxu0 %v5538_v23  ;;  %v460_v9 = vand.u32 4294901760, %v459_v40  ;;  %v5753_v40 = vand.u32 4294901760, %v162_v49  ;;  %v489_v3 = vsub.f32 %v5727_v51, %v7308_v16  ;;  %v5770_v16 = vsub.f32 %v159_v38, %v5747_v21 }
  0x40   :  { %v470_v37 = vand.u32 4294901760, %v469_v48 }
  0x41   :  { %4268 = vmatmul.mubr.f32.gmra.mrb[18].mxu1 %v430_v5  ;;  %v58_v5 = vld [vmem:[%s7251_s0 + $0xf8] sm:$0x7]  ;;  %v528_v38 = vand.u32 4294901760, %v5770_v16 }
  0x42   :  { %4371 = vmatmul.mubr.f32.gmra.mrb[12].mxu0 %v5555_v10  ;;  %4270 = vmatprep.mubr.f32.mxu1 %v440_v60  ;;  %v5751_v60 = vsub.f32 %v153_v30, %v5722_v15  ;;  %v499_v30 = vsub.f32 %v5734_v13, %v7309_v29 }
  0x43   :  { %4373 = vmatprep.mubr.f32.mxu0 %v5567_v55 }
  0x44   :  { %v500_v29 = vand.u32 4294901760, %v499_v30 }
  0x45   :  { %4271 = vmatmul.mubr.f32.gmra.mrb[20].mxu1 %v450_v45  ;;  %v7312_v45 = vand.u32 4294901760, %v5751_v60 }
  0x46   :  { %4374 = vmatmul.mubr.f32.gmra.mrb[14].mxu0 %v5580_v7  ;;  %4273 = vmatprep.mubr.f32.mxu1 %v460_v9  ;;  %v490_v9 = vand.u32 4294901760, %v489_v3 }
  0x47   :  { %4376 = vmatprep.mubr.f32.mxu0 %v5595_v17 }
  0x49   :  { %4274 = vmatmul.mubr.f32.gmra.mrb[22].mxu1 %v470_v37 }
  0x4a   :  { %4377 = vmatmul.mubr.f32.gmra.mrb[16].mxu0 %v5611_v58 }
  0x4b   :  { %4379 = vmatprep.mubr.f32.mxu0 %v5617_v35 }
  0x4e   :  { %4380 = vmatmul.mubr.f32.gmra.mrb[18].mxu0 %v5639_v47  ;;  %v480_v47 = vand.u32 4294901760, %v479_v56  ;;  %v509_v56 = vsub.f32 %v5751_v60, %v7312_v45 }
  0x4f   :  { %4382 = vmatprep.mubr.f32.mxu0 %v5651_v1  ;;  %v5736_v1 = vand.u32 4294901760, %v156_v34 }
  0x50   :  { %4276 = vmatprep.mubr.f32.mxu1 %v480_v47  ;;  %v529_v47 = vsub.f32 %v5770_v16, %v528_v38 }
  0x51   :  { %4277 = vmatmul.mubr.f32.gmra.mrb[24].mxu1 %v490_v9 }
  0x52   :  { %4383 = vmatmul.mubr.f32.gmra.mrb[20].mxu0 %v5664_v22  ;;  %v5759_v22 = vsub.f32 %v156_v34, %v5736_v1  ;;  %4279 = vmatprep.mubr.f32.mxu1 %v500_v29  ;;  %v7347_v29 = vand.u32 4294901760, %v5400_v61  ;;  %v7350_v61 = vand.u32 4294901760, %v5407_v63  ;;  %v7354_v63 = vand.u32 4294901760, %v5458_v26 }
  0x53   :  { %4385 = vmatprep.mubr.f32.mxu0 %v5681_v57  ;;  %v165_v57 = vsel %vm70_vm0, %v58_v5, 0  ;;  %v5778_v5 = vsub.f32 %v162_v49, %v5753_v40  ;;  %v510_v49 = vand.u32 4294901760, %v509_v56  ;;  %v7359_v26 = vand.u32 4294901760, %v5538_v23 }
  0x54   :  { %v7311_v48 = vand.u32 4294901760, %v5759_v22  ;;  %v5772_v34 = vand.u32 4294901760, %v165_v57  ;;  %v7365_v23 = vand.u32 4294901760, %v5617_v35 }
  0x55   :  { %v538_v37 = vand.u32 4294901760, %v5778_v5  ;;  %4280 = vmatmul.mubr.f32.gmra.mrb[26].mxu1 %v510_v49  ;;  %v7348_v49 = vand.u32 4294901760, %v5393_v59  ;;  %v7352_v59 = vand.u32 4294901760, %v5438_v14  ;;  %v7357_v14 = vand.u32 4294901760, %v5511_v53 }
  0x56   :  { %4386 = vmatmul.mubr.f32.gmra.mrb[22].mxu0 %v5697_v0  ;;  %v5788_v3 = vsub.f32 %v165_v57, %v5772_v34  ;;  %v530_v57 = vand.u32 4294901760, %v529_v47  ;;  %v7351_v47 = vand.u32 4294901760, %v5412_v2  ;;  %v7355_v2 = vand.u32 4294901760, %v5465_v32 }
  0x57   :  { %4388 = vmatprep.mubr.f32.mxu0 %v5708_v46  ;;  %v519_v46 = vsub.f32 %v5759_v22, %v7311_v48  ;;  %v539_v48 = vsub.f32 %v5778_v5, %v538_v37  ;;  %v7360_v32 = vand.u32 4294901760, %v5555_v10  ;;  %v7363_v53 = vand.u32 4294901760, %v5595_v17  ;;  %v7366_v10 = vld [vmem:[#allocation17_spill] sm:$0xff] }
  0x58   :  { %v548_v45 = vand.u32 4294901760, %v5788_v3 }
  0x59   :  { %v520_v30 = vand.u32 4294901760, %v519_v46  ;;  %v540_v56 = vand.u32 4294901760, %v539_v48  ;;  %v7349_v48 = vand.u32 4294901760, %v5404_v62  ;;  %v7353_v62 = vand.u32 4294901760, %v5444_v20 }
  0x5a   :  { %4389 = vmatmul.mubr.f32.gmra.mrb[24].mxu0 %v5727_v51  ;;  %v549_v9 = vsub.f32 %v5788_v3, %v548_v45  ;;  %v7358_v20 = vand.u32 4294901760, %v5531_v19  ;;  %v7364_v19 = vand.u32 4294901760, %v5611_v58 }
  0x5b   :  { %4391 = vmatprep.mubr.f32.mxu0 %v5734_v13  ;;  %4282 = vmatprep.mubr.f32.mxu1 %v520_v30  ;;  %v7370_v30 = vld [vmem:[#allocation19_spill] sm:$0xff] }
  0x5c   :  { %4283 = vmatmul.mubr.f32.gmra.mrb[28].mxu1 %v530_v57  ;;  %v550_v46 = vand.u32 4294901760, %v549_v9  ;;  %v7371_v58 = vand.u32 4294901760, %v7370_v30  ;;  %v7372_v57 = vld [vmem:[#allocation20_spill] sm:$0xff]  ;;  %v7374_v9 = vand.u32 4294901760, %v5697_v0  ;;  %v7381_v0 = vld [vmem:[#allocation6_spill] sm:$0xff] }
  0x5d   :  { %4285 = vmatprep.mubr.f32.mxu1 %v540_v56  ;;  %v7373_v35 = vand.u32 4294901760, %v7372_v57  ;;  %v7375_v56 = vld [vmem:[#allocation21_spill] sm:$0xff] }
  0x5e   :  { %4392 = vmatmul.mubr.f32.gmra.mrb[26].mxu0 %v5751_v60 }
  0x5f   :  { %4394 = vmatprep.mubr.f32.mxu0 %v5759_v22 }
  0x60   :  { %4286 = vmatmul.mubr.f32.gmra.mrb[30].mxu1 %v550_v46  ;;  %v7376_v46 = vand.u32 4294901760, %v7375_v56 }
  0x61   :  { %4311 = vmatprep.mubr.f32.mxu1 %v5477_v36 }
  0x62   :  { %4395 = vmatmul.mubr.f32.gmra.mrb[28].mxu0 %v5770_v16  ;;  %v7386_v16 = vld [vmem:[#allocation11_spill] sm:$0xff] }
  0x63   :  { %4397 = vmatprep.mubr.f32.mxu0 %v5778_v5  ;;  %v7387_v5 = vld [vmem:[#allocation12_spill] sm:$0xff] }
  0x64   :  { %4312 = vmatmul.mubr.f32.vlgmr.msra.gmra.mrb[10].mxu1 %v5500_v43 }
  0x65   :  { %4314 = vmatprep.mubr.f32.mxu1 %v5513_v54 }
  0x66   :  { %4398 = vmatmul.mubr.f32.gmra.mrb[30].mxu0 %v5788_v3  ;;  %v7391_v3 = vld [vmem:[#allocation16_spill] sm:$0xff] }
  0x67   :  { %4408 = vmatprep.mubr.f32.mxu0 %v7347_v29  ;;  %v7377_v29 = vand.u32 4294901760, %v5727_v51  ;;  %v7382_v51 = vld [vmem:[#allocation7_spill] sm:$0xff] }
  0x68   :  { %4315 = vmatmul.mubr.f32.gmra.mrb[12].mxu1 %v5526_v12 }
  0x69   :  { %4317 = vmatprep.mubr.f32.mxu1 %v5540_v24 }
  0x6a   :  { %4409 = vmatmul.mubr.f32.vlgmr.msra.gmra.mrb[0].mxu0 %v7348_v49  ;;  %v7378_v49 = vand.u32 4294901760, %v5734_v13  ;;  %v7383_v13 = vld [vmem:[#allocation8_spill] sm:$0xff] }
  0x6b   :  { %4813 = vmatpush3.bf16.msra.mxu0 %v5472_v33  ;;  %4411 = vmatprep.mubr.f32.mxu0 %v7349_v48  ;;  %v7361_v33 = vand.u32 4294901760, %v5567_v55  ;;  %v7367_v55 = vand.u32 4294901760, %v7366_v10  ;;  %v7379_v48 = vand.u32 4294901760, %v5751_v60  ;;  %v7384_v60 = vld [vmem:[#allocation10_spill] sm:$0xff] }
  0x6c   :  { %4815 = vmatprep.subr.bf16.mxu0 %v5419_v4  ;;  %4318 = vmatmul.mubr.f32.gmra.mrb[14].mxu1 %v5557_v11 }
  0x6d   :  { %4320 = vmatprep.mubr.f32.mxu1 %v5560_v42 }
  0x6e   :  { %4412 = vmatmul.mubr.f32.gmra.mrb[2].mxu0 %v7350_v61  ;;  %v7380_v61 = vand.u32 4294901760, %v5759_v22  ;;  %v7385_v22 = vld [vmem:[#allocation9_spill] sm:$0xff] }
  0x6f   :  { %4414 = vmatprep.mubr.f32.mxu0 %v7351_v47  ;;  %4817 = vmatpush3.bf16.msra.mxu0 %v5419_v4  ;;  %v7356_v4 = vand.u32 4294901760, %v5493_v41  ;;  %v7362_v41 = vand.u32 4294901760, %v5580_v7  ;;  %v7368_v7 = vld [vmem:[#allocation18_spill] sm:$0xff] }
  0x70   :  { %4819 = vmatprep.subr.bf16.mxu0 %v5323_v31  ;;  %4321 = vmatmul.mubr.f32.gmra.mrb[16].mxu1 %v5582_v28  ;;  %v7369_v17 = vand.u32 4294901760, %v7368_v7 }
  0x71   :  { %4323 = vmatprep.mubr.f32.mxu1 %v5588_v39 }
  0x72   :  { %4415 = vmatmul.mubr.f32.gmra.mrb[4].mxu0 %v7352_v59 }
  0x73   :  { %4417 = vmatprep.mubr.f32.mxu0 %v7353_v62 }
  0x74   :  { %4324 = vmatmul.mubr.f32.gmra.mrb[18].mxu1 %v5613_v6 }
  0x75   :  { %4326 = vmatprep.mubr.f32.mxu1 %v5623_v25 }
  0x76   :  { %4418 = vmatmul.mubr.f32.gmra.mrb[6].mxu0 %v7354_v63 }
  0x77   :  { %4420 = vmatprep.mubr.f32.mxu0 %v7355_v2 }
  0x78   :  { %4327 = vmatmul.mubr.f32.gmra.mrb[20].mxu1 %v5641_v50 }
  0x79   :  { %4329 = vmatprep.mubr.f32.mxu1 %v5644_v27 }
  0x7a   :  { %4421 = vmatmul.mubr.f32.gmra.mrb[8].mxu0 %v7356_v4 }
  0x7b   :  { %4423 = vmatprep.mubr.f32.mxu0 %v7357_v14 }
  0x7c   :  { %4330 = vmatmul.mubr.f32.gmra.mrb[22].mxu1 %v5670_v8 }
  0x7d   :  { %4332 = vmatprep.mubr.f32.mxu1 %v5672_v18 }
  0x7e   :  { %4424 = vmatmul.mubr.f32.gmra.mrb[10].mxu0 %v7358_v20 }
  0x7f   :  { %4426 = vmatprep.mubr.f32.mxu0 %v7359_v26 }
  0x80   :  { %4333 = vmatmul.mubr.f32.gmra.mrb[24].mxu1 %v5699_v52 }
  0x81   :  { %4335 = vmatprep.mubr.f32.mxu1 %v5710_v44 }
  0x82   :  { %4427 = vmatmul.mubr.f32.gmra.mrb[12].mxu0 %v7360_v32  ;;  %v6009_v32 = vld [vmem:[%s7253_s2] ss:$0 sm:$0xff]  ;;  %s5218_s2 = smov 96  }
  0x83   :  { %4429 = vmatprep.mubr.f32.mxu0 %v7361_v33 }
  0x84   :  { %4336 = vmatmul.mubr.f32.gmra.mrb[26].mxu1 %v5722_v15 }
  0x85   :  { %4338 = vmatprep.mubr.f32.mxu1 %v5736_v1 }
  0x86   :  { %4430 = vmatmul.mubr.f32.gmra.mrb[14].mxu0 %v7362_v41 }
  0x87   :  { %4432 = vmatprep.mubr.f32.mxu0 %v7363_v53 }
  0x88   :  { %4339 = vmatmul.mubr.f32.gmra.mrb[28].mxu1 %v5747_v21 }
  0x89   :  { %4341 = vmatprep.mubr.f32.mxu1 %v5753_v40 }
  0x8a   :  { %4433 = vmatmul.mubr.f32.gmra.mrb[16].mxu0 %v7364_v19 }
  0x8b   :  { %4435 = vmatprep.mubr.f32.mxu0 %v7365_v23 }
  0x8c   :  { %4342 = vmatmul.mubr.f32.gmra.mrb[30].mxu1 %v5772_v34 }
  0x8e   :  { %4436 = vmatmul.mubr.f32.gmra.mrb[18].mxu0 %v7367_v55 }
  0x8f   :  { %4438 = vmatprep.mubr.f32.mxu0 %v7369_v17 }
  0x92   :  { %4439 = vmatmul.mubr.f32.gmra.mrb[20].mxu0 %v7371_v58 }
  0x93   :  { %4441 = vmatprep.mubr.f32.mxu0 %v7373_v35 }
  0x96   :  { %4442 = vmatmul.mubr.f32.gmra.mrb[22].mxu0 %v7374_v9 }
  0x97   :  { %4444 = vmatprep.mubr.f32.mxu0 %v7376_v46 }
  0x9a   :  { %4445 = vmatmul.mubr.f32.gmra.mrb[24].mxu0 %v7377_v29 }
  0x9b   :  { %4447 = vmatprep.mubr.f32.mxu0 %v7378_v49 }
  0x9e   :  { %4448 = vmatmul.mubr.f32.gmra.mrb[26].mxu0 %v7379_v48 }
  0x9f   :  { %4450 = vmatprep.mubr.f32.mxu0 %v7380_v61 }
  0xa2   :  { %4451 = vmatmul.mubr.f32.gmra.mrb[28].mxu0 %v528_v38  ;;  %v7388_v38 = vld [vmem:[#allocation13_spill] sm:$0xff] }
  0xa3   :  { %4453 = vmatprep.mubr.f32.mxu0 %v538_v37  ;;  %v7390_v37 = vld [vmem:[#allocation15_spill] sm:$0xff] }
  0xa6   :  { %4454 = vmatmul.mubr.f32.gmra.mrb[30].mxu0 %v548_v45  ;;  %v7389_v45 = vld [vmem:[#allocation14_spill] sm:$0xff] }
  0xa7   :  { %4464 = vmatprep.mubr.f32.mxu0 %v7381_v0 }
  0xaa   :  { %4465 = vmatmul.mubr.f32.vlgmr.msra.gmra.mrb[0].mxu0 %v7382_v51 }
  0xab   :  { %4821 = vmatpush3.bf16.msra.mxu0 %v5323_v31  ;;  %4467 = vmatprep.mubr.f32.mxu0 %v7383_v13 }
  0xac   :  { %4823 = vmatprep.subr.bf16.mxu0 %v7384_v60 }
  0xae   :  { %4468 = vmatmul.mubr.f32.gmra.mrb[2].mxu0 %v7385_v22 }
  0xaf   :  { %4470 = vmatprep.mubr.f32.mxu0 %v7386_v16  ;;  %4825 = vmatpush3.bf16.msra.mxu0 %v7384_v60 }
  0xb2   :  { %4471 = vmatmul.mubr.f32.gmra.mrb[4].mxu0 %v7387_v5 }
  0xb3   :  { %4473 = vmatprep.mubr.f32.mxu0 %v7388_v38 }
  0xb6   :  { %4474 = vmatmul.mubr.f32.gmra.mrb[6].mxu0 %v7389_v45 }
  0xb7   :  { %4476 = vmatprep.mubr.f32.mxu0 %v7390_v37 }
  0xba   :  { %4477 = vmatmul.mubr.f32.gmra.mrb[8].mxu0 %v7391_v3 }
  0xbb   :  { %4479 = vmatprep.mubr.f32.mxu0 %v5477_v36 }
  0xbe   :  { %4480 = vmatmul.mubr.f32.gmra.mrb[10].mxu0 %v5500_v43 }
  0xbf   :  { %4482 = vmatprep.mubr.f32.mxu0 %v5513_v54 }
  0xc2   :  { %4483 = vmatmul.mubr.f32.gmra.mrb[12].mxu0 %v5526_v12 }
  0xc3   :  { %4485 = vmatprep.mubr.f32.mxu0 %v5540_v24 }
  0xc6   :  { %4486 = vmatmul.mubr.f32.gmra.mrb[14].mxu0 %v5557_v11 }
  0xc7   :  { %4488 = vmatprep.mubr.f32.mxu0 %v5560_v42 }
  0xca   :  { %4489 = vmatmul.mubr.f32.gmra.mrb[16].mxu0 %v5582_v28 }
  0xcb   :  { %4491 = vmatprep.mubr.f32.mxu0 %v5588_v39 }
  0xce   :  { %4492 = vmatmul.mubr.f32.gmra.mrb[18].mxu0 %v5613_v6 }
  0xcf   :  { %4494 = vmatprep.mubr.f32.mxu0 %v5623_v25 }
  0xd2   :  { %4495 = vmatmul.mubr.f32.gmra.mrb[20].mxu0 %v5641_v50 }
  0xd3   :  { %4497 = vmatprep.mubr.f32.mxu0 %v5644_v27 }
  0xd6   :  { %4498 = vmatmul.mubr.f32.gmra.mrb[22].mxu0 %v5670_v8 }
  0xd7   :  { %4500 = vmatprep.mubr.f32.mxu0 %v5672_v18 }
  0xda   :  { %4501 = vmatmul.mubr.f32.gmra.mrb[24].mxu0 %v5699_v52 }
  0xdb   :  { %4503 = vmatprep.mubr.f32.mxu0 %v5710_v44 }
  0xde   :  { %4504 = vmatmul.mubr.f32.gmra.mrb[26].mxu0 %v5722_v15 }
  0xdf   :  { %4506 = vmatprep.mubr.f32.mxu0 %v5736_v1 }
  0xe2   :  { %4507 = vmatmul.mubr.f32.gmra.mrb[28].mxu0 %v5747_v21 }
  0xe3   :  { %4509 = vmatprep.mubr.f32.mxu0 %v5753_v40 }
  0xe6   :  { %4510 = vmatmul.mubr.f32.gmra.mrb[30].mxu0 %v5772_v34 }
  0xe7   :  { %4520 = vmatprep.mubr.f32.mxu0 %v7381_v0 }
  0xea   :  { %4521 = vmatmul.mubr.f32.vlgmr.msra.gmra.mrb[0].mxu0 %v7382_v51 }
  0xeb   :  { %4523 = vmatprep.mubr.f32.mxu0 %v7383_v13 }
  0xee   :  { %4524 = vmatmul.mubr.f32.gmra.mrb[2].mxu0 %v7385_v22 }
  0xef   :  { %4526 = vmatprep.mubr.f32.mxu0 %v7386_v16 }
  0xf0   :  { %v4242_v31 = vpop.f32.mrb[0].mxu1 }
  0xf1   :  { %v242_v47 = vpop.f32.mrb[1].mxu1  ;;  %v253_v33 = vadd.f32 %v4242_v31, %v6009_v32 }
  0xf2   :  { %4527 = vmatmul.mubr.f32.gmra.mrb[4].mxu0 %v7387_v5  ;;  %v243_v41 = vadd.f32 %v6009_v32, %v242_v47 }
  0xf3   :  { %4529 = vmatprep.mubr.f32.mxu0 %v7388_v38 }
  0xf4   :  { %v4245_v59 = vpop.f32.mrb[2].mxu1 }
  0xf5   :  { %v262_v62 = vpop.f32.mrb[3].mxu1  ;;  %v273_v55 = vadd.f32 %v4245_v59, %v6009_v32 }
  0xf6   :  { %4530 = vmatmul.mubr.f32.gmra.mrb[6].mxu0 %v7389_v45  ;;  %v263_v7 = vadd.f32 %v6009_v32, %v262_v62 }
  0xf7   :  { %4532 = vmatprep.mubr.f32.mxu0 %v7390_v37 }
  0xf8   :  { %v4248_v63 = vpop.f32.mrb[4].mxu1 }
  0xf9   :  { %v282_v2 = vpop.f32.mrb[5].mxu1  ;;  %v293_v9 = vadd.f32 %v4248_v63, %v6009_v32 }
  0xfa   :  { %4533 = vmatmul.mubr.f32.gmra.mrb[8].mxu0 %v7391_v3  ;;  %v283_v56 = vadd.f32 %v6009_v32, %v282_v2 }
  0xfb   :  { %4535 = vmatprep.mubr.f32.mxu0 %v5477_v36 }
  0xfc   :  { %v4251_v36 = vpop.f32.mrb[6].mxu1 }
  0xfd   :  { %v313_v51 = vadd.f32 %v4251_v36, %v6009_v32 }
  0xfe   :  { %4536 = vmatmul.mubr.f32.gmra.mrb[10].mxu0 %v5500_v43  ;;  %v302_v43 = vpop.f32.mrb[7].mxu1 }
  0xff   :  { %4538 = vmatprep.mubr.f32.mxu0 %v5513_v54  ;;  %v303_v13 = vadd.f32 %v6009_v32, %v302_v43 }
 0x100   :  { %v5951_v54 = vpop.f32.mrb[8].mxu1 }
 0x101   :  { %v333_v37 = vadd.f32 %v5951_v54, %v6009_v32 }
 0x102   :  { %4539 = vmatmul.mubr.f32.gmra.mrb[12].mxu0 %v5526_v12  ;;  %v5953_v12 = vpop.f32.mrb[9].mxu1 }
 0x103   :  { %4541 = vmatprep.mubr.f32.mxu0 %v5540_v24  ;;  %v323_v3 = vadd.f32 %v6009_v32, %v5953_v12 }
 0x106   :  { %4542 = vmatmul.mubr.f32.gmra.mrb[14].mxu0 %v5557_v11 }
 0x107   :  { %4544 = vmatprep.mubr.f32.mxu0 %v5560_v42 }
 0x10a   :  { %4545 = vmatmul.mubr.f32.gmra.mrb[16].mxu0 %v5582_v28 }
 0x10b   :  { %4547 = vmatprep.mubr.f32.mxu0 %v5588_v39 }
 0x10e   :  { %4548 = vmatmul.mubr.f32.gmra.mrb[18].mxu0 %v5613_v6 }
 0x10f   :  { %4550 = vmatprep.mubr.f32.mxu0 %v5623_v25 }
 0x112   :  { %4551 = vmatmul.mubr.f32.gmra.mrb[20].mxu0 %v5641_v50 }
 0x113   :  { %4553 = vmatprep.mubr.f32.mxu0 %v5644_v27 }
 0x116   :  { %4554 = vmatmul.mubr.f32.gmra.mrb[22].mxu0 %v5670_v8 }
 0x117   :  { %4556 = vmatprep.mubr.f32.mxu0 %v5672_v18 }
 0x11a   :  { %4557 = vmatmul.mubr.f32.gmra.mrb[24].mxu0 %v5699_v52 }
 0x11b   :  { %4559 = vmatprep.mubr.f32.mxu0 %v5710_v44 }
 0x11e   :  { %4560 = vmatmul.mubr.f32.gmra.mrb[26].mxu0 %v5722_v15 }
 0x11f   :  { %4562 = vmatprep.mubr.f32.mxu0 %v5736_v1 }
 0x122   :  { %4563 = vmatmul.mubr.f32.gmra.mrb[28].mxu0 %v5747_v21 }
 0x123   :  { %4565 = vmatprep.mubr.f32.mxu0 %v5753_v40 }
 0x126   :  { %4566 = vmatmul.mubr.f32.gmra.mrb[30].mxu0 %v5772_v34 }
 0x137   :  { %v4313_v25 = vpop.f32.mrb[10].mxu1 }
 0x138   :  { %v703_v24 = vpop.f32.mrb[11].mxu1  ;;  %v4994_v36 = vadd.f32 %v4313_v25, %v6009_v32 }
 0x139   :  { %v4996_v43 = vadd.f32 %v6009_v32, %v703_v24 }
 0x13b   :  { %v5966_v11 = vpop.f32.mrb[12].mxu1 }
 0x13c   :  { %v5968_v42 = vpop.f32.mrb[13].mxu1 }
 0x13f   :  { %v5970_v28 = vpop.f32.mrb[14].mxu1 }
 0x140   :  { %v5972_v39 = vpop.f32.mrb[15].mxu1 }
 0x143   :  { %v5974_v44 = vpop.f32.mrb[16].mxu1 }
 0x144   :  { %v5976_v6 = vpop.f32.mrb[17].mxu1 }
 0x147   :  { %v5978_v1 = vpop.f32.mrb[18].mxu1 }
 0x148   :  { %v5980_v50 = vpop.f32.mrb[19].mxu1 }
 0x14b   :  { %v5982_v27 = vpop.f32.mrb[20].mxu1 }
 0x14c   :  { %v5984_v8 = vpop.f32.mrb[21].mxu1 }
 0x14f   :  { %v5986_v18 = vpop.f32.mrb[22].mxu1 }
 0x150   :  { %v5988_v52 = vpop.f32.mrb[23].mxu1 }
 0x153   :  { %v5990_v15 = vpop.f32.mrb[24].mxu1 }
 0x154   :  { %v5992_v21 = vpop.f32.mrb[25].mxu1 }
 0x157   :  { %v5994_v40 = vpop.f32.mrb[26].mxu1 }
 0x158   :  { %v5996_v34 = vpop.f32.mrb[27].mxu1 }
 0x15b   :  { %v5998_v4 = vpop.f32.mrb[28].mxu1 }
 0x15c   :  { %v6000_v14 = vpop.f32.mrb[29].mxu1 }
 0x15f   :  { %v6002_v20 = vpop.f32.mrb[30].mxu1 }
 0x160   :  { %v6004_v26 = vpop.f32.mrb[31].mxu1 }
 0x1bd   :  { %v4522_v53 = vpop.f32.mrb[0].mxu0 }
 0x1be   :  { %v6013_v19 = vadd.f32 %v4522_v53, %v253_v33  ;;  %v1795_v23 = vpop.f32.mrb[1].mxu0 }
 0x1bf   :  { %v6015_v10 = vadd.f32 %v1795_v23, %v243_v41 }
 0x1c1   :  { %v4525_v17 = vpop.f32.mrb[2].mxu0  ;;  %v1985_v57 = vadd.f32 %v6015_v10, %v6013_v19 }
 0x1c2   :  { %v6019_v30 = vadd.f32 %v4525_v17, %v273_v55  ;;  %v1807_v58 = vpop.f32.mrb[3].mxu0  ;;  %v4998_v55 = vadd.f32 %v5966_v11, %v6009_v32 }
 0x1c3   :  { %v6023_v35 = vadd.f32 %v1807_v58, %v263_v7  ;;  %v5000_v7 = vadd.f32 %v6009_v32, %v5968_v42 }
 0x1c5   :  { %v1986_v46 = vadd.f32 %v6023_v35, %v1985_v57  ;;  %v4528_v29 = vpop.f32.mrb[4].mxu0 }
 0x1c6   :  { %v6028_v49 = vadd.f32 %v4528_v29, %v293_v9  ;;  %v1819_v48 = vpop.f32.mrb[5].mxu0 }
 0x1c7   :  { %v6030_v61 = vadd.f32 %v1819_v48, %v283_v56  ;;  %v1987_v0 = vadd.f32 %v6019_v30, %v1986_v46  ;;  %v5002_v56 = vadd.f32 %v5970_v28, %v6009_v32  ;;  %v5004_v46 = vadd.f32 %v6009_v32, %v5972_v39 }
 0x1c9   :  { %v1988_v60 = vadd.f32 %v6030_v61, %v1987_v0  ;;  %v4531_v22 = vpop.f32.mrb[6].mxu0 }
 0x1ca   :  { %v6036_v16 = vadd.f32 %v4531_v22, %v313_v51  ;;  %v1831_v5 = vpop.f32.mrb[7].mxu0 }
 0x1cb   :  { %v6038_v38 = vadd.f32 %v1831_v5, %v303_v13  ;;  %v1989_v45 = vadd.f32 %v6028_v49, %v1988_v60  ;;  %v5006_v13 = vadd.f32 %v5974_v44, %v6009_v32  ;;  %v5008_v60 = vadd.f32 %v6009_v32, %v5976_v6 }
 0x1cd   :  { %v1990_v31 = vadd.f32 %v6038_v38, %v1989_v45  ;;  %v4534_v47 = vpop.f32.mrb[8].mxu0 }
 0x1ce   :  { %v6046_v59 = vadd.f32 %v4534_v47, %v333_v37  ;;  %v1843_v62 = vpop.f32.mrb[9].mxu0 }
 0x1cf   :  { %v6048_v63 = vadd.f32 %v1843_v62, %v323_v3  ;;  %v1991_v2 = vadd.f32 %v6036_v16, %v1990_v31  ;;  %v5010_v3 = vadd.f32 %v5978_v1, %v6009_v32  ;;  %v5012_v31 = vadd.f32 %v6009_v32, %v5980_v50 }
 0x1d1   :  { %v1992_v33 = vadd.f32 %v6048_v63, %v1991_v2  ;;  %v4537_v54 = vpop.f32.mrb[10].mxu0 }
 0x1d2   :  { %v6054_v41 = vadd.f32 %v4994_v36, %v4537_v54  ;;  %v1855_v12 = vpop.f32.mrb[11].mxu0 }
 0x1d3   :  { %v6056_v53 = vadd.f32 %v4996_v43, %v1855_v12  ;;  %v1993_v23 = vadd.f32 %v6046_v59, %v1992_v33  ;;  %v5014_v43 = vadd.f32 %v5982_v27, %v6009_v32  ;;  %v5016_v33 = vadd.f32 %v6009_v32, %v5984_v8 }
 0x1d5   :  { %v1994_v25 = vadd.f32 %v6056_v53, %v1993_v23  ;;  %v4540_v17 = vpop.f32.mrb[12].mxu0 }
 0x1d6   :  { %v6064_v24 = vadd.f32 %v4998_v55, %v4540_v17  ;;  %v1867_v58 = vpop.f32.mrb[13].mxu0 }
 0x1d7   :  { %v6066_v57 = vadd.f32 %v5000_v7, %v1867_v58  ;;  %v1995_v9 = vadd.f32 %v6054_v41, %v1994_v25  ;;  %v5018_v7 = vadd.f32 %v5986_v18, %v6009_v32  ;;  %v5020_v25 = vadd.f32 %v6009_v32, %v5988_v52 }
 0x1d9   :  { %v1996_v11 = vadd.f32 %v6066_v57, %v1995_v9  ;;  %v4543_v29 = vpop.f32.mrb[14].mxu0 }
 0x1da   :  { %v6074_v42 = vadd.f32 %v5002_v56, %v4543_v29  ;;  %v1879_v48 = vpop.f32.mrb[15].mxu0 }
 0x1db   :  { %v6076_v0 = vadd.f32 %v5004_v46, %v1879_v48  ;;  %v1997_v51 = vadd.f32 %v6064_v24, %v1996_v11  ;;  %v5022_v46 = vadd.f32 %v5990_v15, %v6009_v32  ;;  %v5024_v11 = vadd.f32 %v6009_v32, %v5992_v21 }
 0x1dd   :  { %v1998_v28 = vadd.f32 %v6076_v0, %v1997_v51  ;;  %v4546_v22 = vpop.f32.mrb[16].mxu0 }
 0x1de   :  { %v6084_v39 = vadd.f32 %v5006_v13, %v4546_v22  ;;  %v1891_v5 = vpop.f32.mrb[17].mxu0 }
 0x1df   :  { %v6086_v45 = vadd.f32 %v5008_v60, %v1891_v5  ;;  %v1999_v37 = vadd.f32 %v6074_v42, %v1998_v28  ;;  %v5026_v60 = vadd.f32 %v5994_v40, %v6009_v32  ;;  %v5028_v28 = vadd.f32 %v6009_v32, %v5996_v34 }
 0x1e1   :  { %v2000_v44 = vadd.f32 %v6086_v45, %v1999_v37  ;;  %v4549_v47 = vpop.f32.mrb[18].mxu0 }
 0x1e2   :  { %v6094_v6 = vadd.f32 %v5010_v3, %v4549_v47  ;;  %v1903_v62 = vpop.f32.mrb[19].mxu0 }
 0x1e3   :  { %v6096_v2 = vadd.f32 %v5012_v31, %v1903_v62  ;;  %v2001_v36 = vadd.f32 %v6084_v39, %v2000_v44  ;;  %v5030_v31 = vadd.f32 %v5998_v4, %v6009_v32  ;;  %v5032_v44 = vadd.f32 %v6009_v32, %v6000_v14 }
 0x1e5   :  { %v2002_v1 = vadd.f32 %v6096_v2, %v2001_v36  ;;  %v4552_v54 = vpop.f32.mrb[20].mxu0 }
 0x1e6   :  { %v6104_v50 = vadd.f32 %v5014_v43, %v4552_v54  ;;  %v1915_v12 = vpop.f32.mrb[21].mxu0 }
 0x1e7   :  { %v6106_v23 = vadd.f32 %v5016_v33, %v1915_v12  ;;  %v2003_v55 = vadd.f32 %v6094_v6, %v2002_v1  ;;  %v5034_v33 = vadd.f32 %v6002_v20, %v6009_v32  ;;  %v5036_v1 = vadd.f32 %v6009_v32, %v6004_v26 }
 0x1e9   :  { %v2004_v27 = vadd.f32 %v6106_v23, %v2003_v55  ;;  %v4555_v17 = vpop.f32.mrb[22].mxu0 }
 0x1ea   :  { %v6114_v8 = vadd.f32 %v5018_v7, %v4555_v17  ;;  %v1927_v58 = vpop.f32.mrb[23].mxu0 }
 0x1eb   :  { %v6116_v9 = vadd.f32 %v5020_v25, %v1927_v58  ;;  %v2005_v56 = vadd.f32 %v6104_v50, %v2004_v27 }
 0x1ed   :  { %v2006_v18 = vadd.f32 %v6116_v9, %v2005_v56  ;;  %v4558_v29 = vpop.f32.mrb[24].mxu0 }
 0x1ee   :  { %v6124_v52 = vadd.f32 %v5022_v46, %v4558_v29  ;;  %v1939_v48 = vpop.f32.mrb[25].mxu0 }
 0x1ef   :  { %v6126_v51 = vadd.f32 %v5024_v11, %v1939_v48  ;;  %v2007_v13 = vadd.f32 %v6114_v8, %v2006_v18  ;;  %v2034_v48 = vlaneseq }
 0x1f1   :  { %v2008_v15 = vadd.f32 %v6126_v51, %v2007_v13  ;;  %v4561_v22 = vpop.f32.mrb[26].mxu0 }
 0x1f2   :  { %v6134_v21 = vadd.f32 %v5026_v60, %v4561_v22  ;;  %v1951_v5 = vpop.f32.mrb[27].mxu0 }
 0x1f3   :  { %v6136_v37 = vadd.f32 %v5028_v28, %v1951_v5  ;;  %v2009_v3 = vadd.f32 %v6124_v52, %v2008_v15  ;;  %v6165_v28 = vshrl.u32 %v2034_v48, 7 }
 0x1f5   :  { %v2010_v40 = vadd.f32 %v6136_v37, %v2009_v3  ;;  %v4564_v47 = vpop.f32.mrb[28].mxu0  ;;  %v2036_v22 = vsub.s32 0, %v6165_v28 }
 0x1f6   :  { %v6144_v34 = vadd.f32 %v5030_v31, %v4564_v47  ;;  %v1963_v62 = vpop.f32.mrb[29].mxu0 }
 0x1f7   :  { %v6146_v36 = vadd.f32 %v5032_v44, %v1963_v62  ;;  %v2011_v43 = vadd.f32 %v6134_v21, %v2010_v40 }
 0x1f9   :  { %v2012_v4 = vadd.f32 %v6146_v36, %v2011_v43  ;;  %v4567_v54 = vpop.f32.mrb[30].mxu0 }
 0x1fa   :  { %v6154_v14 = vadd.f32 %v5034_v33, %v4567_v54  ;;  %v1975_v12 = vpop.f32.mrb[31].mxu0 }
 0x1fb   :  { %v6156_v55 = vadd.f32 %v5036_v1, %v1975_v12  ;;  %v2013_v7 = vadd.f32 %v6144_v34, %v2012_v4 }
 0x1fc   :  { %v2016_v27 = vsel %vm2015_vm1, %v6154_v14, 0.0 }
 0x1fd   :  { %v2014_v25 = vadd.f32 %v6156_v55, %v2013_v7 }
 0x1ff   :  { %v2017_v20 = vadd.f32 %v2016_v27, %v2014_v25 }
 0x201   :  { %v2018_v17 = vrot.slane %v2017_v20, 4 }
 0x203   :  { %v2019_v58 = vadd.f32 %v2018_v17, %v2017_v20 }
 0x205   :  { %v2020_v26 = vrot.slane %v2019_v58, 2 }
 0x207   :  { %v2021_v32 = vadd.f32 %v2020_v26, %v2019_v58 }
 0x209   :  { %v2022_v56 = vrot.slane %v2021_v32, 1 }
 0x20b   :  { %v2023_v46 = vadd.f32 %v2022_v56, %v2021_v32 }
 0x20d   :  { %2030 = vrot.lane.b32.xlu1 %v2023_v46, %s5218_s2  ;;  %2024 = vrot.lane.b32.xlu0 %v2023_v46, %s5219_s25 }
 0x211   :  { %2027 = vrot.lane.b32.xlu0 %v2023_v46, %s5220_s26 }
 0x27f   :  { %v2025_v11 = vpop.permute.xlu0 %2024  ;;  %v2031_v60 = vpop.permute.xlu1 %2030 }
 0x280   :  { %v2026_v18 = vadd.f32 %v2025_v11, %v2023_v46 }
 0x283   :  { %v2028_v29 = vpop.permute.xlu0 %2027 }
 0x284   :  { %v2029_v13 = vadd.f32 %v2028_v29, %v2026_v18 }
 0x286   :  { %v2032_v15 = vadd.f32 %v2031_v60, %v2029_v13 }
 0x288   :  { %v2033_v5 = vmul.f32 0.000996016, %v2032_v15 }
 0x28a   :  { %v6170_v3 = vrot.slane %v2033_v5, %v2036_v22 }
 0x28c   :  { %v6174_v31 = vsub.f32 %v6015_v10, %v6170_v3  ;;  %v6178_v44 = vsub.f32 %v6013_v19, %v6170_v3  ;;  %v6182_v40 = vsub.f32 %v6023_v35, %v6170_v3  ;;  %v6190_v43 = vsub.f32 %v6019_v30, %v6170_v3 }
 0x28d   :  { %v6194_v10 = vsub.f32 %v6030_v61, %v6170_v3  ;;  %v6200_v35 = vsub.f32 %v6028_v49, %v6170_v3  ;;  %v6206_v30 = vsub.f32 %v6038_v38, %v6170_v3  ;;  %v6212_v12 = vsub.f32 %v6036_v16, %v6170_v3 }
 0x28e   :  { %v2070_v47 = vmul.f32 %v6174_v31, %v6174_v31  ;;  %v2071_v62 = vmul.f32 %v6178_v44, %v6178_v44  ;;  %v2072_v19 = vmul.f32 %v6182_v40, %v6182_v40  ;;  %v2073_v1 = vmul.f32 %v6190_v43, %v6190_v43 }
 0x28f   :  { %v2074_v61 = vmul.f32 %v6194_v10, %v6194_v10  ;;  %v2075_v49 = vmul.f32 %v6200_v35, %v6200_v35  ;;  %v6218_v25 = vsub.f32 %v6048_v63, %v6170_v3  ;;  %v2076_v38 = vmul.f32 %v6206_v30, %v6206_v30 }
 0x290   :  { %v2102_v33 = vadd.f32 %v2071_v62, %v2070_v47  ;;  %v6224_v20 = vsub.f32 %v6046_v59, %v6170_v3  ;;  %v2077_v16 = vmul.f32 %v6212_v12, %v6212_v12  ;;  %v6230_v58 = vsub.f32 %v6056_v53, %v6170_v3 }
 0x291   :  { %v2078_v63 = vmul.f32 %v6218_v25, %v6218_v25  ;;  %v6236_v32 = vsub.f32 %v6054_v41, %v6170_v3  ;;  %v6242_v46 = vsub.f32 %v6066_v57, %v6170_v3  ;;  %v6248_v18 = vsub.f32 %v6064_v24, %v6170_v3 }
 0x292   :  { %v2103_v4 = vadd.f32 %v2102_v33, %v2072_v19  ;;  %v2079_v59 = vmul.f32 %v6224_v20, %v6224_v20  ;;  %v2080_v53 = vmul.f32 %v6230_v58, %v6230_v58  ;;  %v6254_v48 = vsub.f32 %v6076_v0, %v6170_v3 }
 0x293   :  { %v2081_v41 = vmul.f32 %v6236_v32, %v6236_v32  ;;  %v2082_v57 = vmul.f32 %v6242_v46, %v6242_v46  ;;  %v6260_v60 = vsub.f32 %v6074_v42, %v6170_v3  ;;  %v2083_v24 = vmul.f32 %v6248_v18, %v6248_v18 }
 0x294   :  { %v2104_v54 = vadd.f32 %v2103_v4, %v2073_v1  ;;  %v6266_v5 = vsub.f32 %v6086_v45, %v6170_v3  ;;  %v2084_v0 = vmul.f32 %v6254_v48, %v6254_v48  ;;  %v6272_v62 = vsub.f32 %v6084_v39, %v6170_v3 }
 0x295   :  { %v2085_v42 = vmul.f32 %v6260_v60, %v6260_v60  ;;  %v6278_v33 = vsub.f32 %v6096_v2, %v6170_v3  ;;  %v6284_v4 = vsub.f32 %v6094_v6, %v6170_v3 }
 0x296   :  { %v2105_v7 = vadd.f32 %v2104_v54, %v2074_v61  ;;  %v2086_v45 = vmul.f32 %v6266_v5, %v6266_v5  ;;  %v2087_v39 = vmul.f32 %v6272_v62, %v6272_v62  ;;  %v6290_v54 = vsub.f32 %v6106_v23, %v6170_v3 }
 0x297   :  { %v2088_v2 = vmul.f32 %v6278_v33, %v6278_v33  ;;  %v2089_v6 = vmul.f32 %v6284_v4, %v6284_v4 }
 0x298   :  { %v2106_v27 = vadd.f32 %v2105_v7, %v2075_v49  ;;  %v6296_v7 = vsub.f32 %v6104_v50, %v6170_v3  ;;  %v2090_v23 = vmul.f32 %v6290_v54, %v6290_v54 }
 0x29a   :  { %v2107_v17 = vadd.f32 %v2106_v27, %v2076_v38  ;;  %v6302_v27 = vsub.f32 %v6116_v9, %v6170_v3  ;;  %v2091_v50 = vmul.f32 %v6296_v7, %v6296_v7 }
 0x29c   :  { %v2108_v26 = vadd.f32 %v2107_v17, %v2077_v16  ;;  %v6308_v17 = vsub.f32 %v6114_v8, %v6170_v3  ;;  %v2092_v9 = vmul.f32 %v6302_v27, %v6302_v27 }
 0x29e   :  { %v2109_v56 = vadd.f32 %v2108_v26, %v2078_v63  ;;  %v6314_v26 = vsub.f32 %v6126_v51, %v6170_v3  ;;  %v2093_v8 = vmul.f32 %v6308_v17, %v6308_v17 }
 0x2a0   :  { %v2110_v11 = vadd.f32 %v2109_v56, %v2079_v59  ;;  %v6320_v56 = vsub.f32 %v6124_v52, %v6170_v3  ;;  %v2094_v51 = vmul.f32 %v6314_v26, %v6314_v26 }
 0x2a2   :  { %v2111_v29 = vadd.f32 %v2110_v11, %v2080_v53  ;;  %v6326_v11 = vsub.f32 %v6136_v37, %v6170_v3  ;;  %v2095_v52 = vmul.f32 %v6320_v56, %v6320_v56 }
 0x2a4   :  { %v2112_v13 = vadd.f32 %v2111_v29, %v2081_v41  ;;  %v6332_v29 = vsub.f32 %v6134_v21, %v6170_v3  ;;  %v2096_v37 = vmul.f32 %v6326_v11, %v6326_v11 }
 0x2a6   :  { %v2113_v15 = vadd.f32 %v2112_v13, %v2082_v57  ;;  %v6338_v13 = vsub.f32 %v6146_v36, %v6170_v3  ;;  %v2097_v21 = vmul.f32 %v6332_v29, %v6332_v29  ;;  %v6354_v36 = vsub.f32 %v6156_v55, %v6170_v3 }
 0x2a8   :  { %v2114_v47 = vadd.f32 %v2113_v15, %v2083_v24  ;;  %v6344_v15 = vsub.f32 %v6144_v34, %v6170_v3 }
 0x2aa   :  { %v2115_v19 = vadd.f32 %v2114_v47, %v2084_v0  ;;  %v6350_v47 = vsub.f32 %v6154_v14, %v6170_v3  ;;  %v2099_v34 = vmul.f32 %v6344_v15, %v6344_v15 }
 0x2ac   :  { %v2116_v1 = vadd.f32 %v2115_v19, %v2085_v42  ;;  %v2098_v42 = vmul.f32 %v6338_v13, %v6338_v13 }
 0x2ae   :  { %v2117_v61 = vadd.f32 %v2116_v1, %v2086_v45  ;;  %v2101_v1 = vmul.f32 %v6350_v47, %v6350_v47 }
 0x2b0   :  { %v2118_v49 = vadd.f32 %v2117_v61, %v2087_v39  ;;  %v2100_v39 = vmul.f32 %v6354_v36, %v6354_v36 }
 0x2b2   :  { %v2119_v38 = vadd.f32 %v2118_v49, %v2088_v2  ;;  %v2132_v2 = vsel %vm2015_vm1, %v2101_v1, 0.0 }
 0x2b4   :  { %v2120_v16 = vadd.f32 %v2119_v38, %v2089_v6 }
 0x2b6   :  { %v2121_v63 = vadd.f32 %v2120_v16, %v2090_v23 }
 0x2b8   :  { %v2122_v59 = vadd.f32 %v2121_v63, %v2091_v50 }
 0x2ba   :  { %v2123_v53 = vadd.f32 %v2122_v59, %v2092_v9 }
 0x2bc   :  { %v2124_v41 = vadd.f32 %v2123_v53, %v2093_v8 }
 0x2be   :  { %v2125_v57 = vadd.f32 %v2124_v41, %v2094_v51 }
 0x2c0   :  { %v2126_v24 = vadd.f32 %v2125_v57, %v2095_v52 }
 0x2c2   :  { %v2127_v0 = vadd.f32 %v2126_v24, %v2096_v37 }
 0x2c4   :  { %v2128_v19 = vadd.f32 %v2127_v0, %v2097_v21 }
 0x2c6   :  { %v2129_v45 = vadd.f32 %v2128_v19, %v2098_v42 }
 0x2c8   :  { %v2130_v14 = vadd.f32 %v2129_v45, %v2099_v34 }
 0x2ca   :  { %v2131_v61 = vadd.f32 %v2130_v14, %v2100_v39 }
 0x2cc   :  { %v2133_v55 = vadd.f32 %v2132_v2, %v2131_v61  ;;  %v6424_v2 = vld [vmem:[%s7254_s3 + $0x3] ss:$0 sm:$0xff] }
 0x2ce   :  { %v2134_v3 = vrot.slane %v2133_v55, 4 }
 0x2d0   :  { %v2135_v49 = vadd.f32 %v2134_v3, %v2133_v55 }
 0x2d2   :  { %v2136_v6 = vrot.slane %v2135_v49, 2 }
 0x2d4   :  { %v2137_v38 = vadd.f32 %v2136_v6, %v2135_v49 }
 0x2d6   :  { %v2138_v23 = vrot.slane %v2137_v38, 1 }
 0x2d8   :  { %v2139_v16 = vadd.f32 %v2138_v23, %v2137_v38  ;;  %v6431_v23 = vld [vmem:[%s7254_s3 + $0x4] ss:$0 sm:$0xff] }
 0x2da   :  { %2143 = vrot.lane.b32.xlu0 %v2139_v16, %s5220_s26  ;;  %2140 = vrot.lane.b32.xlu1 %v2139_v16, %s5219_s25 }
 0x2de   :  { %2146 = vrot.lane.b32.xlu1 %v2139_v16, %s5218_s2 }
 0x34c   :  { %v2141_v50 = vpop.permute.xlu1 %2140  ;;  %v2144_v9 = vpop.permute.xlu0 %2143 }
 0x34d   :  { %v2142_v63 = vadd.f32 %v2141_v50, %v2139_v16 }
 0x34f   :  { %v2145_v59 = vadd.f32 %v2144_v9, %v2142_v63 }
 0x350   :  { %v2147_v8 = vpop.permute.xlu1 %2146 }
 0x351   :  { %v2148_v53 = vadd.f32 %v2147_v8, %v2145_v59  ;;  %v6438_v8 = vld [vmem:[%s7254_s3 + $0x5] ss:$0 sm:$0xff] }
 0x353   :  { %v2149_v51 = vmul.f32 0.000996016, %v2148_v53 }
 0x355   :  { %v2150_v41 = vadd.f32 1e-05, %v2149_v51 }
 0x357   :  { %5186 = vrsqrt.f32 %v2150_v41 }
 0x361   :  { %v5187_v52 = vpop.eup %5186 }
 0x362   :  { %v2155_v57 = vrot.slane %v5187_v52, %v2036_v22 }
 0x364   :  { %v2156_v37 = vmul.f32 %v2155_v57, %v6174_v31  ;;  %v2157_v24 = vmul.f32 %v2155_v57, %v6178_v44  ;;  %v2158_v21 = vmul.f32 %v2155_v57, %v6182_v40  ;;  %v2159_v0 = vmul.f32 %v2155_v57, %v6190_v43 }
 0x365   :  { %v2160_v42 = vmul.f32 %v2155_v57, %v6194_v10  ;;  %v2161_v19 = vmul.f32 %v2155_v57, %v6200_v35  ;;  %v2162_v34 = vmul.f32 %v2155_v57, %v6206_v30  ;;  %v2163_v45 = vmul.f32 %v2155_v57, %v6212_v12 }
 0x366   :  { %v2164_v1 = vmul.f32 %v2155_v57, %v6218_v25  ;;  %v2165_v28 = vmul.f32 %v2155_v57, %v6224_v20  ;;  %v2166_v22 = vmul.f32 %v2155_v57, %v6230_v58  ;;  %v2167_v31 = vmul.f32 %v2155_v57, %v6236_v32  ;;  %2188 = vst [vmem:[#allocation2] sm:$0xff] %v2156_v37  ;;  %v6444_v37 = vld [vmem:[%s7254_s3 + $0x6] ss:$0 sm:$0xff] }
 0x367   :  { %2189 = vst [vmem:[#allocation2 + $0x8] sm:$0xff] %v2157_v24  ;;  %2190 = vst [vmem:[#allocation2 + $0x10] sm:$0xff] %v2158_v21  ;;  %v2168_v44 = vmul.f32 %v2155_v57, %v6242_v46  ;;  %v2169_v40 = vmul.f32 %v2155_v57, %v6248_v18  ;;  %v2170_v43 = vmul.f32 %v2155_v57, %v6254_v48 }
 0x368   :  { %2191 = vst [vmem:[#allocation2 + $0x18] sm:$0xff] %v2159_v0  ;;  %v2171_v10 = vmul.f32 %v2155_v57, %v6260_v60  ;;  %2192 = vst [vmem:[#allocation2 + $0x20] sm:$0xff] %v2160_v42  ;;  %v2172_v35 = vmul.f32 %v2155_v57, %v6266_v5  ;;  %v2173_v30 = vmul.f32 %v2155_v57, %v6272_v62 }
 0x369   :  { %2193 = vst [vmem:[#allocation2 + $0x28] sm:$0xff] %v2161_v19  ;;  %2194 = vst [vmem:[#allocation2 + $0x30] sm:$0xff] %v2162_v34  ;;  %v2174_v12 = vmul.f32 %v2155_v57, %v6278_v33  ;;  %v2175_v25 = vmul.f32 %v2155_v57, %v6284_v4  ;;  %v2176_v20 = vmul.f32 %v2155_v57, %v6290_v54  ;;  %v6451_v19 = vld [vmem:[%s7254_s3 + $0x7] ss:$0 sm:$0xff] }
 0x36a   :  { %2195 = vst [vmem:[#allocation2 + $0x38] sm:$0xff] %v2163_v45  ;;  %2198 = vst [vmem:[#allocation2 + $0x50] sm:$0xff] %v2166_v22  ;;  %v2177_v58 = vmul.f32 %v2155_v57, %v6296_v7  ;;  %v2178_v32 = vmul.f32 %v2155_v57, %v6302_v27  ;;  %v2179_v46 = vmul.f32 %v2155_v57, %v6308_v17  ;;  %v6405_v7 = vld [vmem:[%s7254_s3] ss:$0 sm:$0xff]  ;;  %v6410_v27 = vld [vmem:[%s7254_s3 + $0x1] ss:$0 sm:$0xff] }
 0x36b   :  { %2199 = vst [vmem:[#allocation2 + $0x58] sm:$0xff] %v2167_v31  ;;  %2196 = vst [vmem:[#allocation2 + $0x40] sm:$0xff] %v2164_v1  ;;  %v2180_v18 = vmul.f32 %v2155_v57, %v6314_v26  ;;  %v2181_v48 = vmul.f32 %v2155_v57, %v6320_v56  ;;  %v2182_v60 = vmul.f32 %v2155_v57, %v6326_v11  ;;  %v6415_v56 = vld [vmem:[%s7254_s3 + $0x2] ss:$0 sm:$0xff]  ;;  %v6457_v31 = vld [vmem:[%s7254_s3 + $0x8] ss:$0 sm:$0xff] }
 0x36c   :  { %2197 = vst [vmem:[#allocation2 + $0x48] sm:$0xff] %v2165_v28  ;;  %2200 = vst [vmem:[#allocation2 + $0x60] sm:$0xff] %v2168_v44  ;;  %v2183_v5 = vmul.f32 %v2155_v57, %v6332_v29  ;;  %v2184_v62 = vmul.f32 %v2155_v57, %v6338_v13  ;;  %v2185_v33 = vmul.f32 %v2155_v57, %v6344_v15 }
 0x36d   :  { %2201 = vst [vmem:[#allocation2 + $0x68] sm:$0xff] %v2169_v40  ;;  %2202 = vst [vmem:[#allocation2 + $0x70] sm:$0xff] %v2170_v43  ;;  %v2186_v4 = vmul.f32 %v2155_v57, %v6354_v36  ;;  %v2187_v54 = vmul.f32 %v2155_v57, %v6350_v47 }
 0x36e   :  { %2203 = vst [vmem:[#allocation2 + $0x78] sm:$0xff] %v2171_v10  ;;  %2204 = vst [vmem:[#allocation2 + $0x80] sm:$0xff] %v2172_v35  ;;  %v6464_v35 = vld [vmem:[%s7254_s3 + $0x9] ss:$0 sm:$0xff] }
 0x36f   :  { %2205 = vst [vmem:[#allocation2 + $0x88] sm:$0xff] %v2173_v30  ;;  %2206 = vst [vmem:[#allocation2 + $0x90] sm:$0xff] %v2174_v12 }
 0x370   :  { %2207 = vst [vmem:[#allocation2 + $0x98] sm:$0xff] %v2175_v25  ;;  %2208 = vst [vmem:[#allocation2 + $0xa0] sm:$0xff] %v2176_v20 }
 0x371   :  { %2209 = vst [vmem:[#allocation2 + $0xa8] sm:$0xff] %v2177_v58  ;;  %2210 = vst [vmem:[#allocation2 + $0xb0] sm:$0xff] %v2178_v32  ;;  %v6470_v58 = vld [vmem:[%s7254_s3 + $0xa] ss:$0 sm:$0xff] }
 0x372   :  { %2211 = vst [vmem:[#allocation2 + $0xb8] sm:$0xff] %v2179_v46  ;;  %2212 = vst [vmem:[#allocation2 + $0xc0] sm:$0xff] %v2180_v18  ;;  %v2220_v17 = vld [vmem:[#allocation2] ss:$10 sm:$0xff]  ;;  %v2237_v26 = vld [vmem:[#allocation2 + $0x1] ss:$10 sm:$0xff] }
 0x373   :  { %2213 = vst [vmem:[#allocation2 + $0xc8] sm:$0xff] %v2181_v48  ;;  %2214 = vst [vmem:[#allocation2 + $0xd0] sm:$0xff] %v2182_v60  ;;  %v2230_v11 = vmul.f32 %v6405_v7, %v2220_v17  ;;  %v2247_v29 = vmul.f32 %v6410_v27, %v2237_v26  ;;  %v2254_v13 = vld [vmem:[#allocation2 + $0x2] ss:$10 sm:$0xff]  ;;  %v2271_v49 = vld [vmem:[#allocation2 + $0x3] ss:$10 sm:$0xff] }
 0x374   :  { %2215 = vst [vmem:[#allocation2 + $0xd8] sm:$0xff] %v2183_v5  ;;  %2216 = vst [vmem:[#allocation2 + $0xe0] sm:$0xff] %v2184_v62  ;;  %v2264_v3 = vmul.f32 %v6415_v56, %v2254_v13  ;;  %v2281_v59 = vmul.f32 %v6424_v2, %v2271_v49  ;;  %v2288_v51 = vld [vmem:[#allocation2 + $0x4] ss:$10 sm:$0xff]  ;;  %v2305_v45 = vld [vmem:[#allocation2 + $0x5] ss:$10 sm:$0xff] }
 0x375   :  { %2217 = vst [vmem:[#allocation2 + $0xe8] sm:$0xff] %v2185_v33  ;;  %2218 = vst [vmem:[#allocation2 + $0xf0] sm:$0xff] %v2186_v4  ;;  %v2250_v61 = vadd.f32 %v2247_v29, %v2230_v11  ;;  %v2298_v42 = vmul.f32 %v6431_v23, %v2288_v51  ;;  %v2315_v10 = vmul.f32 %v6438_v8, %v2305_v45  ;;  %v2322_v46 = vld [vmem:[#allocation2 + $0x6] ss:$10 sm:$0xff]  ;;  %v2339_v5 = vld [vmem:[#allocation2 + $0x7] ss:$10 sm:$0xff] }
 0x376   :  { %2219 = vst [vmem:[#allocation2 + $0xf8] sm:$0x7] %v2187_v54  ;;  %v2222_v15 = vld [vmem:[#allocation2 + $0x50] ss:$10 sm:$0xff]  ;;  %v2239_v47 = vld [vmem:[#allocation2 + $0x51] ss:$10 sm:$0xff]  ;;  %v2332_v60 = vmul.f32 %v6444_v37, %v2322_v46  ;;  %v2349_v11 = vmul.f32 %v6451_v19, %v2339_v5 }
 0x377   :  { %v2256_v36 = vld [vmem:[#allocation2 + $0x52] ss:$10 sm:$0xff]  ;;  %v2231_v39 = vmul.f32 %v6405_v7, %v2222_v15  ;;  %v2248_v14 = vmul.f32 %v6410_v27, %v2239_v47  ;;  %v2273_v55 = vld [vmem:[#allocation2 + $0x53] ss:$10 sm:$0xff]  ;;  %v2267_v50 = vadd.f32 %v2264_v3, %v2250_v61  ;;  %v6477_v62 = vld [vmem:[%s7254_s3 + $0xb] ss:$0 sm:$0xff] }
 0x378   :  { %v2265_v38 = vmul.f32 %v6415_v56, %v2256_v36  ;;  %v2290_v16 = vld [vmem:[#allocation2 + $0x54] ss:$10 sm:$0xff]  ;;  %v2282_v9 = vmul.f32 %v6424_v2, %v2273_v55  ;;  %v2307_v53 = vld [vmem:[#allocation2 + $0x55] ss:$10 sm:$0xff]  ;;  %v6484_v29 = vld [vmem:[%s7254_s3 + $0xc] ss:$0 sm:$0xff] }
 0x379   :  { %v2251_v6 = vadd.f32 %v2248_v14, %v2231_v39  ;;  %v2299_v52 = vmul.f32 %v6431_v23, %v2290_v16  ;;  %v2284_v57 = vadd.f32 %v2281_v59, %v2267_v50  ;;  %v2324_v24 = vld [vmem:[#allocation2 + $0x56] ss:$10 sm:$0xff]  ;;  %v2316_v0 = vmul.f32 %v6438_v8, %v2307_v53  ;;  %v2341_v34 = vld [vmem:[#allocation2 + $0x57] ss:$10 sm:$0xff]  ;;  %v6491_v61 = vld [vmem:[%s7254_s3 + $0xd] ss:$0 sm:$0xff] }
 0x37a   :  { %v2333_v28 = vmul.f32 %v6444_v37, %v2324_v24  ;;  %v2358_v44 = vld [vmem:[#allocation2 + $0x58] ss:$10 sm:$0xff]  ;;  %v2350_v43 = vmul.f32 %v6451_v19, %v2341_v34  ;;  %v2375_v30 = vld [vmem:[#allocation2 + $0x59] ss:$10 sm:$0xff]  ;;  %v2356_v4 = vld [vmem:[#allocation2 + $0x8] ss:$10 sm:$0xff] }
 0x37b   :  { %v2268_v63 = vadd.f32 %v2265_v38, %v2251_v6  ;;  %v2301_v22 = vadd.f32 %v2298_v42, %v2284_v57  ;;  %v2367_v25 = vmul.f32 %v6457_v31, %v2358_v44  ;;  %v2392_v32 = vld [vmem:[#allocation2 + $0x5a] ss:$10 sm:$0xff]  ;;  %v2384_v48 = vmul.f32 %v6464_v35, %v2375_v30  ;;  %v2409_v33 = vld [vmem:[#allocation2 + $0x5b] ss:$10 sm:$0xff]  ;;  %v2390_v3 = vld [vmem:[#allocation2 + $0xa] ss:$10 sm:$0xff] }
 0x37c   :  { %v2401_v17 = vmul.f32 %v6470_v58, %v2392_v32  ;;  %v2426_v13 = vld [vmem:[#allocation2 + $0x5c] ss:$10 sm:$0xff]  ;;  %v2373_v15 = vld [vmem:[#allocation2 + $0x9] ss:$10 sm:$0xff]  ;;  %v2418_v36 = vmul.f32 %v6477_v62, %v2409_v33  ;;  %v2366_v14 = vmul.f32 %v6457_v31, %v2356_v4  ;;  %v2424_v24 = vld [vmem:[#allocation2 + $0xc] ss:$10 sm:$0xff] }
 0x37d   :  { %v2285_v41 = vadd.f32 %v2282_v9, %v2268_v63  ;;  %v2318_v20 = vadd.f32 %v2315_v10, %v2301_v22  ;;  %v2443_v55 = vld [vmem:[#allocation2 + $0x5d] ss:$10 sm:$0xff]  ;;  %v2435_v6 = vmul.f32 %v6484_v29, %v2426_v13  ;;  %v2383_v16 = vmul.f32 %v6464_v35, %v2373_v15  ;;  %v6498_v50 = vld [vmem:[%s7254_s3 + $0xe] ss:$0 sm:$0xff]  ;;  %v2460_v63 = vld [vmem:[#allocation2 + $0x5e] ss:$10 sm:$0xff] }
 0x37e   :  { %v2407_v9 = vld [vmem:[#allocation2 + $0xb] ss:$10 sm:$0xff]  ;;  %v2452_v53 = vmul.f32 %v6491_v61, %v2443_v55  ;;  %v6512_v45 = vld [vmem:[%s7254_s3 + $0x10] ss:$0 sm:$0xff]  ;;  %v2434_v30 = vmul.f32 %v6484_v29, %v2424_v24  ;;  %v2528_v46 = vld [vmem:[#allocation2 + $0x62] ss:$10 sm:$0xff] }
 0x37f   :  { %v2302_v21 = vadd.f32 %v2299_v52, %v2285_v41  ;;  %v2335_v26 = vadd.f32 %v2332_v60, %v2318_v20  ;;  %v2400_v41 = vmul.f32 %v6470_v58, %v2390_v3  ;;  %v6505_v52 = vld [vmem:[%s7254_s3 + $0xf] ss:$0 sm:$0xff]  ;;  %v2477_v57 = vld [vmem:[#allocation2 + $0x5f] ss:$10 sm:$0xff]  ;;  %v2417_v34 = vmul.f32 %v6477_v62, %v2407_v9 }
 0x380   :  { %v6517_v22 = vld [vmem:[%s7254_s3 + $0x11] ss:$0 sm:$0xff]  ;;  %v2224_v60 = vld [vmem:[#allocation2 + $0xa0] ss:$10 sm:$0x1f] }
 0x381   :  { %v2319_v1 = vadd.f32 %v2316_v0, %v2302_v21  ;;  %v2352_v39 = vadd.f32 %v2349_v11, %v2335_v26  ;;  %v2469_v0 = vmul.f32 %v6498_v50, %v2460_v63  ;;  %v2475_v33 = vld [vmem:[#allocation2 + $0xf] ss:$10 sm:$0xff]  ;;  %v2258_v13 = vld [vmem:[#allocation2 + $0xa2] ss:$10 sm:$0x1f] }
 0x382   :  { %v2241_v4 = vld [vmem:[#allocation2 + $0xa1] ss:$10 sm:$0x1f] }
 0x383   :  { %v2336_v40 = vadd.f32 %v2333_v28, %v2319_v1  ;;  %v2369_v38 = vadd.f32 %v2366_v14, %v2352_v39  ;;  %v2494_v1 = vld [vmem:[#allocation2 + $0x60] ss:$10 sm:$0xff]  ;;  %v2441_v28 = vld [vmem:[#allocation2 + $0xd] ss:$10 sm:$0xff]  ;;  %v2249_v15 = vmul.f32 %v6410_v27, %v2241_v4  ;;  %v2492_v39 = vld [vmem:[#allocation2 + $0x10] ss:$10 sm:$0xff] }
 0x384   :  { %v2503_v32 = vmul.f32 %v6512_v45, %v2494_v1  ;;  %v2562_v27 = vld [vmem:[#allocation2 + $0x64] ss:$10 sm:$0xff]  ;;  %v2579_v24 = vld [vmem:[#allocation2 + $0x65] ss:$10 sm:$0xff] }
 0x385   :  { %v2353_v12 = vadd.f32 %v2350_v43, %v2336_v40  ;;  %v2386_v51 = vadd.f32 %v2383_v16, %v2369_v38  ;;  %v2486_v40 = vmul.f32 %v6505_v52, %v2477_v57  ;;  %v2511_v43 = vld [vmem:[#allocation2 + $0x61] ss:$10 sm:$0xff]  ;;  %v2509_v38 = vld [vmem:[#allocation2 + $0x11] ss:$10 sm:$0xff]  ;;  %v2266_v16 = vmul.f32 %v6415_v56, %v2258_v13  ;;  %v6574_v13 = vld [vmem:[%s7254_s3 + $0x18] ss:$0 sm:$0xff] }
 0x386   :  { %v2520_v5 = vmul.f32 %v6517_v22, %v2511_v43  ;;  %v6550_v57 = vld [vmem:[%s7254_s3 + $0x15] ss:$0 sm:$0xff]  ;;  %v2596_v43 = vld [vmem:[#allocation2 + $0x66] ss:$10 sm:$0xff] }
 0x387   :  { %v2370_v18 = vadd.f32 %v2367_v25, %v2353_v12  ;;  %v2403_v42 = vadd.f32 %v2400_v41, %v2386_v51  ;;  %v6524_v12 = vld [vmem:[%s7254_s3 + $0x12] ss:$0 sm:$0xff]  ;;  %v2458_v25 = vld [vmem:[#allocation2 + $0xe] ss:$10 sm:$0xff]  ;;  %v2502_v51 = vmul.f32 %v6512_v45, %v2492_v39 }
 0x388   :  { %v2468_v11 = vmul.f32 %v6498_v50, %v2458_v25  ;;  %v2537_v55 = vmul.f32 %v6524_v12, %v2528_v46  ;;  %v2292_v41 = vld [vmem:[#allocation2 + $0xa4] ss:$10 sm:$0x1f] }
 0x389   :  { %v2387_v54 = vadd.f32 %v2384_v48, %v2370_v18  ;;  %v2420_v10 = vadd.f32 %v2417_v34, %v2403_v42  ;;  %v2451_v48 = vmul.f32 %v6491_v61, %v2441_v28  ;;  %v2519_v28 = vmul.f32 %v6517_v22, %v2509_v38  ;;  %v2647_v38 = vld [vmem:[#allocation2 + $0x69] ss:$10 sm:$0xff] }
 0x38b   :  { %v2404_v47 = vadd.f32 %v2401_v17, %v2387_v54  ;;  %v2437_v18 = vadd.f32 %v2434_v30, %v2420_v10  ;;  %v2232_v54 = vmul.f32 %v6405_v7, %v2224_v60  ;;  %v2485_v7 = vmul.f32 %v6505_v52, %v2475_v33  ;;  %v2543_v10 = vld [vmem:[#allocation2 + $0x13] ss:$10 sm:$0xff] }
 0x38c   :  { %v2300_v30 = vmul.f32 %v6431_v23, %v2292_v41  ;;  %v2613_v60 = vld [vmem:[#allocation2 + $0x67] ss:$10 sm:$0xff] }
 0x38d   :  { %v2421_v49 = vadd.f32 %v2418_v36, %v2404_v47  ;;  %v2454_v26 = vadd.f32 %v2451_v48, %v2437_v18  ;;  %v6535_v47 = vld [vmem:[%s7254_s3 + $0x13] ss:$0 sm:$0xff]  ;;  %v2545_v36 = vld [vmem:[#allocation2 + $0x63] ss:$10 sm:$0xff]  ;;  %v2252_v63 = vadd.f32 %v2249_v15, %v2232_v54  ;;  %v2630_v15 = vld [vmem:[#allocation2 + $0x68] ss:$10 sm:$0xff] }
 0x38e   :  { %v2326_v18 = vld [vmem:[#allocation2 + $0xa6] ss:$10 sm:$0x1f]  ;;  %v6566_v48 = vld [vmem:[%s7254_s3 + $0x17] ss:$0 sm:$0xff] }
 0x38f   :  { %v2438_v59 = vadd.f32 %v2435_v6, %v2421_v49  ;;  %v2471_v3 = vadd.f32 %v2468_v11, %v2454_v26  ;;  %v2275_v49 = vld [vmem:[#allocation2 + $0xa3] ss:$10 sm:$0x1f]  ;;  %v6542_v6 = vld [vmem:[%s7254_s3 + $0x14] ss:$0 sm:$0xff]  ;;  %v2269_v42 = vadd.f32 %v2266_v16, %v2252_v63  ;;  %v2553_v26 = vmul.f32 %v6535_v47, %v2543_v10 }
 0x390   :  { %v2571_v56 = vmul.f32 %v6542_v6, %v2562_v27  ;;  %v2343_v11 = vld [vmem:[#allocation2 + $0xa7] ss:$10 sm:$0x1f]  ;;  %v2334_v39 = vmul.f32 %v6444_v37, %v2326_v18  ;;  %v6582_v27 = vld [vmem:[%s7254_s3 + $0x19] ss:$0 sm:$0xff]  ;;  %v2639_v37 = vmul.f32 %v6574_v13, %v2630_v15 }
 0x391   :  { %v2455_v21 = vadd.f32 %v2452_v53, %v2438_v59  ;;  %v2554_v59 = vmul.f32 %v6535_v47, %v2545_v36  ;;  %v2488_v53 = vadd.f32 %v2485_v7, %v2471_v3  ;;  %v2577_v36 = vld [vmem:[#allocation2 + $0x15] ss:$10 sm:$0xff]  ;;  %v2594_v16 = vld [vmem:[#allocation2 + $0x16] ss:$10 sm:$0xff]  ;;  %v2351_v63 = vmul.f32 %v6451_v19, %v2343_v11 }
 0x392   :  { %v2377_v41 = vld [vmem:[#allocation2 + $0xa9] ss:$10 sm:$0x1f]  ;;  %v2656_v19 = vmul.f32 %v6582_v27, %v2647_v38  ;;  %v2428_v11 = vld [vmem:[#allocation2 + $0xac] ss:$10 sm:$0x1f] }
 0x393   :  { %v2472_v44 = vadd.f32 %v2469_v0, %v2455_v21  ;;  %v2526_v21 = vld [vmem:[#allocation2 + $0x12] ss:$10 sm:$0xff]  ;;  %v2283_v0 = vmul.f32 %v6424_v2, %v2275_v49  ;;  %v2505_v1 = vadd.f32 %v2502_v51, %v2488_v53  ;;  %v2588_v2 = vmul.f32 %v6550_v57, %v2579_v24  ;;  %v2681_v10 = vld [vmem:[#allocation2 + $0x6b] ss:$10 sm:$0xff]  ;;  %v6622_v38 = vld [vmem:[%s7254_s3 + $0x1e] ss:$0 sm:$0xff] }
 0x394   :  { %v2536_v46 = vmul.f32 %v6524_v12, %v2526_v21  ;;  %v2360_v49 = vld [vmem:[#allocation2 + $0xa8] ss:$10 sm:$0x1f]  ;;  %v2587_v51 = vmul.f32 %v6550_v57, %v2577_v36  ;;  %v6590_v24 = vld [vmem:[%s7254_s3 + $0x1a] ss:$0 sm:$0xff] }
 0x395   :  { %v2489_v20 = vadd.f32 %v2486_v40, %v2472_v44  ;;  %v2309_v44 = vld [vmem:[#allocation2 + $0xa5] ss:$10 sm:$0x1f]  ;;  %v6558_v40 = vld [vmem:[%s7254_s3 + $0x16] ss:$0 sm:$0xff]  ;;  %v2286_v25 = vadd.f32 %v2283_v0, %v2269_v42  ;;  %v2368_v42 = vmul.f32 %v6457_v31, %v2360_v49 }
 0x396   :  { %v2317_v33 = vmul.f32 %v6438_v8, %v2309_v44  ;;  %v2605_v23 = vmul.f32 %v6558_v40, %v2596_v43  ;;  %v2622_v8 = vmul.f32 %v6566_v48, %v2613_v60  ;;  %v2664_v21 = vld [vmem:[#allocation2 + $0x6a] ss:$10 sm:$0xff]  ;;  %v2611_v0 = vld [vmem:[#allocation2 + $0x17] ss:$10 sm:$0xff]  ;;  %v6598_v43 = vld [vmem:[%s7254_s3 + $0x1b] ss:$0 sm:$0xff] }
 0x397   :  { %v2506_v17 = vadd.f32 %v2503_v32, %v2489_v20  ;;  %v2522_v32 = vadd.f32 %v2519_v28, %v2505_v1  ;;  %v2303_v4 = vadd.f32 %v2300_v30, %v2286_v25  ;;  %v2604_v28 = vmul.f32 %v6558_v40, %v2594_v16  ;;  %v2394_v44 = vld [vmem:[#allocation2 + $0xaa] ss:$10 sm:$0x1f]  ;;  %v2411_v18 = vld [vmem:[#allocation2 + $0xab] ss:$10 sm:$0x1f] }
 0x398   :  { %v2628_v30 = vld [vmem:[#allocation2 + $0x18] ss:$10 sm:$0xff]  ;;  %v2385_v25 = vmul.f32 %v6464_v35, %v2377_v41  ;;  %v2673_v31 = vmul.f32 %v6590_v24, %v2664_v21  ;;  %v6606_v60 = vld [vmem:[%s7254_s3 + $0x1c] ss:$0 sm:$0xff]  ;;  %v2690_v35 = vmul.f32 %v6598_v43, %v2681_v10  ;;  %v6614_v15 = vld [vmem:[%s7254_s3 + $0x1d] ss:$0 sm:$0xff] }
 0x399   :  { %v2523_v14 = vadd.f32 %v2520_v5, %v2506_v17  ;;  %v2560_v5 = vld [vmem:[#allocation2 + $0x14] ss:$10 sm:$0xff]  ;;  %v2539_v17 = vadd.f32 %v2536_v46, %v2522_v32  ;;  %v2621_v46 = vmul.f32 %v6566_v48, %v2611_v0  ;;  %v2715_v36 = vld [vmem:[#allocation2 + $0x6d] ss:$10 sm:$0xff]  ;;  %v6638_v10 = vld [vmem:[%s7254_s3 + $0x20] ss:$0 sm:$0xff] }
 0x39a   :  { %v2570_v7 = vmul.f32 %v6542_v6, %v2560_v5  ;;  %v2698_v5 = vld [vmem:[#allocation2 + $0x6c] ss:$10 sm:$0xff]  ;;  %v2445_v49 = vld [vmem:[#allocation2 + $0xad] ss:$10 sm:$0x1f] }
 0x39b   :  { %v2540_v9 = vadd.f32 %v2537_v55, %v2523_v14  ;;  %v2320_v14 = vadd.f32 %v2317_v33, %v2303_v4  ;;  %v2556_v3 = vadd.f32 %v2553_v26, %v2539_v17  ;;  %v2645_v33 = vld [vmem:[#allocation2 + $0x19] ss:$10 sm:$0xff]  ;;  %v2402_v4 = vmul.f32 %v6470_v58, %v2394_v44  ;;  %v2732_v16 = vld [vmem:[#allocation2 + $0x6e] ss:$10 sm:$0xff] }
 0x39c   :  { %v2638_v26 = vmul.f32 %v6574_v13, %v2628_v30  ;;  %v2707_v58 = vmul.f32 %v6606_v60, %v2698_v5  ;;  %v2462_v41 = vld [vmem:[#allocation2 + $0xae] ss:$10 sm:$0x1f]  ;;  %v6630_v21 = vld [vmem:[%s7254_s3 + $0x1f] ss:$0 sm:$0xff] }
 0x39d   :  { %v2557_v34 = vadd.f32 %v2554_v59, %v2540_v9  ;;  %v2337_v9 = vadd.f32 %v2334_v39, %v2320_v14  ;;  %v2573_v53 = vadd.f32 %v2570_v7, %v2556_v3  ;;  %v2662_v39 = vld [vmem:[#allocation2 + $0x1a] ss:$10 sm:$0xff]  ;;  %v2419_v14 = vmul.f32 %v6477_v62, %v2411_v18  ;;  %v2749_v0 = vld [vmem:[#allocation2 + $0x6f] ss:$10 sm:$0xff] }
 0x39e   :  { %v2655_v7 = vmul.f32 %v6582_v27, %v2645_v33  ;;  %v2724_v62 = vmul.f32 %v6614_v15, %v2715_v36  ;;  %v2479_v44 = vld [vmem:[#allocation2 + $0xaf] ss:$10 sm:$0x1f]  ;;  %v2766_v30 = vld [vmem:[#allocation2 + $0x70] ss:$10 sm:$0xff] }
 0x39f   :  { %v2574_v20 = vadd.f32 %v2571_v56, %v2557_v34  ;;  %v2354_v34 = vadd.f32 %v2351_v63, %v2337_v9  ;;  %v2590_v1 = vadd.f32 %v2587_v51, %v2573_v53  ;;  %v2679_v63 = vld [vmem:[#allocation2 + $0x1b] ss:$10 sm:$0xff]  ;;  %v2436_v9 = vmul.f32 %v6484_v29, %v2428_v11  ;;  %v2496_v18 = vld [vmem:[#allocation2 + $0xb0] ss:$10 sm:$0x1f] }
 0x3a0   :  { %v2672_v51 = vmul.f32 %v6590_v24, %v2662_v39  ;;  %v2741_v29 = vmul.f32 %v6622_v38, %v2732_v16  ;;  %v6646_v5 = vld [vmem:[%s7254_s3 + $0x21] ss:$0 sm:$0xff]  ;;  %v2783_v33 = vld [vmem:[#allocation2 + $0x71] ss:$10 sm:$0xff]  ;;  %v6654_v36 = vld [vmem:[%s7254_s3 + $0x22] ss:$0 sm:$0xff] }
 0x3a1   :  { %v2591_v54 = vadd.f32 %v2588_v2, %v2574_v20  ;;  %v2371_v20 = vadd.f32 %v2368_v42, %v2354_v34  ;;  %v2607_v32 = vadd.f32 %v2604_v28, %v2590_v1  ;;  %v2696_v42 = vld [vmem:[#allocation2 + $0x1c] ss:$10 sm:$0xff]  ;;  %v2453_v34 = vmul.f32 %v6491_v61, %v2445_v49  ;;  %v2513_v11 = vld [vmem:[#allocation2 + $0xb1] ss:$10 sm:$0x1f] }
 0x3a2   :  { %v2689_v28 = vmul.f32 %v6598_v43, %v2679_v63  ;;  %v2758_v61 = vmul.f32 %v6630_v21, %v2749_v0  ;;  %v2800_v39 = vld [vmem:[#allocation2 + $0x72] ss:$10 sm:$0xff]  ;;  %v6662_v16 = vld [vmem:[%s7254_s3 + $0x23] ss:$0 sm:$0xff]  ;;  %v2817_v63 = vld [vmem:[#allocation2 + $0x73] ss:$10 sm:$0xff] }
 0x3a3   :  { %v2608_v55 = vadd.f32 %v2605_v23, %v2591_v54  ;;  %v2388_v54 = vadd.f32 %v2385_v25, %v2371_v20  ;;  %v2624_v17 = vadd.f32 %v2621_v46, %v2607_v32  ;;  %v2713_v25 = vld [vmem:[#allocation2 + $0x1d] ss:$10 sm:$0xff]  ;;  %v2470_v20 = vmul.f32 %v6498_v50, %v2462_v41  ;;  %v2530_v49 = vld [vmem:[#allocation2 + $0xb2] ss:$10 sm:$0x1f] }
 0x3a4   :  { %v2706_v46 = vmul.f32 %v6606_v60, %v2696_v42  ;;  %v2775_v50 = vmul.f32 %v6638_v10, %v2766_v30  ;;  %v2547_v41 = vld [vmem:[#allocation2 + $0xb3] ss:$10 sm:$0x1f]  ;;  %v6670_v0 = vld [vmem:[%s7254_s3 + $0x24] ss:$0 sm:$0xff] }
 0x3a5   :  { %v2625_v59 = vadd.f32 %v2622_v8, %v2608_v55  ;;  %v2405_v55 = vadd.f32 %v2402_v4, %v2388_v54  ;;  %v2641_v3 = vadd.f32 %v2638_v26, %v2624_v17  ;;  %v2730_v4 = vld [vmem:[#allocation2 + $0x1e] ss:$10 sm:$0xff]  ;;  %v2487_v54 = vmul.f32 %v6505_v52, %v2479_v44  ;;  %v6678_v30 = vld [vmem:[%s7254_s3 + $0x25] ss:$0 sm:$0xff] }
 0x3a6   :  { %v2723_v26 = vmul.f32 %v6614_v15, %v2713_v25  ;;  %v2792_v52 = vmul.f32 %v6646_v5, %v2783_v33  ;;  %v2834_v42 = vld [vmem:[#allocation2 + $0x74] ss:$10 sm:$0xff]  ;;  %v2851_v25 = vld [vmem:[#allocation2 + $0x75] ss:$10 sm:$0xff] }
 0x3a7   :  { %v2642_v56 = vadd.f32 %v2639_v37, %v2625_v59  ;;  %v2422_v59 = vadd.f32 %v2419_v14, %v2405_v55  ;;  %v2658_v53 = vadd.f32 %v2655_v7, %v2641_v3  ;;  %v2747_v14 = vld [vmem:[#allocation2 + $0x1f] ss:$10 sm:$0xff]  ;;  %v2504_v55 = vmul.f32 %v6512_v45, %v2496_v18  ;;  %v2564_v44 = vld [vmem:[#allocation2 + $0xb4] ss:$10 sm:$0x1f] }
 0x3a8   :  { %v2740_v7 = vmul.f32 %v6622_v38, %v2730_v4  ;;  %v2809_v45 = vmul.f32 %v6654_v36, %v2800_v39  ;;  %v2581_v18 = vld [vmem:[#allocation2 + $0xb5] ss:$10 sm:$0x1f]  ;;  %v2868_v33 = vld [vmem:[#allocation2 + $0x76] ss:$10 sm:$0xff] }
 0x3a9   :  { %v2659_v2 = vadd.f32 %v2656_v19, %v2642_v56  ;;  %v2439_v56 = vadd.f32 %v2436_v9, %v2422_v59  ;;  %v2675_v1 = vadd.f32 %v2672_v51, %v2658_v53  ;;  %v2764_v9 = vld [vmem:[#allocation2 + $0x20] ss:$10 sm:$0xff]  ;;  %v2521_v59 = vmul.f32 %v6517_v22, %v2513_v11  ;;  %v2885_v39 = vld [vmem:[#allocation2 + $0x77] ss:$10 sm:$0xff] }
 0x3aa   :  { %v2757_v51 = vmul.f32 %v6630_v21, %v2747_v14  ;;  %v2826_v22 = vmul.f32 %v6662_v16, %v2817_v63  ;;  %v6686_v4 = vld [vmem:[%s7254_s3 + $0x26] ss:$0 sm:$0xff]  ;;  %v2598_v11 = vld [vmem:[#allocation2 + $0xb6] ss:$10 sm:$0x1f] }
 0x3ab   :  { %v2676_v23 = vadd.f32 %v2673_v31, %v2659_v2  ;;  %v2456_v2 = vadd.f32 %v2453_v34, %v2439_v56  ;;  %v2692_v32 = vadd.f32 %v2689_v28, %v2675_v1  ;;  %v2781_v34 = vld [vmem:[#allocation2 + $0x21] ss:$10 sm:$0xff]  ;;  %v2538_v56 = vmul.f32 %v6524_v12, %v2530_v49  ;;  %v2902_v63 = vld [vmem:[#allocation2 + $0x78] ss:$10 sm:$0xff] }
 0x3ac   :  { %v2774_v28 = vmul.f32 %v6638_v10, %v2764_v9  ;;  %v2843_v12 = vmul.f32 %v6670_v0, %v2834_v42  ;;  %v6694_v14 = vld [vmem:[%s7254_s3 + $0x27] ss:$0 sm:$0xff]  ;;  %v2615_v49 = vld [vmem:[#allocation2 + $0xb7] ss:$10 sm:$0x1f] }
 0x3ad   :  { %v2693_v8 = vadd.f32 %v2690_v35, %v2676_v23  ;;  %v2473_v23 = vadd.f32 %v2470_v20, %v2456_v2  ;;  %v2709_v17 = vadd.f32 %v2706_v46, %v2692_v32  ;;  %v2798_v20 = vld [vmem:[#allocation2 + $0x22] ss:$10 sm:$0xff]  ;;  %v2555_v2 = vmul.f32 %v6535_v47, %v2547_v41  ;;  %v2919_v42 = vld [vmem:[#allocation2 + $0x79] ss:$10 sm:$0xff] }
 0x3ae   :  { %v2791_v46 = vmul.f32 %v6646_v5, %v2781_v34  ;;  %v2860_v47 = vmul.f32 %v6678_v30, %v2851_v25  ;;  %v6702_v9 = vld [vmem:[%s7254_s3 + $0x28] ss:$0 sm:$0xff]  ;;  %v2632_v41 = vld [vmem:[#allocation2 + $0xb8] ss:$10 sm:$0x1f] }
 0x3af   :  { %v2710_v37 = vadd.f32 %v2707_v58, %v2693_v8  ;;  %v2490_v8 = vadd.f32 %v2487_v54, %v2473_v23  ;;  %v2726_v3 = vadd.f32 %v2723_v26, %v2709_v17  ;;  %v2815_v54 = vld [vmem:[#allocation2 + $0x23] ss:$10 sm:$0xff]  ;;  %v2572_v23 = vmul.f32 %v6542_v6, %v2564_v44  ;;  %v2936_v25 = vld [vmem:[#allocation2 + $0x7a] ss:$10 sm:$0xff] }
 0x3b0   :  { %v2808_v26 = vmul.f32 %v6654_v36, %v2798_v20  ;;  %v2877_v6 = vmul.f32 %v6686_v4, %v2868_v33  ;;  %v6710_v34 = vld [vmem:[%s7254_s3 + $0x29] ss:$0 sm:$0xff]  ;;  %v2649_v44 = vld [vmem:[#allocation2 + $0xb9] ss:$10 sm:$0x1f] }
 0x3b1   :  { %v2727_v19 = vadd.f32 %v2724_v62, %v2710_v37  ;;  %v2507_v37 = vadd.f32 %v2504_v55, %v2490_v8  ;;  %v2743_v53 = vadd.f32 %v2740_v7, %v2726_v3  ;;  %v2832_v55 = vld [vmem:[#allocation2 + $0x24] ss:$10 sm:$0xff]  ;;  %v2589_v8 = vmul.f32 %v6550_v57, %v2581_v18  ;;  %v2953_v33 = vld [vmem:[#allocation2 + $0x7b] ss:$10 sm:$0xff] }
 0x3b2   :  { %v2825_v7 = vmul.f32 %v6662_v16, %v2815_v54  ;;  %v2894_v57 = vmul.f32 %v6694_v14, %v2885_v39  ;;  %v6718_v20 = vld [vmem:[%s7254_s3 + $0x2a] ss:$0 sm:$0xff]  ;;  %v2666_v18 = vld [vmem:[#allocation2 + $0xba] ss:$10 sm:$0x1f] }
 0x3b3   :  { %v2744_v31 = vadd.f32 %v2741_v29, %v2727_v19  ;;  %v2524_v19 = vadd.f32 %v2521_v59, %v2507_v37  ;;  %v2760_v1 = vadd.f32 %v2757_v51, %v2743_v53  ;;  %v2849_v59 = vld [vmem:[#allocation2 + $0x25] ss:$10 sm:$0xff]  ;;  %v2606_v37 = vmul.f32 %v6558_v40, %v2598_v11  ;;  %v2970_v39 = vld [vmem:[#allocation2 + $0x7c] ss:$10 sm:$0xff] }
 0x3b4   :  { %v2842_v51 = vmul.f32 %v6670_v0, %v2832_v55  ;;  %v2911_v40 = vmul.f32 %v6702_v9, %v2902_v63  ;;  %v6726_v54 = vld [vmem:[%s7254_s3 + $0x2b] ss:$0 sm:$0xff]  ;;  %v2683_v11 = vld [vmem:[#allocation2 + $0xbb] ss:$10 sm:$0x1f] }
 0x3b5   :  { %v2761_v35 = vadd.f32 %v2758_v61, %v2744_v31  ;;  %v2541_v31 = vadd.f32 %v2538_v56, %v2524_v19  ;;  %v2777_v32 = vadd.f32 %v2774_v28, %v2760_v1  ;;  %v2866_v56 = vld [vmem:[#allocation2 + $0x26] ss:$10 sm:$0xff]  ;;  %v2623_v19 = vmul.f32 %v6566_v48, %v2615_v49  ;;  %v2987_v63 = vld [vmem:[#allocation2 + $0x7d] ss:$10 sm:$0xff] }
 0x3b6   :  { %v2859_v28 = vmul.f32 %v6678_v30, %v2849_v59  ;;  %v2928_v48 = vmul.f32 %v6710_v34, %v2919_v42  ;;  %v6734_v55 = vld [vmem:[%s7254_s3 + $0x2c] ss:$0 sm:$0xff]  ;;  %v2700_v49 = vld [vmem:[#allocation2 + $0xbc] ss:$10 sm:$0x1f] }
 0x3b7   :  { %v2778_v58 = vadd.f32 %v2775_v50, %v2761_v35  ;;  %v2558_v35 = vadd.f32 %v2555_v2, %v2541_v31  ;;  %v2794_v17 = vadd.f32 %v2791_v46, %v2777_v32  ;;  %v2883_v2 = vld [vmem:[#allocation2 + $0x27] ss:$10 sm:$0xff]  ;;  %v2640_v31 = vmul.f32 %v6574_v13, %v2632_v41  ;;  %v3004_v42 = vld [vmem:[#allocation2 + $0x7e] ss:$10 sm:$0xff] }
 0x3b8   :  { %v2876_v46 = vmul.f32 %v6686_v4, %v2866_v56  ;;  %v2945_v13 = vmul.f32 %v6718_v20, %v2936_v25  ;;  %v6742_v59 = vld [vmem:[%s7254_s3 + $0x2d] ss:$0 sm:$0xff]  ;;  %v2717_v41 = vld [vmem:[#allocation2 + $0xbd] ss:$10 sm:$0x1f] }
 0x3b9   :  { %v2795_v62 = vadd.f32 %v2792_v52, %v2778_v58  ;;  %v2575_v58 = vadd.f32 %v2572_v23, %v2558_v35  ;;  %v2811_v3 = vadd.f32 %v2808_v26, %v2794_v17  ;;  %v2900_v23 = vld [vmem:[#allocation2 + $0x28] ss:$10 sm:$0xff]  ;;  %v2657_v35 = vmul.f32 %v6582_v27, %v2649_v44  ;;  %v3021_v25 = vld [vmem:[#allocation2 + $0x7f] ss:$10 sm:$0xff] }
 0x3ba   :  { %v2893_v26 = vmul.f32 %v6694_v14, %v2883_v2  ;;  %v2962_v27 = vmul.f32 %v6726_v54, %v2953_v33  ;;  %v6750_v56 = vld [vmem:[%s7254_s3 + $0x2e] ss:$0 sm:$0xff]  ;;  %v2734_v44 = vld [vmem:[#allocation2 + $0xbe] ss:$10 sm:$0x1f] }
 0x3bb   :  { %v2812_v29 = vadd.f32 %v2809_v45, %v2795_v62  ;;  %v2592_v62 = vadd.f32 %v2589_v8, %v2575_v58  ;;  %v2828_v53 = vadd.f32 %v2825_v7, %v2811_v3  ;;  %v2917_v8 = vld [vmem:[#allocation2 + $0x29] ss:$10 sm:$0xff]  ;;  %v2674_v58 = vmul.f32 %v6590_v24, %v2666_v18  ;;  %v3038_v33 = vld [vmem:[#allocation2 + $0x80] ss:$10 sm:$0xff] }
 0x3bc   :  { %v2910_v7 = vmul.f32 %v6702_v9, %v2900_v23  ;;  %v2979_v24 = vmul.f32 %v6734_v55, %v2970_v39  ;;  %v6758_v2 = vld [vmem:[%s7254_s3 + $0x2f] ss:$0 sm:$0xff]  ;;  %v2751_v18 = vld [vmem:[#allocation2 + $0xbf] ss:$10 sm:$0x1f] }
 0x3bd   :  { %v2829_v61 = vadd.f32 %v2826_v22, %v2812_v29  ;;  %v2609_v29 = vadd.f32 %v2606_v37, %v2592_v62  ;;  %v2845_v1 = vadd.f32 %v2842_v51, %v2828_v53  ;;  %v2934_v37 = vld [vmem:[#allocation2 + $0x2a] ss:$10 sm:$0xff]  ;;  %v2691_v62 = vmul.f32 %v6598_v43, %v2683_v11  ;;  %v3055_v39 = vld [vmem:[#allocation2 + $0x81] ss:$10 sm:$0xff] }
 0x3be   :  { %v2927_v51 = vmul.f32 %v6710_v34, %v2917_v8  ;;  %v2996_v43 = vmul.f32 %v6742_v59, %v2987_v63  ;;  %v6766_v23 = vld [vmem:[%s7254_s3 + $0x30] ss:$0 sm:$0xff]  ;;  %v2768_v11 = vld [vmem:[#allocation2 + $0xc0] ss:$10 sm:$0x1f] }
 0x3bf   :  { %v2846_v50 = vadd.f32 %v2843_v12, %v2829_v61  ;;  %v2626_v61 = vadd.f32 %v2623_v19, %v2609_v29  ;;  %v2862_v32 = vadd.f32 %v2859_v28, %v2845_v1  ;;  %v2951_v19 = vld [vmem:[#allocation2 + $0x2b] ss:$10 sm:$0xff]  ;;  %v2708_v29 = vmul.f32 %v6606_v60, %v2700_v49 }
 0x3c0   :  { %v2944_v28 = vmul.f32 %v6718_v20, %v2934_v37  ;;  %v3013_v60 = vmul.f32 %v6750_v56, %v3004_v42  ;;  %v6774_v8 = vld [vmem:[%s7254_s3 + $0x31] ss:$0 sm:$0xff]  ;;  %v2785_v49 = vld [vmem:[#allocation2 + $0xc1] ss:$10 sm:$0x1f]  ;;  %v2776_v37 = vmul.f32 %v6638_v10, %v2768_v11 }
 0x3c1   :  { %v2863_v52 = vadd.f32 %v2860_v47, %v2846_v50  ;;  %v2643_v50 = vadd.f32 %v2640_v31, %v2626_v61  ;;  %v2879_v17 = vadd.f32 %v2876_v46, %v2862_v32  ;;  %v2968_v31 = vld [vmem:[#allocation2 + $0x2c] ss:$10 sm:$0xff]  ;;  %v2725_v61 = vmul.f32 %v6614_v15, %v2717_v41  ;;  %v3019_v63 = vld [vmem:[#allocation2 + $0x2f] ss:$10 sm:$0xff] }
 0x3c2   :  { %v2961_v46 = vmul.f32 %v6726_v54, %v2951_v19  ;;  %v3030_v15 = vmul.f32 %v6758_v2, %v3021_v25  ;;  %v2793_v41 = vmul.f32 %v6646_v5, %v2785_v49  ;;  %v2989_v49 = vld [vmem:[#allocation2 + $0xcd] ss:$10 sm:$0x1f] }
 0x3c3   :  { %v2880_v45 = vadd.f32 %v2877_v6, %v2863_v52  ;;  %v2660_v52 = vadd.f32 %v2657_v35, %v2643_v50  ;;  %v2896_v3 = vadd.f32 %v2893_v26, %v2879_v17  ;;  %v2985_v35 = vld [vmem:[#allocation2 + $0x2d] ss:$10 sm:$0xff]  ;;  %v2742_v50 = vmul.f32 %v6622_v38, %v2734_v44 }
 0x3c4   :  { %v2978_v26 = vmul.f32 %v6734_v55, %v2968_v31  ;;  %v3047_v38 = vmul.f32 %v6766_v23, %v3038_v33  ;;  %v2836_v31 = vld [vmem:[#allocation2 + $0xc4] ss:$10 sm:$0x1f] }
 0x3c5   :  { %v2897_v22 = vadd.f32 %v2894_v57, %v2880_v45  ;;  %v2677_v45 = vadd.f32 %v2674_v58, %v2660_v52  ;;  %v2913_v53 = vadd.f32 %v2910_v7, %v2896_v3  ;;  %v3002_v58 = vld [vmem:[#allocation2 + $0x2e] ss:$10 sm:$0xff]  ;;  %v2759_v52 = vmul.f32 %v6630_v21, %v2751_v18 }
 0x3c6   :  { %v2995_v7 = vmul.f32 %v6742_v59, %v2985_v35  ;;  %v3036_v21 = vld [vmem:[#allocation2 + $0x30] ss:$10 sm:$0xff] }
 0x3c7   :  { %v2914_v12 = vadd.f32 %v2911_v40, %v2897_v22  ;;  %v2694_v22 = vadd.f32 %v2691_v62, %v2677_v45  ;;  %v2930_v1 = vadd.f32 %v2927_v51, %v2913_v53  ;;  %v3012_v53 = vmul.f32 %v6750_v56, %v3002_v58  ;;  %v2802_v51 = vld [vmem:[#allocation2 + $0xc2] ss:$10 sm:$0x1f]  ;;  %v2870_v18 = vld [vmem:[#allocation2 + $0xc6] ss:$10 sm:$0x1f] }
 0x3c8   :  { %v2810_v10 = vmul.f32 %v6654_v36, %v2802_v51  ;;  %v3046_v25 = vmul.f32 %v6766_v23, %v3036_v21  ;;  %v3057_v51 = vld [vmem:[#allocation2 + $0xd1] ss:$10 sm:$0x1f] }
 0x3c9   :  { %v2931_v47 = vadd.f32 %v2928_v48, %v2914_v12  ;;  %v2711_v12 = vadd.f32 %v2708_v29, %v2694_v22  ;;  %v2947_v32 = vadd.f32 %v2944_v28, %v2930_v1  ;;  %v3029_v22 = vmul.f32 %v6758_v2, %v3019_v63 }
 0x3cb   :  { %v2948_v6 = vadd.f32 %v2945_v13, %v2931_v47  ;;  %v2728_v47 = vadd.f32 %v2725_v61, %v2711_v12  ;;  %v2964_v17 = vadd.f32 %v2961_v46, %v2947_v32  ;;  %v2844_v32 = vmul.f32 %v6670_v0, %v2836_v31 }
 0x3cd   :  { %v2965_v57 = vadd.f32 %v2962_v27, %v2948_v6  ;;  %v2745_v6 = vadd.f32 %v2742_v50, %v2728_v47  ;;  %v2981_v3 = vadd.f32 %v2978_v26, %v2964_v17  ;;  %v2887_v47 = vld [vmem:[#allocation2 + $0xc7] ss:$10 sm:$0x1f] }
 0x3ce   :  { %v2895_v17 = vmul.f32 %v6694_v14, %v2887_v47  ;;  %v2921_v26 = vld [vmem:[#allocation2 + $0xc9] ss:$10 sm:$0x1f] }
 0x3cf   :  { %v2982_v40 = vadd.f32 %v2979_v24, %v2965_v57  ;;  %v2762_v62 = vadd.f32 %v2759_v52, %v2745_v6  ;;  %v3064_v57 = vmul.f32 %v6774_v8, %v3055_v39  ;;  %v2998_v24 = vadd.f32 %v2995_v7, %v2981_v3  ;;  %v2938_v39 = vld [vmem:[#allocation2 + $0xca] ss:$10 sm:$0x1f]  ;;  %v2955_v6 = vld [vmem:[#allocation2 + $0xcb] ss:$10 sm:$0x1f] }
 0x3d0   :  { %v2929_v52 = vmul.f32 %v6710_v34, %v2921_v26  ;;  %v2963_v7 = vmul.f32 %v6726_v54, %v2955_v6  ;;  %v3184_v26 = vld [vmem:[%s7256_s5 + $0x18] sm:$0xff] }
 0x3d1   :  { %v2999_v48 = vadd.f32 %v2996_v43, %v2982_v40  ;;  %v2779_v42 = vadd.f32 %v2776_v37, %v2762_v62  ;;  %v3015_v29 = vadd.f32 %v3012_v53, %v2998_v24  ;;  %v2819_v40 = vld [vmem:[#allocation2 + $0xc3] ss:$10 sm:$0x1f]  ;;  %v3006_v37 = vld [vmem:[#allocation2 + $0xce] ss:$10 sm:$0x1f] }
 0x3d2   :  { %v3053_v43 = vld [vmem:[#allocation2 + $0x31] ss:$10 sm:$0xff]  ;;  %v2827_v61 = vmul.f32 %v6662_v16, %v2819_v40  ;;  %v3014_v34 = vmul.f32 %v6750_v56, %v3006_v37  ;;  %v3040_v24 = vld [vmem:[#allocation2 + $0xd0] ss:$10 sm:$0x1f] }
 0x3d3   :  { %v3016_v13 = vadd.f32 %v3013_v60, %v2999_v48  ;;  %v2796_v1 = vadd.f32 %v2793_v41, %v2779_v42  ;;  %v3032_v44 = vadd.f32 %v3029_v22, %v3015_v29  ;;  %v3063_v48 = vmul.f32 %v6774_v8, %v3053_v43  ;;  %v2853_v60 = vld [vmem:[#allocation2 + $0xc5] ss:$10 sm:$0x1f] }
 0x3d4   :  { %v2861_v33 = vmul.f32 %v6678_v30, %v2853_v60  ;;  %v3048_v54 = vmul.f32 %v6766_v23, %v3040_v24  ;;  %v3065_v42 = vmul.f32 %v6774_v8, %v3057_v51  ;;  %v3190_v37 = vld [vmem:[%s7256_s5 + $0x48] sm:$0xff]  ;;  %v3193_v24 = vld [vmem:[%s7256_s5 + $0x60] sm:$0xff] }
 0x3d5   :  { %v3033_v27 = vadd.f32 %v3030_v15, %v3016_v13  ;;  %v2813_v12 = vadd.f32 %v2810_v10, %v2796_v1  ;;  %v3049_v5 = vadd.f32 %v3046_v25, %v3032_v44  ;;  %v2878_v13 = vmul.f32 %v6686_v4, %v2870_v18  ;;  %v2904_v15 = vld [vmem:[#allocation2 + $0xc8] ss:$10 sm:$0x1f] }
 0x3d6   :  { %v2912_v30 = vmul.f32 %v6702_v9, %v2904_v15  ;;  %v2997_v9 = vmul.f32 %v6742_v59, %v2989_v49  ;;  %v5221_v15 = vmov 0.0|0.0  }
 0x3d7   :  { %v3050_v45 = vadd.f32 %v3047_v38, %v3033_v27  ;;  %v2830_v36 = vadd.f32 %v2827_v61, %v2813_v12  ;;  %v3066_v46 = vadd.f32 %v3063_v48, %v3049_v5  ;;  %v2946_v27 = vmul.f32 %v6718_v20, %v2938_v39  ;;  %v2972_v38 = vld [vmem:[#allocation2 + $0xcc] ss:$10 sm:$0x1f]  ;;  %4826 = vmatprep.subr.bf16.mxu1 %v5221_v15 }
 0x3d8   :  { %v2980_v14 = vmul.f32 %v6734_v55, %v2972_v38  ;;  %v3186_v39 = vld [vmem:[%s7256_s5 + $0x28] sm:$0xff]  ;;  %v3188_v38 = vld [vmem:[%s7256_s5 + $0x38] sm:$0xff] }
 0x3d9   :  { %v3067_v19 = vadd.f32 %v3064_v57, %v3050_v45  ;;  %v2847_v35 = vadd.f32 %v2844_v32, %v2830_v36  ;;  %v6794_v50 = vmax.f32 %v3066_v46, 0.0  ;;  %v3023_v45 = vld [vmem:[#allocation2 + $0xcf] ss:$10 sm:$0x1f]  ;;  %v3225_v51 = vand.u32 4294901760, %v3188_v38 }
 0x3da   :  { %v3031_v20 = vmul.f32 %v6758_v2, %v3023_v45 }
 0x3db   :  { %v6785_v28 = vmax.f32 %v3067_v19, 0.0  ;;  %v2864_v16 = vadd.f32 %v2861_v33, %v2847_v35  ;;  %3072 = vrot.lane.b32.xlu0 %v6794_v50, %s5219_s25 }
 0x3dd   :  { %3074 = vrot.lane.b32.xlu1 %v6785_v28, %s5219_s25  ;;  %v2881_v0 = vadd.f32 %v2878_v13, %v2864_v16  ;;  %v3182_v16 = vld [vmem:[%s7256_s5 + $0x8] sm:$0xff]  ;;  %v3183_v13 = vld [vmem:[%s7256_s5 + $0x10] sm:$0xff] }
 0x3df   :  { %v2898_v11 = vadd.f32 %v2895_v17, %v2881_v0  ;;  %v3207_v17 = vand.u32 4294901760, %v3182_v16 }
 0x3e1   :  { %3081 = vrot.lane.b32.xlu1 %v6794_v50, %s5220_s26  ;;  %v2915_v58 = vadd.f32 %v2912_v30, %v2898_v11  ;;  %v3210_v11 = vand.u32 4294901760, %v3183_v13  ;;  %v3185_v30 = vld [vmem:[%s7256_s5 + $0x20] sm:$0xff] }
 0x3e2   :  { %v3216_v6 = vand.u32 4294901760, %v3185_v30 }
 0x3e3   :  { %v2932_v4 = vadd.f32 %v2929_v52, %v2915_v58  ;;  %v5223_v58 = vmov 0.0   ;;  %v3213_v52 = vand.u32 4294901760, %v3184_v26 }
 0x3e4   :  { %4600 = vmatprep.mubr.msk.f32.mxu1 %vm5222_vm2, %v5223_v58 }
 0x3e5   :  { %v2949_v3 = vadd.f32 %v2946_v27, %v2932_v4  ;;  %v3219_v4 = vand.u32 4294901760, %v3186_v39  ;;  %v3187_v27 = vld [vmem:[%s7256_s5 + $0x30] sm:$0xff]  ;;  %v6908_v45 = vpack.c.bf16 %v3213_v52, %v3210_v11 }
 0x3e7   :  { %v2966_v63 = vadd.f32 %v2963_v7, %v2949_v3  ;;  %v3189_v3 = vld [vmem:[%s7256_s5 + $0x40] sm:$0xff] }
 0x3e9   :  { %v2983_v62 = vadd.f32 %v2980_v14, %v2966_v63  ;;  %v6895_v63 = vsub.f32 %v3182_v16, %v3207_v17  ;;  %v6897_v14 = vsub.f32 %v3183_v13, %v3210_v11 }
 0x3eb   :  { %v3000_v57 = vadd.f32 %v2997_v9, %v2983_v62  ;;  %v3191_v62 = vld [vmem:[%s7256_s5 + $0x50] sm:$0xff]  ;;  %v3192_v9 = vld [vmem:[%s7256_s5 + $0x58] sm:$0xff]  ;;  %v7326_v16 = vand.u32 4294901760, %v6897_v14 }
 0x3ed   :  { %v3017_v53 = vadd.f32 %v3014_v34, %v3000_v57  ;;  %v6910_v57 = vsub.f32 %v3184_v26, %v3213_v52  ;;  %v6912_v34 = vsub.f32 %v3185_v30, %v3216_v6  ;;  %v3312_v26 = vsub.f32 %v6897_v14, %v7326_v16 }
 0x3ef   :  { %v3034_v21 = vadd.f32 %v3031_v20, %v3017_v53  ;;  %v6918_v53 = vsub.f32 %v3186_v39, %v3219_v4  ;;  %v3222_v20 = vand.u32 4294901760, %v3187_v27  ;;  %v7325_v13 = vand.u32 4294901760, %v6910_v57 }
 0x3f0   :  { %v3313_v52 = vand.u32 4294901760, %v3312_v26 }
 0x3f1   :  { %v3051_v41 = vadd.f32 %v3048_v54, %v3034_v21  ;;  %v3228_v21 = vand.u32 4294901760, %v3189_v3  ;;  %v3231_v54 = vand.u32 4294901760, %v3190_v37  ;;  %v3319_v11 = vsub.f32 %v6910_v57, %v7325_v13 }
 0x3f3   :  { %v3068_v55 = vadd.f32 %v3065_v42, %v3051_v41  ;;  %v3234_v41 = vand.u32 4294901760, %v3191_v62  ;;  %v3237_v42 = vand.u32 4294901760, %v3192_v9 }
 0x3f5   :  { %v3071_v19 = vmax.f32 %v3068_v55, 0.0  ;;  %v3194_v55 = vld [vmem:[%s7256_s5 + $0x68] sm:$0xff]  ;;  %v6978_v30 = vpack.c.bf16 %v3237_v42, %v3234_v41 }
 0x3f7   :  { %3076 = vrot.lane.b32.xlu0 %v3071_v19, %s5219_s25  ;;  %3085 = vrot.lane.b32.xlu1 %v3071_v19, %s5220_s26 }
 0x3fb   :  { %3083 = vrot.lane.b32.xlu0 %v6785_v28, %s5220_s26  ;;  %3092 = vrot.lane.b32.xlu1 %v6785_v28, %s5218_s2 }
 0x3ff   :  { %3090 = vrot.lane.b32.xlu0 %v6794_v50, %s5218_s2 }
 0x403   :  { %3094 = vrot.lane.b32.xlu0 %v3071_v19, %s5218_s2 }
 0x44d   :  { %v3073_v56 = vpop.permute.xlu0 %3072 }
 0x44e   :  { %v3078_v43 = vadd.f32 %v3073_v56, %v6794_v50  ;;  %v6929_v56 = vsub.f32 %v3188_v38, %v3225_v51 }
 0x44f   :  { %v3075_v59 = vpop.permute.xlu1 %3074 }
 0x450   :  { %v3079_v29 = vadd.f32 %v3075_v59, %v6785_v28  ;;  %v6927_v59 = vsub.f32 %v3187_v27, %v3222_v20  ;;  %v7323_v27 = vand.u32 4294901760, %v6918_v53 }
 0x453   :  { %v3082_v2 = vpop.permute.xlu1 %3081 }
 0x454   :  { %v3087_v1 = vadd.f32 %v3082_v2, %v3078_v43  ;;  %v6931_v2 = vsub.f32 %v3189_v3, %v3228_v21  ;;  %v6943_v43 = vsub.f32 %v3192_v9, %v3237_v42 }
 0x469   :  { %v3077_v23 = vpop.permute.xlu0 %3076  ;;  %v3086_v8 = vpop.permute.xlu1 %3085 }
 0x46a   :  { %v3080_v31 = vadd.f32 %v3077_v23, %v3071_v19  ;;  %v3240_v23 = vand.u32 4294901760, %v3193_v24 }
 0x46c   :  { %v3089_v5 = vadd.f32 %v3086_v8, %v3080_v31  ;;  %v3196_v8 = vld [vmem:[%s7256_s5 + $0x78] sm:$0xff] }
 0x46d   :  { %v3084_v22 = vpop.permute.xlu0 %3083  ;;  %v3093_v40 = vpop.permute.xlu1 %3092 }
 0x46e   :  { %v3088_v10 = vadd.f32 %v3084_v22, %v3079_v29  ;;  %v6936_v29 = vpack.c.bf16 %v3219_v4, %v3216_v6  ;;  %v6938_v22 = vsub.f32 %v3190_v37, %v3231_v54  ;;  %v3320_v6 = vand.u32 4294901760, %v3319_v11 }
 0x46f   :  { %v7324_v4 = vand.u32 4294901760, %v6912_v34  ;;  %v3333_v37 = vsub.f32 %v6918_v53, %v7323_v27 }
 0x470   :  { %v3097_v44 = vadd.f32 %v3093_v40, %v3088_v10  ;;  %v6940_v40 = vsub.f32 %v3191_v62, %v3234_v41  ;;  %v3243_v10 = vand.u32 4294901760, %v3194_v55  ;;  %v6986_v38 = vpack.c.bf16 %v3320_v6, %v3313_v52 }
 0x471   :  { %v3091_v25 = vpop.permute.xlu0 %3090  ;;  %v3326_v3 = vsub.f32 %v6912_v34, %v7324_v4 }
 0x472   :  { %v3100_v61 = vmul.f32 0.25, %v3097_v44  ;;  %v3096_v12 = vadd.f32 %v3091_v25, %v3087_v1  ;;  %v6945_v1 = vsub.f32 %v3193_v24, %v3240_v23  ;;  %v3249_v25 = vand.u32 4294901760, %v3196_v8 }
 0x473   :  { %v6948_v31 = vsub.f32 %v3194_v55, %v3243_v10  ;;  %v6995_v62 = vpack.c.bf16 %v3243_v10, %v3240_v23  ;;  %v3327_v9 = vand.u32 4294901760, %v3326_v3  ;;  %v7322_v24 = vand.u32 4294901760, %v6927_v59 }
 0x474   :  { %v6824_v48 = vsub.f32 %v6785_v28, %v3100_v61  ;;  %v3099_v60 = vmul.f32 0.25, %v3096_v12  ;;  %v6952_v12 = vsub.f32 %v3196_v8, %v3249_v25  ;;  %v7320_v23 = vand.u32 4294901760, %v6931_v2 }
 0x475   :  { %v3095_v32 = vpop.permute.xlu0 %3094  ;;  %v7319_v8 = vand.u32 4294901760, %v6938_v22 }
 0x476   :  { %v6828_v36 = vmul.f32 %v6824_v48, %v6824_v48  ;;  %v6831_v46 = vsub.f32 %v6794_v50, %v3099_v60  ;;  %v3098_v18 = vadd.f32 %v3095_v32, %v3089_v5  ;;  %v3181_v50 = vld [vmem:[%s7256_s5] sm:$0xff]  ;;  %v6955_v5 = vpack.c.bf16 %v3225_v51, %v3222_v20 }
 0x477   :  { %v3204_v0 = vand.u32 4294901760, %v3181_v50  ;;  %v7327_v32 = vand.u32 4294901760, %v6895_v63  ;;  %v7321_v20 = vand.u32 4294901760, %v6929_v56  ;;  %v3334_v51 = vand.u32 4294901760, %v3333_v37 }
 0x478   :  { %v6835_v33 = vmul.f32 %v6831_v46, %v6831_v46  ;;  %v3101_v35 = vmul.f32 0.25, %v3098_v18  ;;  %3110 = vrot.lane.b32.xlu0 %v6828_v36, %s5219_s25  ;;  %v6960_v18 = vpack.c.bf16 %v3231_v54, %v3228_v21  ;;  %v3340_v21 = vsub.f32 %v6927_v59, %v7322_v24 }
 0x479   :  { %v6891_v7 = vpack.c.bf16 %v3207_v17, %v3204_v0  ;;  %v6893_v49 = vsub.f32 %v3181_v50, %v3204_v0  ;;  %v3305_v50 = vsub.f32 %v6895_v63, %v7327_v32  ;;  %v3347_v54 = vsub.f32 %v6929_v56, %v7321_v20 }
 0x47a   :  { %v6839_v28 = vsub.f32 %v3071_v19, %v3101_v35  ;;  %3108 = vrot.lane.b32.xlu1 %v6835_v33, %s5219_s25  ;;  %v3195_v19 = vld [vmem:[%s7256_s5 + $0x70] sm:$0xff]  ;;  %v7008_v42 = vpack.c.bf16 %v3334_v51, %v3327_v9  ;;  %v3341_v55 = vand.u32 4294901760, %v3340_v21  ;;  %v7316_v37 = vand.u32 4294901760, %v6945_v1 }
 0x47b   :  { %4828 = vmatpush3.bf16.msra.mxu1 %v6891_v7  ;;  %v3246_v44 = vand.u32 4294901760, %v3195_v19  ;;  %v7328_v60 = vand.u32 4294901760, %v6893_v49  ;;  %v3306_v17 = vand.u32 4294901760, %v3305_v50  ;;  %v7315_v9 = vand.u32 4294901760, %v6948_v31 }
 0x47c   :  { %v6845_v47 = vmul.f32 %v6839_v28, %v6839_v28  ;;  %3117 = vrot.lane.b32.xlu0 %v6835_v33, %s5220_s26  ;;  %4829 = vmatprep.subr.bf16.mxu1 %v5221_v15  ;;  %v3382_v21 = vsub.f32 %v6945_v1, %v7316_v37 }
 0x47d   :  { %v6950_v61 = vsub.f32 %v3195_v19, %v3246_v44  ;;  %v3298_v35 = vsub.f32 %v6893_v49, %v7328_v60  ;;  %v7006_v41 = vpack.c.bf16 %v3249_v25, %v3246_v44  ;;  %v3348_v19 = vand.u32 4294901760, %v3347_v54 }
 0x47e   :  { %3112 = vrot.lane.b32.xlu1 %v6845_v47, %s5219_s25  ;;  %v3361_v44 = vsub.f32 %v6938_v22, %v7319_v8  ;;  %v3389_v54 = vsub.f32 %v6948_v31, %v7315_v9 }
 0x47f   :  { %4831 = vmatpush3.bf16.msra.mxu1 %v6908_v45  ;;  %v3299_v0 = vand.u32 4294901760, %v3298_v35  ;;  %v7014_v10 = vpack.c.bf16 %v3348_v19, %v3341_v55  ;;  %v3354_v35 = vsub.f32 %v6931_v2, %v7320_v23  ;;  %v3383_v55 = vand.u32 4294901760, %v3382_v21 }
 0x480   :  { %3121 = vrot.lane.b32.xlu0 %v6845_v47, %s5220_s26  ;;  %4832 = vmatprep.subr.bf16.mxu1 %v5221_v15  ;;  %v3362_v50 = vand.u32 4294901760, %v3361_v44  ;;  %v3390_v19 = vand.u32 4294901760, %v3389_v54  ;;  %v7314_v44 = vand.u32 4294901760, %v6952_v12  ;;  %v4875_v21 = vpack.c.bf16 %v6895_v63, %v6893_v49 }
 0x481   :  { %v6981_v39 = vpack.c.bf16 %v3306_v17, %v3299_v0  ;;  %v3355_v25 = vand.u32 4294901760, %v3354_v35  ;;  %v7318_v0 = vand.u32 4294901760, %v6940_v40  ;;  %v7317_v17 = vand.u32 4294901760, %v6943_v43 }
 0x482   :  { %3119 = vrot.lane.b32.xlu1 %v6828_v36, %s5220_s26  ;;  %v7313_v35 = vand.u32 4294901760, %v6950_v61  ;;  %v4878_v54 = vpack.c.bf16 %v6910_v57, %v6897_v14 }
 0x483   :  { %4834 = vmatpush3.bf16.msra.mxu1 %v6936_v29  ;;  %v7026_v26 = vpack.c.bf16 %v3362_v50, %v3355_v25  ;;  %v3368_v11 = vsub.f32 %v6940_v40, %v7318_v0  ;;  %v3375_v52 = vsub.f32 %v6943_v43, %v7317_v17  ;;  %v7046_v25 = vpack.c.bf16 %v3390_v19, %v3383_v55 }
 0x484   :  { %3128 = vrot.lane.b32.xlu0 %v6828_v36, %s5218_s2  ;;  %4835 = vmatprep.subr.bf16.mxu1 %v5221_v15  ;;  %v3396_v50 = vsub.f32 %v6950_v61, %v7313_v35 }
 0x485   :  { %v3369_v6 = vand.u32 4294901760, %v3368_v11  ;;  %v3376_v3 = vand.u32 4294901760, %v3375_v52  ;;  %v3403_v11 = vsub.f32 %v6952_v12, %v7314_v44 }
 0x486   :  { %3126 = vrot.lane.b32.xlu1 %v6835_v33, %s5218_s2  ;;  %v3397_v52 = vand.u32 4294901760, %v3396_v50 }
 0x487   :  { %4837 = vmatpush3.bf16.msra.mxu1 %v6955_v5  ;;  %v7036_v51 = vpack.c.bf16 %v3376_v3, %v3369_v6  ;;  %v3404_v6 = vand.u32 4294901760, %v3403_v11 }
 0x488   :  { %4838 = vmatprep.subr.bf16.mxu1 %v5221_v15 }
 0x489   :  { %v7054_v3 = vpack.c.bf16 %v3404_v6, %v3397_v52 }
 0x48a   :  { %3130 = vrot.lane.b32.xlu1 %v6845_v47, %s5218_s2 }
 0x48b   :  { %4840 = vmatpush3.bf16.msra.mxu1 %v6960_v18 }
 0x48c   :  { %4841 = vmatprep.subr.bf16.mxu1 %v5221_v15 }
 0x48f   :  { %4843 = vmatpush3.bf16.msra.mxu1 %v6978_v30 }
 0x490   :  { %4844 = vmatprep.subr.bf16.mxu1 %v5221_v15 }
 0x493   :  { %4846 = vmatpush3.bf16.msra.mxu1 %v6995_v62 }
 0x494   :  { %4847 = vmatprep.subr.bf16.mxu1 %v5221_v15 }
 0x497   :  { %4849 = vmatpush3.bf16.msra.mxu1 %v7006_v41 }
 0x498   :  { %4850 = vmatprep.subr.bf16.mxu1 %v5221_v15 }
 0x4ea   :  { %v3111_v6 = vpop.permute.xlu0 %3110 }
 0x4eb   :  { %v3115_v0 = vadd.f32 %v3111_v6, %v6828_v36 }
 0x4ec   :  { %v3109_v44 = vpop.permute.xlu1 %3108 }
 0x4ed   :  { %v3114_v23 = vadd.f32 %v3109_v44, %v6835_v33 }
 0x4ee   :  { %v3118_v9 = vpop.permute.xlu0 %3117 }
 0x4ef   :  { %v3123_v27 = vadd.f32 %v3118_v9, %v3114_v23 }
 0x4f0   :  { %v3113_v37 = vpop.permute.xlu1 %3112 }
 0x4f1   :  { %v3116_v16 = vadd.f32 %v3113_v37, %v6845_v47 }
 0x4f2   :  { %v3122_v17 = vpop.permute.xlu0 %3121 }
 0x4f3   :  { %v3125_v52 = vadd.f32 %v3122_v17, %v3116_v16  ;;  %v3148_v16 = vld [vmem:[%s7255_s4 + $0x8] sm:$0xff] }
 0x4f4   :  { %v3120_v8 = vpop.permute.xlu1 %3119 }
 0x4f5   :  { %v3124_v20 = vadd.f32 %v3120_v8, %v3115_v0 }
 0x4f6   :  { %v3129_v24 = vpop.permute.xlu0 %3128 }
 0x4f7   :  { %v3133_v4 = vadd.f32 %v3129_v24, %v3124_v20  ;;  %v3147_v24 = vld [vmem:[%s7255_s4] sm:$0xff] }
 0x4f8   :  { %v3127_v13 = vpop.permute.xlu1 %3126 }
 0x4f9   :  { %v3132_v32 = vadd.f32 %v3127_v13, %v3123_v27  ;;  %v3136_v60 = vmul.f32 0.25, %v3133_v4  ;;  %v3912_v13 = vld [vmem:[%s7255_s4 + $0x20] sm:$0xff] }
 0x4fb   :  { %v3135_v11 = vmul.f32 0.25, %v3132_v32  ;;  %v3139_v50 = vadd.f32 1e-05, %v3136_v60  ;;  %v3911_v60 = vld [vmem:[%s7255_s4 + $0x18] sm:$0xff] }
 0x4fc   :  { %v3131_v35 = vpop.permute.xlu1 %3130 }
 0x4fd   :  { %v3138_v19 = vadd.f32 1e-05, %v3135_v11  ;;  %5188 = vrsqrt.f32 %v3139_v50  ;;  %v3134_v55 = vadd.f32 %v3131_v35, %v3125_v52 }
 0x4ff   :  { %5190 = vrsqrt.f32 %v3138_v19  ;;  %v3137_v36 = vmul.f32 0.25, %v3134_v55 }
 0x501   :  { %v3140_v6 = vadd.f32 1e-05, %v3137_v36 }
 0x503   :  { %5192 = vrsqrt.f32 %v3140_v6 }
 0x507   :  { %v5189_v33 = vpop.eup %5188 }
 0x508   :  { %v3145_v47 = vmul.f32 %v5189_v33, %v6824_v48  ;;  %v3149_v48 = vld [vmem:[%s7255_s4 + $0x10] sm:$0x1f] }
 0x509   :  { %v5191_v8 = vpop.eup %5190 }
 0x50a   :  { %v3144_v32 = vmul.f32 %v5191_v8, %v6831_v46  ;;  %v3151_v23 = vmul.f32 %v3148_v16, %v3145_v47  ;;  %v3168_v0 = vmul.f32 %v3912_v13, %v3145_v47  ;;  %v3913_v46 = vld [vmem:[%s7255_s4 + $0x28] sm:$0x1f] }
 0x50c   :  { %v3150_v27 = vmul.f32 %v3147_v24, %v3144_v32  ;;  %v3167_v20 = vmul.f32 %v3911_v60, %v3144_v32 }
 0x50d   :  { %v5193_v4 = vpop.eup %5192 }
 0x50e   :  { %v3146_v17 = vmul.f32 %v5193_v4, %v6839_v28  ;;  %v3153_v35 = vadd.f32 %v3151_v23, %v3150_v27  ;;  %v3170_v44 = vadd.f32 %v3168_v0, %v3167_v20 }
 0x510   :  { %v3152_v37 = vmul.f32 %v3149_v48, %v3146_v17  ;;  %v3169_v9 = vmul.f32 %v3913_v46, %v3146_v17  ;;  %v7400_v17 = vand.u32 4294901760, %v6897_v14  ;;  %v7405_v14 = vand.u32 4294901760, %v6929_v56 }
 0x512   :  { %v3155_v55 = vsel %vm3154_vm3, %v3152_v37, 0.0  ;;  %v3171_v19 = vsel %vm3154_vm3, %v3169_v9, 0.0  ;;  %v7401_v37 = vand.u32 4294901760, %v6910_v57 }
 0x513   :  { %v3156_v50 = vadd.f32 %v3155_v55, %v3153_v35  ;;  %v3172_v11 = vadd.f32 %v3171_v19, %v3170_v44  ;;  %v7404_v44 = vand.u32 4294901760, %v6927_v59  ;;  %v7406_v55 = vand.u32 4294901760, %v6931_v2 }
 0x514   :  { %v4926_v9 = vpack.c.bf16 %v7401_v37, %v7400_v17  ;;  %v7407_v19 = vand.u32 4294901760, %v6938_v22 }
 0x515   :  { %v3157_v52 = vrot.slane %v3156_v50, 4  ;;  %v3173_v36 = vrot.slane %v3172_v11, 4  ;;  %v4932_v57 = vpack.c.bf16 %v7405_v14, %v7404_v44 }
 0x517   :  { %v3158_v6 = vadd.f32 %v3157_v52, %v3156_v50  ;;  %v3174_v33 = vadd.f32 %v3173_v36, %v3172_v11  ;;  %v4935_v50 = vpack.c.bf16 %v7407_v19, %v7406_v55 }
 0x519   :  { %v3159_v8 = vrot.slane %v3158_v6, 2  ;;  %v3175_v24 = vrot.slane %v3174_v33, 2 }
 0x51b   :  { %v3160_v47 = vadd.f32 %v3159_v8, %v3158_v6  ;;  %v3176_v60 = vadd.f32 %v3175_v24, %v3174_v33 }
 0x51d   :  { %v3161_v32 = vrot.slane %v3160_v47, 1  ;;  %v3177_v16 = vrot.slane %v3176_v60, 1 }
 0x51f   :  { %v3162_v28 = vadd.f32 %v3161_v32, %v3160_v47  ;;  %v3178_v13 = vadd.f32 %v3177_v16, %v3176_v60 }
 0x521   :  { %v3180_v4 = vsel %vm3179_vm4, %v3162_v28, %v3178_v13 }
 0x522   :  { %v7096_v27 = vand.u32 4294901760, %v3180_v4 }
 0x524   :  { %v7099_v20 = vsub.f32 %v3180_v4, %v7096_v27 }
 0x526   :  { %v3286_v23 = vand.u32 4294901760, %v7099_v20 }
 0x528   :  { %v3287_v0 = vsub.f32 %v7099_v20, %v3286_v23 }
 0x52a   :  { %v3288_v48 = vand.u32 4294901760, %v3287_v0 }
 0x52c   :  { %4601 = vmatmul.mubr.f32.vlgmr.msra.gmra.mrb[32].mxu1 %v3288_v48 }
 0x52d   :  { %4852 = vmatpush3.bf16.msra.mxu1 %v6981_v39  ;;  %4635 = vmatprep.mubr.msk.f32.mxu1 %vm5222_vm2, %v5223_v58  ;;  %v3197_v39 = vld [vmem:[%s7257_s6] sm:$0x3]  ;;  %s5225_s6 = smov [#allocation3]  }
 0x52e   :  { %4853 = vmatprep.subr.bf16.mxu1 %v5221_v15  ;;  %s3852_s0 = sshll.u32 %s5225_s6, 4  ;;  %s3853_s0 = int_to_ptr.vmem [resolvable:$true] %s3852_s0 }
 0x52f   :  { %s5194_s24 = scalar_lea.vmem %s3853_s0, 32  ;;  %p5199_p1 = scmp.lt.s32.totalorder %s3853_s0, %s3853_s0 }
 0x530   :  { %p5195_p0 = scmp.ne.s32.totalorder %s3853_s0, %s5194_s24  ;;  %p5200_p2 = scmp.lt.s32.totalorder %s5194_s24, %s5194_s24 }
 0x531   :  { %4855 = vmatpush3.bf16.msra.mxu1 %v6986_v38  ;;  %v5224_v38 = vmov 0  }
 0x532   :  { %4856 = vmatprep.subr.bf16.mxu1 %v5221_v15  ;;  %5185 = vset.pattern.permute.xlu0 %v5224_v38  ;;  %p5201_p3 = por %p5200_p2, %p5199_p1 }
 0x533   :  { %3200 = vperm.xlu0 %5185, %v3197_v39  }
 0x534   :  { %p5202_p4 = pnand %p5201_p3, %p5195_p0 }
 0x535   :  { %4858 = vmatpush3.bf16.msra.mxu1 %v7008_v42  ;;  %v7392_v42 = vpack.c.bf16 %v6918_v53, %v6912_v34 }
 0x536   :  { %4859 = vmatprep.subr.bf16.mxu1 %v5221_v15 }
 0x539   :  { %4861 = vmatpush3.bf16.msra.mxu1 %v7014_v10  ;;  %v7393_v10 = vpack.c.bf16 %v6929_v56, %v6927_v59  ;;  %v7410_v59 = vand.u32 4294901760, %v6945_v1  ;;  %v7411_v56 = vand.u32 4294901760, %v6948_v31 }
 0x53a   :  { %4862 = vmatprep.subr.bf16.mxu1 %v5221_v15 }
 0x53b   :  { %v4941_v52 = vpack.c.bf16 %v7411_v56, %v7410_v59 }
 0x53d   :  { %4864 = vmatpush3.bf16.msra.mxu1 %v7026_v26  ;;  %v7394_v26 = vpack.c.bf16 %v6938_v22, %v6931_v2  ;;  %v7412_v2 = vand.u32 4294901760, %v6950_v61  ;;  %v7413_v22 = vand.u32 4294901760, %v6952_v12 }
 0x53e   :  { %4865 = vmatprep.subr.bf16.mxu1 %v5221_v15 }
 0x53f   :  { %v4944_v36 = vpack.c.bf16 %v7413_v22, %v7412_v2 }
 0x541   :  { %4867 = vmatpush3.bf16.msra.mxu1 %v7036_v51  ;;  %v7395_v51 = vpack.c.bf16 %v6943_v43, %v6940_v40 }
 0x542   :  { %4868 = vmatprep.subr.bf16.mxu1 %v5221_v15 }
 0x545   :  { %4870 = vmatpush3.bf16.msra.mxu1 %v7046_v25  ;;  %v7396_v25 = vpack.c.bf16 %v6948_v31, %v6945_v1 }
 0x546   :  { %4871 = vmatprep.subr.bf16.mxu1 %v5221_v15 }
 0x549   :  { %4873 = vmatpush3.bf16.msra.mxu1 %v7054_v3  ;;  %v7397_v3 = vpack.c.bf16 %v6952_v12, %v6950_v61 }
 0x54a   :  { %4874 = vmatprep.subr.bf16.mxu1 %v5221_v15 }
 0x54c   :  { %4636 = vmatmul.mubr.f32.vlgmr.msra.gmra.mrb[32].mxu1 %v7096_v27 }
 0x54d   :  { %4876 = vmatpush3.bf16.msra.mxu1 %v4875_v21  ;;  %4670 = vmatprep.mubr.msk.f32.mxu1 %vm5222_vm2, %v5223_v58  ;;  %v7398_v21 = vand.u32 4294901760, %v6893_v49  ;;  %v7402_v49 = vand.u32 4294901760, %v6912_v34  ;;  %v7408_v34 = vand.u32 4294901760, %v6940_v40 }
 0x54e   :  { %4877 = vmatprep.subr.bf16.mxu1 %v5221_v15 }
 0x551   :  { %4879 = vmatpush3.bf16.msra.mxu1 %v4878_v54  ;;  %v7399_v54 = vand.u32 4294901760, %v6895_v63  ;;  %v7403_v63 = vand.u32 4294901760, %v6918_v53  ;;  %v7409_v53 = vand.u32 4294901760, %v6943_v43 }
 0x552   :  { %4880 = vmatprep.subr.bf16.mxu1 %v5221_v15 }
 0x553   :  { %v4923_v46 = vpack.c.bf16 %v7399_v54, %v7398_v21  ;;  %v4929_v35 = vpack.c.bf16 %v7403_v63, %v7402_v49  ;;  %v4938_v11 = vpack.c.bf16 %v7409_v53, %v7408_v34 }
 0x555   :  { %4882 = vmatpush3.bf16.msra.mxu1 %v7392_v42 }
 0x556   :  { %4883 = vmatprep.subr.bf16.mxu1 %v5221_v15 }
 0x559   :  { %4885 = vmatpush3.bf16.msra.mxu1 %v7393_v10 }
 0x55a   :  { %4886 = vmatprep.subr.bf16.mxu1 %v5221_v15 }
 0x55d   :  { %4888 = vmatpush3.bf16.msra.mxu1 %v7394_v26 }
 0x55e   :  { %4889 = vmatprep.subr.bf16.mxu1 %v5221_v15 }
 0x561   :  { %4891 = vmatpush3.bf16.msra.mxu1 %v7395_v51 }
 0x562   :  { %4892 = vmatprep.subr.bf16.mxu1 %v5221_v15 }
 0x565   :  { %4894 = vmatpush3.bf16.msra.mxu1 %v7396_v25 }
 0x566   :  { %4895 = vmatprep.subr.bf16.mxu1 %v5221_v15 }
 0x569   :  { %4897 = vmatpush3.bf16.msra.mxu1 %v7397_v3 }
 0x56a   :  { %4898 = vmatprep.subr.bf16.mxu1 %v5221_v15 }
 0x56c   :  { %4671 = vmatmul.mubr.f32.vlgmr.msra.gmra.mrb[32].mxu1 %v7099_v20 }
 0x56d   :  { %4900 = vmatpush3.bf16.msra.mxu1 %v6891_v7  ;;  %4705 = vmatprep.mubr.msk.f32.mxu1 %vm5222_vm2, %v5223_v58 }
 0x56e   :  { %4901 = vmatprep.subr.bf16.mxu1 %v5221_v15 }
 0x571   :  { %4903 = vmatpush3.bf16.msra.mxu1 %v6908_v45 }
 0x572   :  { %4904 = vmatprep.subr.bf16.mxu1 %v5221_v15 }
 0x575   :  { %4906 = vmatpush3.bf16.msra.mxu1 %v6936_v29 }
 0x576   :  { %4907 = vmatprep.subr.bf16.mxu1 %v5221_v15 }
 0x579   :  { %4909 = vmatpush3.bf16.msra.mxu1 %v6955_v5 }
 0x57a   :  { %4910 = vmatprep.subr.bf16.mxu1 %v5221_v15 }
 0x57d   :  { %4912 = vmatpush3.bf16.msra.mxu1 %v6960_v18 }
 0x57e   :  { %4913 = vmatprep.subr.bf16.mxu1 %v5221_v15 }
 0x581   :  { %4915 = vmatpush3.bf16.msra.mxu1 %v6978_v30 }
 0x582   :  { %4916 = vmatprep.subr.bf16.mxu1 %v5221_v15 }
 0x585   :  { %4918 = vmatpush3.bf16.msra.mxu1 %v6995_v62 }
 0x586   :  { %4919 = vmatprep.subr.bf16.mxu1 %v5221_v15 }
 0x589   :  { %4921 = vmatpush3.bf16.msra.mxu1 %v7006_v41 }
 0x58a   :  { %4922 = vmatprep.subr.bf16.mxu1 %v5221_v15 }
 0x58c   :  { %4706 = vmatmul.mubr.f32.vlgmr.msra.gmra.mrb[32].mxu1 %v3286_v23 }
 0x58d   :  { %4924 = vmatpush3.bf16.msra.mxu1 %v4923_v46  ;;  %4740 = vmatprep.mubr.msk.f32.mxu1 %vm5222_vm2, %v5223_v58 }
 0x58e   :  { %4925 = vmatprep.subr.bf16.mxu1 %v5221_v15 }
 0x591   :  { %4927 = vmatpush3.bf16.msra.mxu1 %v4926_v9 }
 0x592   :  { %4928 = vmatprep.subr.bf16.mxu1 %v5221_v15 }
 0x595   :  { %4930 = vmatpush3.bf16.msra.mxu1 %v4929_v35 }
 0x596   :  { %4931 = vmatprep.subr.bf16.mxu1 %v5221_v15 }
 0x599   :  { %4933 = vmatpush3.bf16.msra.mxu1 %v4932_v57 }
 0x59a   :  { %4934 = vmatprep.subr.bf16.mxu1 %v5221_v15 }
 0x59d   :  { %4936 = vmatpush3.bf16.msra.mxu1 %v4935_v50 }
 0x59e   :  { %4937 = vmatprep.subr.bf16.mxu1 %v5221_v15 }
 0x5a1   :  { %4939 = vmatpush3.bf16.msra.mxu1 %v4938_v11 }
 0x5a2   :  { %4940 = vmatprep.subr.bf16.mxu1 %v5221_v15 }
 0x5a5   :  { %4942 = vmatpush3.bf16.msra.mxu1 %v4941_v52 }
 0x5a6   :  { %4943 = vmatprep.subr.bf16.mxu1 %v5221_v15 }
 0x5a9   :  { %4945 = vmatpush3.bf16.msra.mxu1 %v4944_v36 }
 0x5aa   :  { %4946 = vmatprep.subr.bf16.mxu1 %v5221_v15 }
 0x5ac   :  { %4741 = vmatmul.mubr.f32.vlgmr.msra.gmra.mrb[32].mxu1 %v7096_v27 }
 0x5ad   :  { %4948 = vmatpush3.bf16.msra.mxu1 %v6891_v7  ;;  %4775 = vmatprep.mubr.msk.f32.mxu1 %vm5222_vm2, %v5223_v58 }
 0x5ae   :  { %4949 = vmatprep.subr.bf16.mxu1 %v5221_v15 }
 0x5b1   :  { %4951 = vmatpush3.bf16.msra.mxu1 %v6908_v45 }
 0x5b2   :  { %4952 = vmatprep.subr.bf16.mxu1 %v5221_v15  ;;  %v3201_v58 = vpop.permute.xlu0 %3200 }
 0x5b5   :  { %4954 = vmatpush3.bf16.msra.mxu1 %v6936_v29 }
 0x5b6   :  { %4955 = vmatprep.subr.bf16.mxu1 %v5221_v15 }
 0x5b9   :  { %4957 = vmatpush3.bf16.msra.mxu1 %v6955_v5 }
 0x5ba   :  { %4958 = vmatprep.subr.bf16.mxu1 %v5221_v15 }
 0x5bd   :  { %4960 = vmatpush3.bf16.msra.mxu1 %v6960_v18 }
 0x5be   :  { %4961 = vmatprep.subr.bf16.mxu1 %v5221_v15 }
 0x5c1   :  { %4963 = vmatpush3.bf16.msra.mxu1 %v6978_v30 }
 0x5c2   :  { %4964 = vmatprep.subr.bf16.mxu1 %v5221_v15 }
 0x5c5   :  { %4966 = vmatpush3.bf16.msra.mxu1 %v6995_v62 }
 0x5c6   :  { %4967 = vmatprep.subr.bf16.mxu1 %v5221_v15 }
 0x5c9   :  { %4969 = vmatpush3.bf16.msra.mxu1 %v7006_v41 }
 0x5cc   :  { %4776 = vmatmul.mubr.f32.vlgmr.msra.gmra.mrb[32].mxu1 %v7096_v27 }
 0x69f   :  { %v3840_v7 = vpop.f32.mrb[32].mxu1 }
 0x6a0   :  { %v5038_v45 = vadd.f32 %v3840_v7, %v3201_v58  ;;  %v4777_v29 = vpop.f32.mrb[33].mxu1 }
 0x6a2   :  { %3845 = vst.msk [vmem:[#allocation3] sm:$0x3] %vm3844_vm5, %v5038_v45 }
 0x6a3   :  { %5205 = shalt.err (!%p5202_p4)
}
 0x6a4   :  { %s5206_s29 = scalar_lea.hbm %s7258_s7, 32 }
 0x6a5   :  { %p5207_p5 = scmp.ne.s32.totalorder %s7258_s7, %s5206_s29  ;;  %p5210_p6 = scmp.lt.u32.totalorder %s5206_s29, %s7258_s7 }
 0x6a7   :  { %p5212_p7 = pnand %p5210_p6, %p5207_p5 }
 0x6a9   :  { %5215 = shalt.err (!%p5212_p7)
}
 0x6aa   :  { %3855 = dma.vmem_to_hbm [thread:$0]  %s3853_s0, 32, %s7258_s7, [#allocation4]  }
 0x6ab   :  { %5216 = dma.done.wait [#allocation4], 32  }
 0x6ac   :  { %5217 = vsyncadd [#allocation4], 4294967264 }
 0x6ad   :  { %3859 = vsyncpa [#allocation4], 1 }

</bundles_post_ra>
